<compile_context>
chip_gen: v7x
topology: tpu7x:2x2x1
jax: 0.10.0
libtpu: 0.0.40
codegen_flags: <defaults>
</compile_context>

<pallas_src>
import jax
import jax.numpy as jnp
from jax.experimental import pallas as pl
from jax.experimental.pallas import tpu as pltpu

K1, K2, K3 = 8, 5, 3          # conv kernel sizes
C1, C2, C3 = 128, 256, 128    # conv output channels
BN_EPS = 1e-5


# --------------------------------------------------------------------------- kernel
def fcn_kernel(x_ref, w1_ref, t1_ref, w2_ref, t2_ref, w3_ref, t3_ref,
               wl_ref, bl_ref, out_ref):
    TB, L = x_ref.shape
    L1 = L - (K1 - 1)
    L2 = L1 - (K2 - 1)
    L3 = L2 - (K3 - 1)
    out_dim = out_ref.shape[1]

    x = x_ref[...]  # (TB, L) f32

    # ---- Conv1d(1 -> 128, k=8) + folded BN + ReLU -------------------------------
    # Cin == 1: broadcast-FMA on the VPU (BN scale already folded into w1).
    # TODO(synk): if VALU-bound on v5e, convert to an im2col (TB*L1, 8) @ (8, 128) matmul.
    h1 = jnp.zeros((TB, L1, C1), jnp.float32)
    for k in range(K1):  # static unroll over taps
        h1 = h1 + x[:, k:k + L1, None] * w1_ref[k, :][None, None, :]
    h1 = jnp.maximum(h1 + t1_ref[...].reshape(1, 1, C1), 0.0)

    # ---- Conv1d(128 -> 256, k=5) as one im2col bf16 MXU matmul ------------------
    a2 = jnp.concatenate([h1[:, k:k + L2, :] for k in range(K2)], axis=-1)  # (TB, L2, K2*C1)
    a2 = a2.reshape(TB * L2, K2 * C1).astype(jnp.bfloat16)
    h2 = jnp.dot(a2, w2_ref[...], preferred_element_type=jnp.float32)       # (TB*L2, C2) f32
    h2 = jnp.maximum(h2 + t2_ref[...], 0.0).reshape(TB, L2, C2)

    # ---- Conv1d(256 -> 128, k=3) as one im2col bf16 MXU matmul ------------------
    a3 = jnp.concatenate([h2[:, k:k + L3, :] for k in range(K3)], axis=-1)  # (TB, L3, K3*C2)
    a3 = a3.reshape(TB * L3, K3 * C2).astype(jnp.bfloat16)
    h3 = jnp.dot(a3, w3_ref[...], preferred_element_type=jnp.float32)       # (TB*L3, C3) f32
    h3 = jnp.maximum(h3 + t3_ref[...], 0.0)

    # ---- GAP fused into Linear(128 -> out_dim): mean_t(h3) @ wl == mean_t(h3 @ wl)
    y = jnp.dot(h3.astype(jnp.bfloat16), wl_ref[...],
                preferred_element_type=jnp.float32)                          # (TB*L3, out_dim)
    y = jnp.mean(y.reshape(TB, L3, out_dim), axis=1)                         # (TB, out_dim)
    out_ref[...] = y + bl_ref[...]


# --------------------------------------------------------------------------- wrapper
def _vmem_limit_bytes(TB, L, out_dim):
    """Rough per-grid-step working-set estimate, capped at v7x physical VMEM."""
    L1 = L - (K1 - 1)
    L2 = L1 - (K2 - 1)
    L3 = L2 - (K3 - 1)
    act = 4 * TB * (2 * L + L1 * C1 + 2 * L2 * K2 * C1 + L2 * C2
                    + 2 * L3 * K3 * C2 + L3 * C3 + L3 * out_dim)
    w = (4 * K1 * C1 + 2 * (K2 * C1 * C2 + K3 * C2 * C3 + C3 * out_dim)
         + 4 * (C1 + C2 + C3 + 2 * out_dim))
    est = 2 * act + 2 * w + (4 << 20)          # double-buffering + headroom
    return int(min(max(est, 16 << 20), 64 << 20))


def fcn_forward(x, params):
    """x: (B, 1, L) float32 (PyTorch NCL). params: see prepare_params(). Returns (B, out_dim)."""
    B, cin, L = x.shape
    assert cin == 1, "FCN expects a single input channel"
    assert L >= K1 + K2 + K3 - 2, "input too short for the three valid convs"
    x2 = x[:, 0, :].astype(jnp.float32)        # (B, L)
    out_dim = params["wl"].shape[-1]

    L1 = L - (K1 - 1)
    L2 = L1 - (K2 - 1)
    L3 = L2 - (K3 - 1)

    # Batch tile: <= 8 keeps the per-tile activation working set small enough for
    # v7x's 64 MiB VMEM; also satisfies the (8, 128) block constraint (TB == B or TB == 8).
    TB = B if B <= 8 else 8
    assert B % TB == 0, "TODO(synk): pad ragged batch sizes"
    grid = (B // TB,)

    args = (x2,
            params["w1"], params["t1"],
            params["w2"], params["t2"],
            params["w3"], params["t3"],
            params["wl"], params["bl"])

    def resident(shape):
        # Weights / shifts: same block for every grid step -> stay VMEM-resident.
        return pl.BlockSpec(shape, lambda i: (0,) * len(shape))

    in_specs = [
        pl.BlockSpec((TB, L), lambda i: (i, 0)),       # x tile
        resident((K1, C1)), resident((1, C1)),         # conv1 weight / shift
        resident((K2 * C1, C2)), resident((1, C2)),    # conv2 im2col weight / shift
        resident((K3 * C2, C3)), resident((1, C3)),    # conv3 im2col weight / shift
        resident((C3, out_dim)), resident((1, out_dim)),  # linear weight / bias
    ]
    out_specs = pl.BlockSpec((TB, out_dim), lambda i: (i, 0))

    flops = 2 * B * (L1 * K1 * C1 + L2 * K2 * C1 * C2 + L3 * K3 * C2 * C3
                     + L3 * C3 * out_dim)
    bytes_accessed = (x2.size * 4
                      + sum(int(v.size) * v.dtype.itemsize for v in args[1:])
                      + B * out_dim * 4)

    return pl.pallas_call(
        fcn_kernel,
        out_shape=jax.ShapeDtypeStruct((B, out_dim), jnp.float32),
        grid=grid,
        in_specs=in_specs,
        out_specs=out_specs,
        compiler_params=pltpu.CompilerParams(
            dimension_semantics=("parallel",),
            vmem_limit_bytes=_vmem_limit_bytes(TB, L, out_dim)),
        cost_estimate=pl.CostEstimate(flops=flops, transcendentals=0,
                                      bytes_accessed=bytes_accessed),
    )(*args)


# --------------------------------------------------------------------------- params
def init_params(key, out_dim=1):
    """Raw model parameters (PyTorch-equivalent, conv weights stored as (K, Cin, Cout))."""
    k1, k2, k3, kl = jax.random.split(key, 4)

    def conv_bn(k0, kk, cin, cout):
        kw, kb, kg, kbt, km, kv = jax.random.split(k0, 6)
        return dict(
            w=0.1 * jax.random.normal(kw, (kk, cin, cout), jnp.float32),
            b=0.1 * jax.random.normal(kb, (cout,), jnp.float32),
            gamma=1.0 + 0.1 * jax.random.normal(kg, (cout,), jnp.float32),
            beta=0.1 * jax.random.normal(kbt, (cout,), jnp.float32),
            mean=0.1 * jax.random.normal(km, (cout,), jnp.float32),
            var=0.5 + jax.random.uniform(kv, (cout,), jnp.float32),
        )

    kw, kb = jax.random.split(kl)
    return dict(
        conv1=conv_bn(k1, K1, 1, C1),
        conv2=conv_bn(k2, K2, C1, C2),
        conv3=conv_bn(k3, K3, C2, C3),
        linear=dict(w=0.1 * jax.random.normal(kw, (C3, out_dim), jnp.float32),
                    b=0.1 * jax.random.normal(kb, (out_dim,), jnp.float32)),
    )


def prepare_params(raw):
    """Fold eval-mode BN (+ conv bias) into weights/shifts, flatten im2col weights, cast to bf16."""
    def fold(layer):
        scale = layer["gamma"] / jnp.sqrt(layer["var"] + BN_EPS)
        shift = layer["beta"] + scale * (layer["b"] - layer["mean"])
        return scale, shift

    s1, t1 = fold(raw["conv1"])
    s2, t2 = fold(raw["conv2"])
    s3, t3 = fold(raw["conv3"])

    w1 = (raw["conv1"]["w"][:, 0, :] * s1[None, :]).astype(jnp.float32)               # (K1, C1)
    w2 = (raw["conv2"]["w"] * s2[None, None, :]).reshape(K2 * C1, C2).astype(jnp.bfloat16)
    w3 = (raw["conv3"]["w"] * s3[None, None, :]).reshape(K3 * C2, C3).astype(jnp.bfloat16)

    return dict(w1=w1, t1=t1.reshape(1, C1).astype(jnp.float32),
                w2=w2, t2=t2.reshape(1, C2).astype(jnp.float32),
                w3=w3, t3=t3.reshape(1, C3).astype(jnp.float32),
                wl=raw["linear"]["w"].astype(jnp.bfloat16),
                bl=raw["linear"]["b"].reshape(1, -1).astype(jnp.float32))


# --------------------------------------------------------------------------- reference
def reference_forward(x, raw):
    """Pure-JAX f32 reference with PyTorch eval-mode semantics (independent of the folding)."""
    h = x.astype(jnp.float32)                           # (B, Cin, L)

    def conv_bn_relu(h, layer):
        w, b = layer["w"], layer["b"]                   # (K, Cin, Cout), (Cout,)
        K = w.shape[0]
        Lout = h.shape[-1] - (K - 1)
        out = jnp.zeros((h.shape[0], Lout, w.shape[2]), jnp.float32)
        for k in range(K):
            out = out + jnp.einsum("bcl,cd->bld", h[:, :, k:k + Lout], w[k])
        out = out + b[None, None, :]
        out = ((out - layer["mean"]) / jnp.sqrt(layer["var"] + BN_EPS)
               * layer["gamma"] + layer["beta"])
        out = jnp.maximum(out, 0.0)
        return jnp.transpose(out, (0, 2, 1))            # back to (B, Cout, Lout)

    h = conv_bn_relu(h, raw["conv1"])
    h = conv_bn_relu(h, raw["conv2"])
    h = conv_bn_relu(h, raw["conv3"])
    g = jnp.mean(h, axis=-1)                            # (B, 128)
    return g @ raw["linear"]["w"] + raw["linear"]["b"][None, :]


# --------------------------------------------------------------------------- main
if __name__ == "__main__":
    key = jax.random.PRNGKey(0)
    kx, kp = jax.random.split(key)

    B, L, out_dim = 2, 32, 1
    x = jax.random.normal(kx, (B, 1, L), jnp.float32)   # PyTorch-style (B, Cin=1, L)
    raw = init_params(kp, out_dim=out_dim)
    params = prepare_params(raw)

    out = jax.block_until_ready(fcn_forward(x, params))
    ref = jax.block_until_ready(reference_forward(x, raw))

    assert out.shape == (B, out_dim), out.shape
    assert bool(jnp.all(jnp.isfinite(out)))
    # bf16 MXU operands vs f32 reference -> relaxed tolerance.
    assert jnp.allclose(out, ref, atol=5e-2, rtol=5e-2), (out, ref)
    print("KERNEL_OK")
</pallas_src>

<mosaic_0001>
module attributes {stable_mosaic.version = 11 : i64} {
  func.func @fcn_kernel(%arg0: i32, %arg1: memref<2x32xf32, #tpu.memory_space<vmem>>, %arg2: memref<8x128xf32, #tpu.memory_space<vmem>>, %arg3: memref<1x128xf32, #tpu.memory_space<vmem>>, %arg4: memref<640x256xbf16, #tpu.memory_space<vmem>>, %arg5: memref<1x256xf32, #tpu.memory_space<vmem>>, %arg6: memref<768x128xbf16, #tpu.memory_space<vmem>>, %arg7: memref<1x128xf32, #tpu.memory_space<vmem>>, %arg8: memref<128x1xbf16, #tpu.memory_space<vmem>>, %arg9: memref<1x1xf32, #tpu.memory_space<vmem>>, %arg10: memref<2x1xf32, #tpu.memory_space<vmem>>) attributes {dimension_semantics = [#tpu.dimension_semantics<parallel>], iteration_bounds = array<i64: 1>, scalar_prefetch = 0 : i64, scratch_operands = 0 : i64, tpu.core_type = #tpu.core_type<tc>, window_params = [{transform_indices = @transform_0, window_bounds = array<i64: 2, 32>}, {pipeline_mode = #tpu.pipeline_mode<synchronous>, transform_indices = @transform_1, window_bounds = array<i64: 8, 128>}, {pipeline_mode = #tpu.pipeline_mode<synchronous>, transform_indices = @transform_2, window_bounds = array<i64: 1, 128>}, {pipeline_mode = #tpu.pipeline_mode<synchronous>, transform_indices = @transform_3, window_bounds = array<i64: 640, 256>}, {pipeline_mode = #tpu.pipeline_mode<synchronous>, transform_indices = @transform_4, window_bounds = array<i64: 1, 256>}, {pipeline_mode = #tpu.pipeline_mode<synchronous>, transform_indices = @transform_5, window_bounds = array<i64: 768, 128>}, {pipeline_mode = #tpu.pipeline_mode<synchronous>, transform_indices = @transform_6, window_bounds = array<i64: 1, 128>}, {pipeline_mode = #tpu.pipeline_mode<synchronous>, transform_indices = @transform_7, window_bounds = array<i64: 128, 1>}, {pipeline_mode = #tpu.pipeline_mode<synchronous>, transform_indices = @transform_8, window_bounds = array<i64: 1, 1>}, {transform_indices = @transform_9, window_bounds = array<i64: 2, 1>}]} {
    %c0 = arith.constant 0 : index
    %c0_0 = arith.constant 0 : index
    %0 = vector.load %arg1[%c0, %c0_0] : memref<2x32xf32, #tpu.memory_space<vmem>>, vector<2x32xf32>
    %cst = arith.constant 0.000000e+00 : f32
    %1 = vector.broadcast %cst : f32 to vector<2x25x128xf32>
    %2 = vector.extract_strided_slice %0 {offsets = [0, 0], sizes = [2, 25], strides = [1, 1]} : vector<2x32xf32> to vector<2x25xf32>
    %3 = vector.shape_cast %2 : vector<2x25xf32> to vector<2x25x1xf32>
    %c0_1 = arith.constant 0 : index
    %c0_2 = arith.constant 0 : index
    %4 = vector.load %arg2[%c0_1, %c0_2] : memref<8x128xf32, #tpu.memory_space<vmem>>, vector<1x128xf32>
    %5 = vector.shape_cast %4 : vector<1x128xf32> to vector<128xf32>
    %6 = vector.shape_cast %5 : vector<128xf32> to vector<1x1x128xf32>
    %7 = vector.broadcast %3 : vector<2x25x1xf32> to vector<2x25x128xf32>
    %8 = vector.broadcast %6 : vector<1x1x128xf32> to vector<2x25x128xf32>
    %9 = arith.mulf %7, %8 : vector<2x25x128xf32>
    %10 = arith.addf %1, %9 : vector<2x25x128xf32>
    %11 = vector.extract_strided_slice %0 {offsets = [0, 1], sizes = [2, 25], strides = [1, 1]} : vector<2x32xf32> to vector<2x25xf32>
    %12 = vector.shape_cast %11 : vector<2x25xf32> to vector<2x25x1xf32>
    %c1 = arith.constant 1 : index
    %c0_3 = arith.constant 0 : index
    %13 = vector.load %arg2[%c1, %c0_3] : memref<8x128xf32, #tpu.memory_space<vmem>>, vector<1x128xf32>
    %14 = vector.shape_cast %13 : vector<1x128xf32> to vector<128xf32>
    %15 = vector.shape_cast %14 : vector<128xf32> to vector<1x1x128xf32>
    %16 = vector.broadcast %12 : vector<2x25x1xf32> to vector<2x25x128xf32>
    %17 = vector.broadcast %15 : vector<1x1x128xf32> to vector<2x25x128xf32>
    %18 = arith.mulf %16, %17 : vector<2x25x128xf32>
    %19 = arith.addf %10, %18 : vector<2x25x128xf32>
    %20 = vector.extract_strided_slice %0 {offsets = [0, 2], sizes = [2, 25], strides = [1, 1]} : vector<2x32xf32> to vector<2x25xf32>
    %21 = vector.shape_cast %20 : vector<2x25xf32> to vector<2x25x1xf32>
    %c2 = arith.constant 2 : index
    %c0_4 = arith.constant 0 : index
    %22 = vector.load %arg2[%c2, %c0_4] : memref<8x128xf32, #tpu.memory_space<vmem>>, vector<1x128xf32>
    %23 = vector.shape_cast %22 : vector<1x128xf32> to vector<128xf32>
    %24 = vector.shape_cast %23 : vector<128xf32> to vector<1x1x128xf32>
    %25 = vector.broadcast %21 : vector<2x25x1xf32> to vector<2x25x128xf32>
    %26 = vector.broadcast %24 : vector<1x1x128xf32> to vector<2x25x128xf32>
    %27 = arith.mulf %25, %26 : vector<2x25x128xf32>
    %28 = arith.addf %19, %27 : vector<2x25x128xf32>
    %29 = vector.extract_strided_slice %0 {offsets = [0, 3], sizes = [2, 25], strides = [1, 1]} : vector<2x32xf32> to vector<2x25xf32>
    %30 = vector.shape_cast %29 : vector<2x25xf32> to vector<2x25x1xf32>
    %c3 = arith.constant 3 : index
    %c0_5 = arith.constant 0 : index
    %31 = vector.load %arg2[%c3, %c0_5] : memref<8x128xf32, #tpu.memory_space<vmem>>, vector<1x128xf32>
    %32 = vector.shape_cast %31 : vector<1x128xf32> to vector<128xf32>
    %33 = vector.shape_cast %32 : vector<128xf32> to vector<1x1x128xf32>
    %34 = vector.broadcast %30 : vector<2x25x1xf32> to vector<2x25x128xf32>
    %35 = vector.broadcast %33 : vector<1x1x128xf32> to vector<2x25x128xf32>
    %36 = arith.mulf %34, %35 : vector<2x25x128xf32>
    %37 = arith.addf %28, %36 : vector<2x25x128xf32>
    %38 = vector.extract_strided_slice %0 {offsets = [0, 4], sizes = [2, 25], strides = [1, 1]} : vector<2x32xf32> to vector<2x25xf32>
    %39 = vector.shape_cast %38 : vector<2x25xf32> to vector<2x25x1xf32>
    %c4 = arith.constant 4 : index
    %c0_6 = arith.constant 0 : index
    %40 = vector.load %arg2[%c4, %c0_6] : memref<8x128xf32, #tpu.memory_space<vmem>>, vector<1x128xf32>
    %41 = vector.shape_cast %40 : vector<1x128xf32> to vector<128xf32>
    %42 = vector.shape_cast %41 : vector<128xf32> to vector<1x1x128xf32>
    %43 = vector.broadcast %39 : vector<2x25x1xf32> to vector<2x25x128xf32>
    %44 = vector.broadcast %42 : vector<1x1x128xf32> to vector<2x25x128xf32>
    %45 = arith.mulf %43, %44 : vector<2x25x128xf32>
    %46 = arith.addf %37, %45 : vector<2x25x128xf32>
    %47 = vector.extract_strided_slice %0 {offsets = [0, 5], sizes = [2, 25], strides = [1, 1]} : vector<2x32xf32> to vector<2x25xf32>
    %48 = vector.shape_cast %47 : vector<2x25xf32> to vector<2x25x1xf32>
    %c5 = arith.constant 5 : index
    %c0_7 = arith.constant 0 : index
    %49 = vector.load %arg2[%c5, %c0_7] : memref<8x128xf32, #tpu.memory_space<vmem>>, vector<1x128xf32>
    %50 = vector.shape_cast %49 : vector<1x128xf32> to vector<128xf32>
    %51 = vector.shape_cast %50 : vector<128xf32> to vector<1x1x128xf32>
    %52 = vector.broadcast %48 : vector<2x25x1xf32> to vector<2x25x128xf32>
    %53 = vector.broadcast %51 : vector<1x1x128xf32> to vector<2x25x128xf32>
    %54 = arith.mulf %52, %53 : vector<2x25x128xf32>
    %55 = arith.addf %46, %54 : vector<2x25x128xf32>
    %56 = vector.extract_strided_slice %0 {offsets = [0, 6], sizes = [2, 25], strides = [1, 1]} : vector<2x32xf32> to vector<2x25xf32>
    %57 = vector.shape_cast %56 : vector<2x25xf32> to vector<2x25x1xf32>
    %c6 = arith.constant 6 : index
    %c0_8 = arith.constant 0 : index
    %58 = vector.load %arg2[%c6, %c0_8] : memref<8x128xf32, #tpu.memory_space<vmem>>, vector<1x128xf32>
    %59 = vector.shape_cast %58 : vector<1x128xf32> to vector<128xf32>
    %60 = vector.shape_cast %59 : vector<128xf32> to vector<1x1x128xf32>
    %61 = vector.broadcast %57 : vector<2x25x1xf32> to vector<2x25x128xf32>
    %62 = vector.broadcast %60 : vector<1x1x128xf32> to vector<2x25x128xf32>
    %63 = arith.mulf %61, %62 : vector<2x25x128xf32>
    %64 = arith.addf %55, %63 : vector<2x25x128xf32>
    %65 = vector.extract_strided_slice %0 {offsets = [0, 7], sizes = [2, 25], strides = [1, 1]} : vector<2x32xf32> to vector<2x25xf32>
    %66 = vector.shape_cast %65 : vector<2x25xf32> to vector<2x25x1xf32>
    %c7 = arith.constant 7 : index
    %c0_9 = arith.constant 0 : index
    %67 = vector.load %arg2[%c7, %c0_9] : memref<8x128xf32, #tpu.memory_space<vmem>>, vector<1x128xf32>
    %68 = vector.shape_cast %67 : vector<1x128xf32> to vector<128xf32>
    %69 = vector.shape_cast %68 : vector<128xf32> to vector<1x1x128xf32>
    %70 = vector.broadcast %66 : vector<2x25x1xf32> to vector<2x25x128xf32>
    %71 = vector.broadcast %69 : vector<1x1x128xf32> to vector<2x25x128xf32>
    %72 = arith.mulf %70, %71 : vector<2x25x128xf32>
    %73 = arith.addf %64, %72 : vector<2x25x128xf32>
    %c0_10 = arith.constant 0 : index
    %c0_11 = arith.constant 0 : index
    %74 = vector.load %arg3[%c0_10, %c0_11] : memref<1x128xf32, #tpu.memory_space<vmem>>, vector<1x128xf32>
    %75 = vector.shape_cast %74 : vector<1x128xf32> to vector<1x1x128xf32>
    %76 = vector.broadcast %75 : vector<1x1x128xf32> to vector<2x25x128xf32>
    %77 = arith.addf %73, %76 : vector<2x25x128xf32>
    %cst_12 = arith.constant 0.000000e+00 : f32
    %78 = vector.broadcast %cst_12 : f32 to vector<2x25x128xf32>
    %79 = arith.maximumf %77, %78 : vector<2x25x128xf32>
    %80 = vector.extract_strided_slice %79 {offsets = [0, 0, 0], sizes = [2, 21, 128], strides = [1, 1, 1]} : vector<2x25x128xf32> to vector<2x21x128xf32>
    %81 = vector.extract_strided_slice %79 {offsets = [0, 1, 0], sizes = [2, 21, 128], strides = [1, 1, 1]} : vector<2x25x128xf32> to vector<2x21x128xf32>
    %82 = vector.extract_strided_slice %79 {offsets = [0, 2, 0], sizes = [2, 21, 128], strides = [1, 1, 1]} : vector<2x25x128xf32> to vector<2x21x128xf32>
    %83 = vector.extract_strided_slice %79 {offsets = [0, 3, 0], sizes = [2, 21, 128], strides = [1, 1, 1]} : vector<2x25x128xf32> to vector<2x21x128xf32>
    %84 = vector.extract_strided_slice %79 {offsets = [0, 4, 0], sizes = [2, 21, 128], strides = [1, 1, 1]} : vector<2x25x128xf32> to vector<2x21x128xf32>
    %85 = tpu.concatenate %80, %81, %82, %83, %84 in 2 : vector<2x21x128xf32>, vector<2x21x128xf32>, vector<2x21x128xf32>, vector<2x21x128xf32>, vector<2x21x128xf32> -> vector<2x21x640xf32>
    %86 = vector.shape_cast %85 : vector<2x21x640xf32> to vector<42x640xf32>
    %87 = arith.truncf %86 : vector<42x640xf32> to vector<42x640xbf16>
    %c0_13 = arith.constant 0 : index
    %c0_14 = arith.constant 0 : index
    %88 = vector.load %arg4[%c0_13, %c0_14] : memref<640x256xbf16, #tpu.memory_space<vmem>>, vector<640x256xbf16>
    %cst_15 = arith.constant dense<0.000000e+00> : vector<42x256xf32>
    %89 = tpu.matmul %87, %88, %cst_15 {dimension_numbers = #tpu.dot_dimension_numbers<[1], [0], [0], [1], [0, 0, 1, 1], [], []>} : vector<42x640xbf16>, vector<640x256xbf16>, vector<42x256xf32> -> vector<42x256xf32>
    %c0_16 = arith.constant 0 : index
    %c0_17 = arith.constant 0 : index
    %90 = vector.load %arg5[%c0_16, %c0_17] : memref<1x256xf32, #tpu.memory_space<vmem>>, vector<1x256xf32>
    %91 = vector.broadcast %90 : vector<1x256xf32> to vector<42x256xf32>
    %92 = arith.addf %89, %91 : vector<42x256xf32>
    %cst_18 = arith.constant 0.000000e+00 : f32
    %93 = vector.broadcast %cst_18 : f32 to vector<42x256xf32>
    %94 = arith.maximumf %92, %93 : vector<42x256xf32>
    %95 = vector.shape_cast %94 : vector<42x256xf32> to vector<2x21x256xf32>
    %96 = vector.extract_strided_slice %95 {offsets = [0, 0, 0], sizes = [2, 19, 256], strides = [1, 1, 1]} : vector<2x21x256xf32> to vector<2x19x256xf32>
    %97 = vector.extract_strided_slice %95 {offsets = [0, 1, 0], sizes = [2, 19, 256], strides = [1, 1, 1]} : vector<2x21x256xf32> to vector<2x19x256xf32>
    %98 = vector.extract_strided_slice %95 {offsets = [0, 2, 0], sizes = [2, 19, 256], strides = [1, 1, 1]} : vector<2x21x256xf32> to vector<2x19x256xf32>
    %99 = tpu.concatenate %96, %97, %98 in 2 : vector<2x19x256xf32>, vector<2x19x256xf32>, vector<2x19x256xf32> -> vector<2x19x768xf32>
    %100 = vector.shape_cast %99 : vector<2x19x768xf32> to vector<38x768xf32>
    %101 = arith.truncf %100 : vector<38x768xf32> to vector<38x768xbf16>
    %c0_19 = arith.constant 0 : index
    %c0_20 = arith.constant 0 : index
    %102 = vector.load %arg6[%c0_19, %c0_20] : memref<768x128xbf16, #tpu.memory_space<vmem>>, vector<768x128xbf16>
    %cst_21 = arith.constant dense<0.000000e+00> : vector<38x128xf32>
    %103 = tpu.matmul %101, %102, %cst_21 {dimension_numbers = #tpu.dot_dimension_numbers<[1], [0], [0], [1], [0, 0, 1, 1], [], []>} : vector<38x768xbf16>, vector<768x128xbf16>, vector<38x128xf32> -> vector<38x128xf32>
    %c0_22 = arith.constant 0 : index
    %c0_23 = arith.constant 0 : index
    %104 = vector.load %arg7[%c0_22, %c0_23] : memref<1x128xf32, #tpu.memory_space<vmem>>, vector<1x128xf32>
    %105 = vector.broadcast %104 : vector<1x128xf32> to vector<38x128xf32>
    %106 = arith.addf %103, %105 : vector<38x128xf32>
    %cst_24 = arith.constant 0.000000e+00 : f32
    %107 = vector.broadcast %cst_24 : f32 to vector<38x128xf32>
    %108 = arith.maximumf %106, %107 : vector<38x128xf32>
    %109 = arith.truncf %108 : vector<38x128xf32> to vector<38x128xbf16>
    %c0_25 = arith.constant 0 : index
    %c0_26 = arith.constant 0 : index
    %110 = vector.load %arg8[%c0_25, %c0_26] : memref<128x1xbf16, #tpu.memory_space<vmem>>, vector<128x1xbf16>
    %cst_27 = arith.constant dense<0.000000e+00> : vector<38x1xf32>
    %111 = tpu.matmul %109, %110, %cst_27 {dimension_numbers = #tpu.dot_dimension_numbers<[1], [0], [0], [1], [0, 0, 1, 1], [], []>} : vector<38x128xbf16>, vector<128x1xbf16>, vector<38x1xf32> -> vector<38x1xf32>
    %112 = vector.shape_cast %111 : vector<38x1xf32> to vector<2x19x1xf32>
    %cst_28 = arith.constant dense<0.000000e+00> : vector<2x1xf32>
    %113 = vector.multi_reduction <add>, %112, %cst_28 [1] : vector<2x19x1xf32> to vector<2x1xf32>
    %cst_29 = arith.constant 1.900000e+01 : f32
    %114 = vector.broadcast %cst_29 : f32 to vector<2x1xf32>
    %115 = arith.divf %113, %114 : vector<2x1xf32>
    %c0_30 = arith.constant 0 : index
    %c0_31 = arith.constant 0 : index
    %116 = vector.load %arg9[%c0_30, %c0_31] : memref<1x1xf32, #tpu.memory_space<vmem>>, vector<1x1xf32>
    %117 = vector.broadcast %116 : vector<1x1xf32> to vector<2x1xf32>
    %118 = arith.addf %115, %117 : vector<2x1xf32>
    %c0_32 = arith.constant 0 : index
    %c0_33 = arith.constant 0 : index
    %119 = vector.load %arg10[%c0_32, %c0_33] : memref<2x1xf32, #tpu.memory_space<vmem>>, vector<2x1xf32>
    tpu.vector_store %arg10[%c0_32, %c0_33], %118 {strides = array<i32>} : memref<2x1xf32, #tpu.memory_space<vmem>>, vector<2x1xf32>,
    return
  }
  func.func @transform_0(%arg0: i32) -> (i32, i32) {
    %c0_i32 = arith.constant 0 : i32
    %c0_i32_0 = arith.constant 0 : i32
    return %arg0, %c0_i32 : i32, i32
  }
  func.func @transform_1(%arg0: i32) -> (i32, i32) {
    %c0_i32 = arith.constant 0 : i32
    %c0_i32_0 = arith.constant 0 : i32
    %c0_i32_1 = arith.constant 0 : i32
    return %c0_i32, %c0_i32_0 : i32, i32
  }
  func.func @transform_2(%arg0: i32) -> (i32, i32) {
    %c0_i32 = arith.constant 0 : i32
    %c0_i32_0 = arith.constant 0 : i32
    %c0_i32_1 = arith.constant 0 : i32
    return %c0_i32, %c0_i32_0 : i32, i32
  }
  func.func @transform_3(%arg0: i32) -> (i32, i32) {
    %c0_i32 = arith.constant 0 : i32
    %c0_i32_0 = arith.constant 0 : i32
    %c0_i32_1 = arith.constant 0 : i32
    return %c0_i32, %c0_i32_0 : i32, i32
  }
  func.func @transform_4(%arg0: i32) -> (i32, i32) {
    %c0_i32 = arith.constant 0 : i32
    %c0_i32_0 = arith.constant 0 : i32
    %c0_i32_1 = arith.constant 0 : i32
    return %c0_i32, %c0_i32_0 : i32, i32
  }
  func.func @transform_5(%arg0: i32) -> (i32, i32) {
    %c0_i32 = arith.constant 0 : i32
    %c0_i32_0 = arith.constant 0 : i32
    %c0_i32_1 = arith.constant 0 : i32
    return %c0_i32, %c0_i32_0 : i32, i32
  }
  func.func @transform_6(%arg0: i32) -> (i32, i32) {
    %c0_i32 = arith.constant 0 : i32
    %c0_i32_0 = arith.constant 0 : i32
    %c0_i32_1 = arith.constant 0 : i32
    return %c0_i32, %c0_i32_0 : i32, i32
  }
  func.func @transform_7(%arg0: i32) -> (i32, i32) {
    %c0_i32 = arith.constant 0 : i32
    %c0_i32_0 = arith.constant 0 : i32
    %c0_i32_1 = arith.constant 0 : i32
    return %c0_i32, %c0_i32_0 : i32, i32
  }
  func.func @transform_8(%arg0: i32) -> (i32, i32) {
    %c0_i32 = arith.constant 0 : i32
    %c0_i32_0 = arith.constant 0 : i32
    %c0_i32_1 = arith.constant 0 : i32
    return %c0_i32, %c0_i32_0 : i32, i32
  }
  func.func @transform_9(%arg0: i32) -> (i32, i32) {
    %c0_i32 = arith.constant 0 : i32
    %c0_i32_0 = arith.constant 0 : i32
    return %arg0, %c0_i32 : i32, i32
  }
}

</mosaic_0001>

<bundles_post_ra>
// kernel: tpu_custom_call.1
= control target key start
LH: loop header
LB: loop body
LE: loop exit
PB: predicated region body
PF: predicated region fallthrough
CT: control target
= control target key end

     0   :  { %s8650_s0 = inlined_call_operand.vmem [shape: f32[2,32], index: 0, kind: input, shape index: {}]   ;;  %s8651_s1 = inlined_call_operand.vmem [shape: f32[8,128], index: 1, kind: input, shape index: {}]   ;;  %s8652_s2 = inlined_call_operand.vmem [shape: f32[1,128], index: 2, kind: input, shape index: {}]   ;;  %s8653_s3 = inlined_call_operand.hbm [shape: bf16[640,256], index: 3, kind: input, shape index: {}]   ;;  %s8654_s4 = inlined_call_operand.vmem [shape: f32[1,256], index: 4, kind: input, shape index: {}]   ;;  %s8655_s5 = inlined_call_operand.hbm [shape: bf16[768,128], index: 5, kind: input, shape index: {}]   ;;  %s8656_s6 = inlined_call_operand.vmem [shape: f32[1,128], index: 6, kind: input, shape index: {}]   ;;  %s8657_s7 = inlined_call_operand.vmem [shape: bf16[128,1], index: 7, kind: input, shape index: {}]   ;;  %s8658_s8 = inlined_call_operand.<no memory space> [shape: f32[1,1], index: 8, kind: input, shape index: {}]   ;;  %s8659_s9 = inlined_call_operand.vmem [shape: f32[2,1], index: 9, kind: output, shape index: {}]  }
   0x1   :  { %v14_v0 = vstv %s8658_s8 }
   0x2   :  { %15 = vst [vmem:[#allocation2] sm:$0x1] %v14_v0 }
   0x3   :  { %16 = vsyncpa [#allocation4], 0 }
   0x4   :  { %17 = vsyncpa [#allocation6], 0  ;;  %s6932_s11 = smov [#allocation3]   ;;  %s6884_s15 = scalar_lea.hbm %s8653_s3, 10240 }
   0x5   :  { %s29_s12 = sshll.u32 %s6932_s11, 4  ;;  %p6885_p0 = scmp.ne.s32.totalorder %s8653_s3, %s6884_s15  ;;  %s30_s12 = int_to_ptr.vmem [resolvable:$true] %s29_s12 }
   0x6   :  { %p6888_p1 = scmp.lt.u32.totalorder %s6884_s15, %s8653_s3 }
   0x8   :  { %p6890_p2 = pnand %p6888_p1, %p6885_p0 }
   0xa   :  { %6893 = shalt.err (!%p6890_p2)
}
   0xb   :  { %s6894_s8 = scalar_lea.vmem %s30_s12, 10240  ;;  %p6899_p4 = scmp.lt.s32.totalorder %s30_s12, %s30_s12 }
   0xc   :  { %p6895_p3 = scmp.ne.s32.totalorder %s30_s12, %s6894_s8  ;;  %p6900_p5 = scmp.lt.s32.totalorder %s6894_s8, %s6894_s8 }
   0xe   :  { %p6901_p6 = por %p6900_p5, %p6899_p4 }
  0x10   :  { %p6902_p7 = pnand %p6901_p6, %p6895_p3 }
  0x12   :  { %6905 = shalt.err (!%p6902_p7)
}
  0x13   :  { %s6933_s20 = smov 128   ;;  %s6934_s21 = smov 8  }
  0x14   :  { %35 = dma.hbm_to_vmem [thread:$0]  %s8653_s3, 10240, %s30_s12, [#allocation4], %s6933_s20, %s6933_s20, %s6934_s21  }
  0x15   :  { %s6935_s24 = smov [#allocation5]   ;;  %s6906_s28 = scalar_lea.hbm %s8655_s5, 6144 }
  0x16   :  { %s43_s25 = sshll.u32 %s6935_s24, 4  ;;  %p6907_p8 = scmp.ne.s32.totalorder %s8655_s5, %s6906_s28  ;;  %s44_s25 = int_to_ptr.vmem [resolvable:$true] %s43_s25 }
  0x17   :  { %p6910_p9 = scmp.lt.u32.totalorder %s6906_s28, %s8655_s5 }
  0x19   :  { %p6912_p10 = pnand %p6910_p9, %p6907_p8 }
  0x1b   :  { %6915 = shalt.err (!%p6912_p10)
}
  0x1c   :  { %s6916_s13 = scalar_lea.vmem %s44_s25, 6144  ;;  %p6921_p12 = scmp.lt.s32.totalorder %s44_s25, %s44_s25 }
  0x1d   :  { %p6917_p11 = scmp.ne.s32.totalorder %s44_s25, %s6916_s13  ;;  %p6922_p13 = scmp.lt.s32.totalorder %s6916_s13, %s6916_s13 }
  0x1f   :  { %p6923_p0 = por %p6922_p13, %p6921_p12 }
  0x21   :  { %p6924_p1 = pnand %p6923_p0, %p6917_p11 }
  0x23   :  { %6927 = shalt.err (!%p6924_p1)
}
  0x24   :  { %s6936_s3 = smov 64   ;;  %s6937_s12 = smov 4  }
  0x25   :  { %49 = dma.hbm_to_vmem [thread:$0]  %s8655_s5, 6144, %s44_s25, [#allocation6], %s6936_s3, %s6936_s3, %s6937_s12  }
  0x26   :  { %6928 = dma.done.wait [#allocation4], 10240  }
  0x27   :  { %6929 = vsyncadd [#allocation4], 4294957056 }
  0x28   :  { %6930 = dma.done.wait [#allocation6], 6144  }
  0x29   :  { %6931 = vsyncadd [#allocation6], 4294961152  ;;  %v64_v1 = vlaneseq  ;;  %v7025_v4 = vld [vmem:[%s8650_s0] sm:$0x3]  ;;  %v6708_v6 = vld [vmem:[#allocation3 + $0x4] ss:$8 sps:$4 sm:$0xff]  }
  0x2a   :  { %v6710_v7 = vld [vmem:[#allocation3] ss:$8 sps:$4 sm:$0xff]   ;;  %2399 = vmatprep.subr.bf16.mxu0 %v6708_v6  ;;  %v6711_v8 = vld [vmem:[#allocation3 + $0x14] ss:$8 sps:$4 sm:$0xff]   ;;  %v6713_v9 = vld [vmem:[#allocation3 + $0x10] ss:$8 sps:$4 sm:$0xff]  }
  0x2b   :  { %v7019_v2 = vshrl.u32 %v64_v1, 7  ;;  %2400 = vmatpush1.bf16.msra.mxu0 %v6710_v7  ;;  %v6714_v10 = vld [vmem:[#allocation3 + $0x24] ss:$8 sps:$4 sm:$0xff]   ;;  %v6716_v11 = vld [vmem:[#allocation3 + $0x20] ss:$8 sps:$4 sm:$0xff]   ;;  %vm523_vm0 = vcmask 1046528  }
  0x2c   :  { %2401 = vmatprep.subr.bf16.mxu0 %v6711_v8  ;;  %v6717_v12 = vld [vmem:[#allocation3 + $0x34] ss:$8 sps:$4 sm:$0xff]   ;;  %v6719_v13 = vld [vmem:[#allocation3 + $0x30] ss:$8 sps:$4 sm:$0xff]   ;;  %v6720_v14 = vld [vmem:[#allocation3 + $0x44] ss:$8 sps:$4 sm:$0xff]  }
  0x2d   :  { %v8661_v3 = vsub.s32 0, %v7019_v2  ;;  %v6722_v15 = vld [vmem:[#allocation3 + $0x40] ss:$8 sps:$4 sm:$0xff]   ;;  %v6723_v16 = vld [vmem:[#allocation3 + $0x54] ss:$8 sps:$4 sm:$0xff]   ;;  %v8660_v22 = vsub.s32 1, %v7019_v2 }
  0x2e   :  { %v6725_v17 = vld [vmem:[#allocation3 + $0x50] ss:$8 sps:$4 sm:$0xff]   ;;  %v6726_v18 = vld [vmem:[#allocation3 + $0x64] ss:$8 sps:$4 sm:$0xff]   ;;  %v6728_v19 = vld [vmem:[#allocation3 + $0x60] ss:$8 sps:$4 sm:$0xff]  }
  0x2f   :  { %v7030_v5 = vrot.slane %v7025_v4, %v8661_v3  ;;  %2402 = vmatpush1.bf16.msra.mxu0 %v6713_v9  ;;  %v6729_v20 = vld [vmem:[#allocation3 + $0x74] ss:$8 sps:$4 sm:$0xff]   ;;  %v6731_v21 = vld [vmem:[#allocation3 + $0x70] ss:$8 sps:$4 sm:$0xff]   ;;  %v6732_v23 = vld [vmem:[#allocation3 + $0x84] ss:$8 sps:$4 sm:$0xff]   ;;  %v86_v30 = vrot.slane %v7025_v4, %v8660_v22 }
  0x30   :  { %2403 = vmatprep.subr.bf16.mxu0 %v6714_v10  ;;  %v6734_v24 = vld [vmem:[#allocation3 + $0x80] ss:$8 sps:$4 sm:$0xff]   ;;  %v6735_v25 = vld [vmem:[#allocation3 + $0x94] ss:$8 sps:$4 sm:$0xff]   ;;  %v6737_v26 = vld [vmem:[#allocation3 + $0x90] ss:$8 sps:$4 sm:$0xff]  }
  0x31   :  { %77 = vbcast.lane.b32.xlu1 %v7030_v5, 272  ;;  %69 = vbcast.lane.b32.xlu0 %v7030_v5, 256  ;;  %v6738_v27 = vld [vmem:[#allocation3 + $0xa4] ss:$8 sps:$4 sm:$0xff]   ;;  %v6740_v28 = vld [vmem:[#allocation3 + $0xa0] ss:$8 sps:$4 sm:$0xff]  }
  0x32   :  { %v6741_v29 = vld [vmem:[#allocation3 + $0xb4] ss:$8 sps:$4 sm:$0xff]   ;;  %v6743_v31 = vld [vmem:[#allocation3 + $0xb0] ss:$8 sps:$4 sm:$0xff]   ;;  %v6744_v32 = vld [vmem:[#allocation3 + $0xc4] ss:$8 sps:$4 sm:$0xff]  }
  0x33   :  { %2404 = vmatpush1.bf16.msra.mxu0 %v6716_v11  ;;  %v6746_v33 = vld [vmem:[#allocation3 + $0xc0] ss:$8 sps:$4 sm:$0xff]   ;;  %v6747_v34 = vld [vmem:[#allocation3 + $0xd4] ss:$8 sps:$4 sm:$0xff]   ;;  %v6749_v35 = vld [vmem:[#allocation3 + $0xd0] ss:$8 sps:$4 sm:$0xff]  }
  0x34   :  { %2405 = vmatprep.subr.bf16.mxu0 %v6717_v12  ;;  %v6750_v36 = vld [vmem:[#allocation3 + $0xe4] ss:$8 sps:$4 sm:$0xff]   ;;  %v6752_v37 = vld [vmem:[#allocation3 + $0xe0] ss:$8 sps:$4 sm:$0xff]   ;;  %v6753_v38 = vld [vmem:[#allocation3 + $0xf4] ss:$8 sps:$4 sm:$0xff]  }
  0x35   :  { %125 = vbcast.lane.b32.xlu1 %v7030_v5, 257  ;;  %73 = vbcast.lane.b32.xlu0 %v7030_v5, 264  ;;  %v6755_v39 = vld [vmem:[#allocation3 + $0xf0] ss:$8 sps:$4 sm:$0xff]   ;;  %v6758_v40 = vld [vmem:[#allocation3 + $0x104] ss:$8 sps:$4 sm:$0xff]  }
  0x36   :  { %v7071_v53 = vld [vmem:[%s8651_s1 + $0x1] ss:$0 sm:$0xff]  ;;  %v7076_v56 = vld [vmem:[%s8651_s1] ss:$0 sm:$0xff]  ;;  %v7081_v57 = vld [vmem:[%s8651_s1 + $0x2] ss:$0 sm:$0xff] }
  0x37   :  { %2406 = vmatpush1.bf16.msra.mxu0 %v6719_v13  ;;  %v7087_v59 = vld [vmem:[%s8651_s1 + $0x3] ss:$0 sm:$0xff]  ;;  %v7096_v4 = vld [vmem:[%s8651_s1 + $0x4] ss:$0 sm:$0xff]  ;;  %v7106_v11 = vld [vmem:[%s8651_s1 + $0x5] ss:$0 sm:$0xff] }
  0x38   :  { %2407 = vmatprep.subr.bf16.mxu0 %v6720_v14  ;;  %vm534_vm1 = vcmask 1045504   ;;  %vm545_vm2 = vcmask 1044480   ;;  %vm558_vm3 = vcmask 1043456   ;;  %vm6941_vm4 = vmmov 0  }
  0x39   :  { %133 = vbcast.lane.b32.xlu1 %v7030_v5, 273  ;;  %129 = vbcast.lane.b32.xlu0 %v7030_v5, 265  ;;  %vm6206_vm5 = vcmask 7168   ;;  %vm6210_vm6 = vcmask 2048   ;;  %vm6245_vm7 = vcmask 1041409   ;;  %vm6248_vm8 = vcmask 1024  }
  0x3b   :  { %2408 = vmatpush1.bf16.msra.mxu0 %v6722_v15 }
  0x3c   :  { %2409 = vmatprep.subr.bf16.mxu0 %v6723_v16 }
  0x3d   :  { %182 = vbcast.lane.b32.xlu1 %v7030_v5, 266  ;;  %178 = vbcast.lane.b32.xlu0 %v7030_v5, 258 }
  0x3f   :  { %2410 = vmatpush1.bf16.msra.mxu0 %v6725_v17 }
  0x40   :  { %2411 = vmatprep.subr.bf16.mxu0 %v6726_v18 }
  0x41   :  { %231 = vbcast.lane.b32.xlu1 %v7030_v5, 259  ;;  %186 = vbcast.lane.b32.xlu0 %v7030_v5, 274 }
  0x43   :  { %2412 = vmatpush1.bf16.msra.mxu0 %v6728_v19 }
  0x44   :  { %2413 = vmatprep.subr.bf16.mxu0 %v6729_v20  ;;  %v7114_v20 = vld [vmem:[%s8651_s1 + $0x6] ss:$0 sm:$0xff] }
  0x45   :  { %239 = vbcast.lane.b32.xlu1 %v7030_v5, 275  ;;  %235 = vbcast.lane.b32.xlu0 %v7030_v5, 267 }
  0x47   :  { %2414 = vmatpush1.bf16.msra.mxu0 %v6731_v21 }
  0x48   :  { %2415 = vmatprep.subr.bf16.mxu0 %v6732_v23 }
  0x49   :  { %288 = vbcast.lane.b32.xlu1 %v7030_v5, 268  ;;  %284 = vbcast.lane.b32.xlu0 %v7030_v5, 260 }
  0x4b   :  { %2416 = vmatpush1.bf16.msra.mxu0 %v6734_v24 }
  0x4c   :  { %2417 = vmatprep.subr.bf16.mxu0 %v6735_v25 }
  0x4d   :  { %337 = vbcast.lane.b32.xlu1 %v7030_v5, 261  ;;  %292 = vbcast.lane.b32.xlu0 %v7030_v5, 276 }
  0x4f   :  { %2418 = vmatpush1.bf16.msra.mxu0 %v6737_v26 }
  0x50   :  { %2419 = vmatprep.subr.bf16.mxu0 %v6738_v27 }
  0x51   :  { %345 = vbcast.lane.b32.xlu1 %v7030_v5, 277  ;;  %341 = vbcast.lane.b32.xlu0 %v7030_v5, 269 }
  0x53   :  { %2420 = vmatpush1.bf16.msra.mxu0 %v6740_v28 }
  0x54   :  { %2421 = vmatprep.subr.bf16.mxu0 %v6741_v29 }
  0x55   :  { %394 = vbcast.lane.b32.xlu1 %v7030_v5, 270  ;;  %390 = vbcast.lane.b32.xlu0 %v7030_v5, 262 }
  0x57   :  { %2422 = vmatpush1.bf16.msra.mxu0 %v6743_v31 }
  0x58   :  { %2423 = vmatprep.subr.bf16.mxu0 %v6744_v32 }
  0x59   :  { %443 = vbcast.lane.b32.xlu1 %v7030_v5, 263  ;;  %398 = vbcast.lane.b32.xlu0 %v7030_v5, 278 }
  0x5b   :  { %2424 = vmatpush1.bf16.msra.mxu0 %v6746_v33 }
  0x5c   :  { %2425 = vmatprep.subr.bf16.mxu0 %v6747_v34  ;;  %v7123_v34 = vld [vmem:[%s8651_s1 + $0x7] ss:$0 sm:$0xff] }
  0x5d   :  { %451 = vbcast.lane.b32.xlu1 %v7030_v5, 279  ;;  %447 = vbcast.lane.b32.xlu0 %v7030_v5, 271 }
  0x5f   :  { %2426 = vmatpush1.bf16.msra.mxu0 %v6749_v35 }
  0x60   :  { %2427 = vmatprep.subr.bf16.mxu0 %v6750_v36 }
  0x61   :  { %92 = vbcast.lane.b32.xlu1 %v86_v30, 264  ;;  %88 = vbcast.lane.b32.xlu0 %v86_v30, 256 }
  0x63   :  { %2428 = vmatpush1.bf16.msra.mxu0 %v6752_v37 }
  0x64   :  { %2429 = vmatprep.subr.bf16.mxu0 %v6753_v38 }
  0x65   :  { %141 = vbcast.lane.b32.xlu1 %v86_v30, 257  ;;  %96 = vbcast.lane.b32.xlu0 %v86_v30, 272 }
  0x67   :  { %2430 = vmatpush1.bf16.msra.mxu0 %v6755_v39 }
  0x68   :  { %2462 = vmatprep.subr.bf16.mxu0 %v6758_v40 }
  0x69   :  { %149 = vbcast.lane.b32.xlu1 %v86_v30, 273  ;;  %145 = vbcast.lane.b32.xlu0 %v86_v30, 265 }
  0x6d   :  { %198 = vbcast.lane.b32.xlu1 %v86_v30, 266  ;;  %194 = vbcast.lane.b32.xlu0 %v86_v30, 258 }
  0x71   :  { %247 = vbcast.lane.b32.xlu1 %v86_v30, 259  ;;  %202 = vbcast.lane.b32.xlu0 %v86_v30, 274 }
  0x75   :  { %255 = vbcast.lane.b32.xlu1 %v86_v30, 275  ;;  %251 = vbcast.lane.b32.xlu0 %v86_v30, 267 }
  0x79   :  { %304 = vbcast.lane.b32.xlu1 %v86_v30, 268  ;;  %300 = vbcast.lane.b32.xlu0 %v86_v30, 260 }
  0x7d   :  { %353 = vbcast.lane.b32.xlu1 %v86_v30, 261  ;;  %308 = vbcast.lane.b32.xlu0 %v86_v30, 276 }
  0x81   :  { %361 = vbcast.lane.b32.xlu1 %v86_v30, 277  ;;  %357 = vbcast.lane.b32.xlu0 %v86_v30, 269 }
  0x85   :  { %410 = vbcast.lane.b32.xlu1 %v86_v30, 270  ;;  %406 = vbcast.lane.b32.xlu0 %v86_v30, 262 }
  0x89   :  { %100 = vbcast.lane.b32.xlu1 %v86_v30, 280  ;;  %414 = vbcast.lane.b32.xlu0 %v86_v30, 278 }
  0x8d   :  { %459 = vbcast.lane.b32.xlu1 %v86_v30, 263  ;;  %153 = vbcast.lane.b32.xlu0 %v86_v30, 281 }
  0x91   :  { %467 = vbcast.lane.b32.xlu1 %v86_v30, 279  ;;  %463 = vbcast.lane.b32.xlu0 %v86_v30, 271 }
  0x95   :  { %206 = vbcast.lane.b32.xlu0 %v86_v30, 282  ;;  %259 = vbcast.lane.b32.xlu1 %v86_v30, 283 }
  0x99   :  { %312 = vbcast.lane.b32.xlu0 %v86_v30, 284  ;;  %365 = vbcast.lane.b32.xlu1 %v86_v30, 285 }
  0x9d   :  { %418 = vbcast.lane.b32.xlu0 %v86_v30, 286  ;;  %471 = vbcast.lane.b32.xlu1 %v86_v30, 287 }
  0xa1   :  { %81 = vbcast.lane.b32.xlu0 %v7030_v5, 280  ;;  %137 = vbcast.lane.b32.xlu1 %v7030_v5, 281 }
  0xa3   :  { %v78_v41 = vpop.permute.xlu1 %77  ;;  %v70_v42 = vpop.permute.xlu0 %69 }
  0xa4   :  { %v107_v62 = vmul.f32 %v7076_v56, %v70_v42  ;;  %v109_v7 = vmul.f32 %v7076_v56, %v78_v41 }
  0xa5   :  { %190 = vbcast.lane.b32.xlu0 %v7030_v5, 282  ;;  %243 = vbcast.lane.b32.xlu1 %v7030_v5, 283 }
  0xa7   :  { %v126_v43 = vpop.permute.xlu1 %125  ;;  %v74_v44 = vpop.permute.xlu0 %73 }
  0xa8   :  { %v160_v58 = vmul.f32 %v7071_v53, %v126_v43  ;;  %v108_v8 = vmul.f32 %v7076_v56, %v74_v44 }
  0xa9   :  { %296 = vbcast.lane.b32.xlu0 %v7030_v5, 284  ;;  %349 = vbcast.lane.b32.xlu1 %v7030_v5, 285 }
  0xab   :  { %v134_v45 = vpop.permute.xlu1 %133  ;;  %v130_v46 = vpop.permute.xlu0 %129 }
  0xac   :  { %v162_v0 = vmul.f32 %v7071_v53, %v134_v45  ;;  %v161_v1 = vmul.f32 %v7071_v53, %v130_v46 }
  0xad   :  { %402 = vbcast.lane.b32.xlu0 %v7030_v5, 286  ;;  %455 = vbcast.lane.b32.xlu1 %v7030_v5, 287  ;;  %v168_v5 = vadd.f32 %v160_v58, %v107_v62 }
  0xae   :  { %v170_v16 = vadd.f32 %v162_v0, %v109_v7  ;;  %v169_v17 = vadd.f32 %v161_v1, %v108_v8  ;;  %v6938_v1 = vmov 1966171168  }
  0xaf   :  { %v183_v47 = vpop.permute.xlu1 %182  ;;  %v179_v48 = vpop.permute.xlu0 %178 }
  0xb0   :  { %v213_v63 = vmul.f32 %v7081_v57, %v179_v48  ;;  %v214_v9 = vmul.f32 %v7081_v57, %v183_v47  ;;  %v7133_v48 = vld [vmem:[%s8652_s2] ss:$0 sm:$0xff] }
  0xb2   :  { %v221_v14 = vadd.f32 %v213_v63, %v168_v5  ;;  %v222_v24 = vadd.f32 %v214_v9, %v169_v17  ;;  %v579_v5 = vunpack.c.l.s4 %v6938_v1 }
  0xb3   :  { %v232_v49 = vpop.permute.xlu1 %231  ;;  %v187_v50 = vpop.permute.xlu0 %186 }
  0xb4   :  { %v266_v6 = vmul.f32 %v7087_v59, %v232_v49  ;;  %v215_v10 = vmul.f32 %v7081_v57, %v187_v50 }
  0xb6   :  { %v274_v21 = vadd.f32 %v266_v6, %v221_v14  ;;  %v223_v25 = vadd.f32 %v215_v10, %v170_v16  ;;  %v580_v14 = vunpack.c.0.s8 %v579_v5 }
  0xb7   :  { %v240_v51 = vpop.permute.xlu1 %239  ;;  %v236_v52 = vpop.permute.xlu0 %235 }
  0xb8   :  { %v268_v18 = vmul.f32 %v7087_v59, %v240_v51  ;;  %v267_v19 = vmul.f32 %v7087_v59, %v236_v52 }
  0xba   :  { %v276_v32 = vadd.f32 %v268_v18, %v223_v25  ;;  %v275_v33 = vadd.f32 %v267_v19, %v222_v24 }
  0xbb   :  { %v289_v54 = vpop.permute.xlu1 %288  ;;  %v285_v55 = vpop.permute.xlu0 %284 }
  0xbc   :  { %v319_v15 = vmul.f32 %v7096_v4, %v285_v55  ;;  %v320_v26 = vmul.f32 %v7096_v4, %v289_v54 }
  0xbe   :  { %v327_v30 = vadd.f32 %v319_v15, %v274_v21  ;;  %v328_v38 = vadd.f32 %v320_v26, %v275_v33 }
  0xbf   :  { %v338_v60 = vpop.permute.xlu1 %337  ;;  %v293_v61 = vpop.permute.xlu0 %292 }
  0xc0   :  { %v372_v23 = vmul.f32 %v7106_v11, %v338_v60  ;;  %v321_v27 = vmul.f32 %v7096_v4, %v293_v61 }
  0xc2   :  { %v380_v35 = vadd.f32 %v372_v23, %v327_v30  ;;  %v329_v39 = vadd.f32 %v321_v27, %v276_v32 }
  0xc3   :  { %v346_v12 = vpop.permute.xlu1 %345  ;;  %v342_v13 = vpop.permute.xlu0 %341 }
  0xc4   :  { %v374_v36 = vmul.f32 %v7106_v11, %v346_v12  ;;  %v373_v37 = vmul.f32 %v7106_v11, %v342_v13 }
  0xc6   :  { %v382_v46 = vadd.f32 %v374_v36, %v329_v39  ;;  %v381_v47 = vadd.f32 %v373_v37, %v328_v38 }
  0xc7   :  { %v395_v28 = vpop.permute.xlu1 %394  ;;  %v391_v29 = vpop.permute.xlu0 %390 }
  0xc8   :  { %v425_v31 = vmul.f32 %v7114_v20, %v391_v29  ;;  %v426_v42 = vmul.f32 %v7114_v20, %v395_v28  ;;  %v7163_v29 = vsub.s32 %v580_v14, %v7019_v2 }
  0xca   :  { %v433_v43 = vadd.f32 %v425_v31, %v380_v35  ;;  %v434_v52 = vadd.f32 %v426_v42, %v381_v47 }
  0xcb   :  { %v444_v40 = vpop.permute.xlu1 %443  ;;  %v399_v41 = vpop.permute.xlu0 %398 }
  0xcc   :  { %v478_v44 = vmul.f32 %v7123_v34, %v444_v40  ;;  %v427_v45 = vmul.f32 %v7114_v20, %v399_v41 }
  0xce   :  { %v486_v49 = vadd.f32 %v478_v44, %v433_v43  ;;  %v435_v54 = vadd.f32 %v427_v45, %v382_v46 }
  0xcf   :  { %v452_v50 = vpop.permute.xlu1 %451  ;;  %v448_v51 = vpop.permute.xlu0 %447 }
  0xd0   :  { %v480_v55 = vmul.f32 %v7123_v34, %v452_v50  ;;  %v479_v58 = vmul.f32 %v7123_v34, %v448_v51  ;;  %v501_v60 = vadd.f32 %v7133_v48, %v486_v49 }
  0xd2   :  { %v488_v61 = vadd.f32 %v480_v55, %v435_v54  ;;  %v487_v62 = vadd.f32 %v479_v58, %v434_v52  ;;  %v7138_v6 = vmax.f32 %v501_v60, 0.0 }
  0xd3   :  { %v93_v63 = vpop.permute.xlu1 %92  ;;  %v89_v0 = vpop.permute.xlu0 %88 }
  0xd4   :  { %v503_v7 = vadd.f32 %v7133_v48, %v488_v61  ;;  %v502_v8 = vadd.f32 %v7133_v48, %v487_v62  ;;  %v524_v15 = vrot.slane %v7138_v6, 1  ;;  %v535_v16 = vrot.slane %v7138_v6, 2 }
  0xd5   :  { %v546_v25 = vrot.slane %v7138_v6, 3  ;;  %v112_v30 = vmul.f32 %v7076_v56, %v93_v63  ;;  %v111_v33 = vmul.f32 %v7076_v56, %v89_v0 }
  0xd6   :  { %v7142_v9 = vmax.f32 %v503_v7, 0.0  ;;  %v7144_v10 = vmax.f32 %v502_v8, 0.0 }
  0xd7   :  { %v142_v12 = vpop.permute.xlu1 %141  ;;  %v97_v13 = vpop.permute.xlu0 %96 }
  0xd8   :  { %v7149_v17 = vrot.slane %v7142_v9, 1  ;;  %v525_v18 = vrot.slane %v7144_v10, 1  ;;  %v7153_v19 = vrot.slane %v7142_v9, 2  ;;  %v7156_v21 = vrot.slane %v7142_v9, 3 }
  0xd9   :  { %v536_v23 = vrot.slane %v7144_v10, 2  ;;  %v547_v24 = vrot.slane %v7144_v10, 3  ;;  %v164_v49 = vmul.f32 %v7071_v53, %v142_v12  ;;  %v113_v50 = vmul.f32 %v7076_v56, %v97_v13 }
  0xda   :  { %v526_v28 = vsel %vm523_vm0, %v524_v15, %v525_v18  ;;  %v528_v31 = vsel %vm523_vm0, %v525_v18, %v7149_v17  ;;  %v560_v54 = vrot.slane %v7144_v10, 4  ;;  %v562_v18 = vrot.slane %v7142_v9, 4 }
  0xdb   :  { %v150_v26 = vpop.permute.xlu1 %149  ;;  %v146_v27 = vpop.permute.xlu0 %145  ;;  %v537_v32 = vsel %vm534_vm1, %v535_v16, %v536_v23  ;;  %v548_v35 = vsel %vm545_vm2, %v546_v25, %v547_v24  ;;  %v573_v36 = vcombine.low %v7138_v6, %v526_v28  ;;  %v574_v37 = vcombine.high %v7138_v6, %v526_v28 }
  0xdc   :  { %v539_v38 = vsel %vm534_vm1, %v536_v23, %v7153_v19  ;;  %v550_v39 = vsel %vm545_vm2, %v547_v24, %v7156_v21  ;;  %v575_v40 = vcombine.low %v537_v32, %v548_v35  ;;  %v576_v41 = vcombine.high %v537_v32, %v548_v35 }
  0xdd   :  { %v584_v44 = vrot.slane %v573_v36, %v7163_v29  ;;  %v591_v45 = vrot.slane %v574_v37, %v7163_v29  ;;  %v690_v46 = vcombine.low %v7144_v10, %v528_v31  ;;  %v691_v47 = vcombine.high %v7144_v10, %v528_v31 }
  0xde   :  { %v598_v51 = vrot.slane %v575_v40, %v7163_v29  ;;  %v605_v52 = vrot.slane %v576_v41, %v7163_v29  ;;  %v692_v55 = vcombine.low %v539_v38, %v550_v39  ;;  %v693_v58 = vcombine.high %v539_v38, %v550_v39 }
  0xdf   :  { %v199_v42 = vpop.permute.xlu1 %198  ;;  %v195_v43 = vpop.permute.xlu0 %194  ;;  %v701_v60 = vrot.slane %v690_v46, %v7163_v29  ;;  %v166_v61 = vmul.f32 %v7071_v53, %v150_v26  ;;  %v708_v0 = vrot.slane %v691_v47, %v7163_v29  ;;  %v172_v14 = vadd.f32 %v164_v49, %v111_v33 }
  0xe0   :  { %v620_v62 = vcombine.low %v584_v44, %v598_v51  ;;  %v621_v63 = vcombine.high %v584_v44, %v598_v51  ;;  %v622_v7 = vcombine.low %v591_v45, %v605_v52  ;;  %v623_v8 = vcombine.high %v591_v45, %v605_v52 }
  0xe1   :  { %v715_v12 = vrot.slane %v692_v55, %v7163_v29  ;;  %v722_v13 = vrot.slane %v693_v58, %v7163_v29  ;;  %v174_v28 = vadd.f32 %v166_v61, %v113_v50  ;;  %v165_v31 = vmul.f32 %v7071_v53, %v146_v27 }
  0xe2   :  { %v632_v15 = vrot.slane %v620_v62, %v7163_v29  ;;  %v646_v16 = vrot.slane %v621_v63, %v7163_v29  ;;  %v639_v23 = vrot.slane %v622_v7, %v7163_v29  ;;  %v653_v24 = vrot.slane %v623_v8, %v7163_v29 }
  0xe3   :  { %v248_v1 = vpop.permute.xlu1 %247  ;;  %v203_v5 = vpop.permute.xlu0 %202  ;;  %v737_v25 = vcombine.low %v701_v60, %v715_v12  ;;  %v738_v26 = vcombine.high %v701_v60, %v715_v12  ;;  %v739_v32 = vcombine.low %v708_v0, %v722_v13  ;;  %v740_v35 = vcombine.high %v708_v0, %v722_v13 }
  0xe4   :  { %v6265_v39 = vcombine.low %v632_v15, %v646_v16  ;;  %v6267_v40 = vcombine.high %v632_v15, %v646_v16  ;;  %v218_v41 = vmul.f32 %v7081_v57, %v199_v42  ;;  %v217_v44 = vmul.f32 %v7081_v57, %v195_v43 }
  0xe5   :  { %v749_v33 = vrot.slane %v737_v25, %v7163_v29  ;;  %v763_v38 = vrot.slane %v738_v26, %v7163_v29  ;;  %v756_v45 = vrot.slane %v739_v32, %v7163_v29  ;;  %v770_v46 = vrot.slane %v740_v35, %v7163_v29 }
  0xe6   :  { %v6269_v27 = vcombine.low %v639_v23, %v653_v24  ;;  %v6271_v47 = vcombine.high %v639_v23, %v653_v24  ;;  %v1251_v49 = vrot.slane %v6265_v39, %v7163_v29  ;;  %v1265_v50 = vrot.slane %v6267_v40, %v7163_v29 }
  0xe7   :  { %v256_v36 = vpop.permute.xlu1 %255  ;;  %v252_v37 = vpop.permute.xlu0 %251  ;;  %v173_v51 = vadd.f32 %v165_v31, %v112_v30  ;;  %v270_v52 = vmul.f32 %v7087_v59, %v248_v1  ;;  %v6273_v55 = vcombine.low %v749_v33, %v763_v38  ;;  %v6275_v58 = vcombine.high %v749_v33, %v763_v38 }
  0xe8   :  { %v1279_v43 = vrot.slane %v6269_v27, %v7163_v29  ;;  %v1293_v61 = vrot.slane %v6271_v47, %v7163_v29  ;;  %v1302_v62 = vcombine.high %v1251_v49, %v1265_v50  ;;  %v6277_v63 = vcombine.low %v756_v45, %v770_v46 }
  0xe9   :  { %v225_v0 = vadd.f32 %v217_v44, %v172_v14  ;;  %v219_v7 = vmul.f32 %v7081_v57, %v203_v5  ;;  %v6279_v8 = vcombine.high %v756_v45, %v770_v46  ;;  %v1368_v12 = vrot.slane %v6273_v55, %v7163_v29 }
  0xea   :  { %v226_v13 = vadd.f32 %v218_v41, %v173_v51  ;;  %v1305_v30 = vcombine.high %v1279_v43, %v1293_v61  ;;  %v1382_v1 = vrot.slane %v6275_v58, %v7163_v29  ;;  %v1396_v15 = vrot.slane %v6277_v63, %v7163_v29 }
  0xeb   :  { %v305_v60 = vpop.permute.xlu1 %304  ;;  %v301_v42 = vpop.permute.xlu0 %300  ;;  %v278_v16 = vadd.f32 %v270_v52, %v225_v0  ;;  %v7213_v23 = vrot.slane %v1302_v62, %v7163_v29  ;;  %v1410_v24 = vrot.slane %v6279_v8, %v7163_v29  ;;  %v1301_v25 = vcombine.low %v1251_v49, %v1265_v50 }
  0xec   :  { %v7217_v14 = vrot.slane %v1305_v30, %v7163_v29  ;;  %v1419_v5 = vcombine.high %v1368_v12, %v1382_v1  ;;  %v1304_v32 = vcombine.low %v1279_v43, %v1293_v61  ;;  %v1418_v35 = vcombine.low %v1368_v12, %v1382_v1  ;;  %v6756_v1 = vld [vmem:[#allocation3 + $0x100] ss:$8 sps:$4 sm:$0xff]  }
  0xed   :  { %v227_v33 = vadd.f32 %v219_v7, %v174_v28  ;;  %v272_v38 = vmul.f32 %v7087_v59, %v256_v36  ;;  %v1422_v39 = vcombine.high %v1396_v15, %v1410_v24  ;;  %v1313_v40 = vrot.slane %v1301_v25, %v7163_v29 }
  0xee   :  { %v271_v41 = vmul.f32 %v7087_v59, %v252_v37  ;;  %v1444_v44 = vrot.slane %v1419_v5, %v7163_v29  ;;  %v1334_v45 = vrot.slane %v1304_v32, %v7163_v29  ;;  %v1421_v46 = vcombine.low %v1396_v15, %v1410_v24  ;;  %v6761_v5 = vld [vmem:[#allocation3 + $0x114] ss:$8 sps:$4 sm:$0xff]  }
  0xef   :  { %v354_v26 = vpop.permute.xlu1 %353  ;;  %v309_v31 = vpop.permute.xlu0 %308  ;;  %v323_v27 = vmul.f32 %v7096_v4, %v301_v42  ;;  %v1352_v47 = vcombine.low %v7213_v23, %v7217_v14  ;;  %v1465_v49 = vrot.slane %v1422_v39, %v7163_v29  ;;  %v1430_v28 = vrot.slane %v1418_v35, %v7163_v29 }
  0xf0   :  { %v1349_v36 = vcombine.low %v1313_v40, %v1334_v45  ;;  %v1350_v50 = vcombine.high %v1313_v40, %v1334_v45  ;;  %v1451_v51 = vrot.slane %v1421_v46, %v7163_v29  ;;  %v563_v55 = vsel %vm558_vm3, %v560_v54, %v562_v18  ;;  %v6759_v45 = vld [vmem:[#allocation3 + $0x110] ss:$8 sps:$4 sm:$0xff]  }
  0xf1   :  { %v324_v58 = vmul.f32 %v7096_v4, %v305_v60  ;;  %v376_v42 = vmul.f32 %v7106_v11, %v354_v26  ;;  %v1469_v43 = vcombine.low %v1444_v44, %v1465_v49  ;;  %v325_v61 = vmul.f32 %v7096_v4, %v309_v31 }
  0xf2   :  { %v1466_v62 = vcombine.low %v1430_v28, %v1451_v51  ;;  %v1467_v63 = vcombine.high %v1430_v28, %v1451_v51  ;;  %v807_v0 = vcombine.low %v7142_v9, %v7149_v17  ;;  %v280_v7 = vadd.f32 %v272_v38, %v227_v33 }
  0xf3   :  { %v362_v52 = vpop.permute.xlu1 %361  ;;  %v358_v37 = vpop.permute.xlu0 %357  ;;  %v279_v8 = vadd.f32 %v271_v41, %v226_v13  ;;  %v331_v12 = vadd.f32 %v323_v27, %v278_v16  ;;  %v1893_v30 = vpack.c.bf16 %v1469_v43, %v1352_v47  ;;  %v559_v15 = vrot.slane %v7138_v6, 4  ;;  %v6762_v43 = vld [vmem:[#allocation3 + $0x120] ss:$8 sps:$4 sm:$0xff]  }
  0xf4   :  { %v1892_v24 = vpack.c.bf16 %v1466_v62, %v1349_v36  ;;  %v694_v26 = vcombine.high %v563_v55, %v563_v55  ;;  %v809_v31 = vcombine.low %v7153_v19, %v7156_v21  ;;  %v333_v39 = vadd.f32 %v325_v61, %v280_v7 }
  0xf5   :  { %v332_v32 = vadd.f32 %v324_v58, %v279_v8  ;;  %v384_v35 = vadd.f32 %v376_v42, %v331_v12  ;;  %2431 = vmatprep.mubr.bf16.mxu0 %v1893_v30  ;;  %v808_v13 = vcombine.high %v7142_v9, %v7149_v17  ;;  %v810_v16 = vcombine.high %v7153_v19, %v7156_v21  ;;  %v6764_v19 = vld [vmem:[#allocation3 + $0x124] ss:$8 sps:$4 sm:$0xff]   ;;  %v6767_v8 = vld [vmem:[#allocation3 + $0x134] ss:$8 sps:$4 sm:$0xff]  }
  0xf6   :  { %2432 = vmatmul.mubr.bf16.vlgmr.msra.gmra.mrb[0].mxu0 %v1892_v24  ;;  %v818_v6 = vrot.slane %v807_v0, %v7163_v29  ;;  %v832_v33 = vrot.slane %v809_v31, %v7163_v29  ;;  %v1353_v38 = vcombine.high %v7213_v23, %v7217_v14  ;;  %v378_v40 = vmul.f32 %v7106_v11, %v362_v52 }
  0xf7   :  { %v411_v25 = vpop.permute.xlu1 %410  ;;  %v407_v60 = vpop.permute.xlu0 %406  ;;  %v377_v41 = vmul.f32 %v7106_v11, %v358_v37  ;;  %2463 = vmatpush1.bf16.msra.mxu0 %v6756_v1  ;;  %v729_v46 = vrot.slane %v563_v55, %v7163_v29  ;;  %v1470_v17 = vcombine.high %v1444_v44, %v1465_v49  ;;  %v7255_v21 = vrot.slane %v694_v26, %v7163_v29 }
  0xf8   :  { %2464 = vmatprep.subr.bf16.mxu0 %v6761_v5  ;;  %v854_v28 = vcombine.low %v818_v6, %v832_v33  ;;  %v855_v36 = vcombine.high %v818_v6, %v832_v33  ;;  %v7257_v51 = vpack.c.bf16 %v1467_v63, %v1350_v50  ;;  %v430_v23 = vmul.f32 %v7114_v20, %v411_v25 }
  0xf9   :  { %v429_v14 = vmul.f32 %v7114_v20, %v407_v60  ;;  %v825_v52 = vrot.slane %v808_v13, %v7163_v29  ;;  %v7262_v37 = vpack.c.bf16 %v1470_v17, %v1353_v38  ;;  %v839_v44 = vrot.slane %v810_v16, %v7163_v29 }
  0xfa   :  { %v864_v49 = vrot.slane %v854_v28, %v7163_v29  ;;  %v878_v55 = vrot.slane %v855_v36, %v7163_v29  ;;  %v561_v58 = vsel %vm558_vm3, %v559_v15, %v560_v54  ;;  %v386_v50 = vadd.f32 %v378_v40, %v333_v39  ;;  %v6770_v40 = vld [vmem:[#allocation3 + $0x144] ss:$8 sps:$4 sm:$0xff]  }
  0xfb   :  { %v101_v27 = vpop.permute.xlu1 %100  ;;  %v415_v47 = vpop.permute.xlu0 %414  ;;  %v385_v42 = vadd.f32 %v377_v41, %v332_v32  ;;  %2465 = vmatpush1.bf16.msra.mxu0 %v6759_v45  ;;  %v577_v61 = vcombine.high %v561_v58, %v561_v58  ;;  %v612_v62 = vrot.slane %v561_v58, %v7163_v29  ;;  %v741_v12 = vcombine.high %v729_v46, %v729_v46  ;;  %v6765_v32 = vld [vmem:[#allocation3 + $0x130] ss:$8 sps:$4 sm:$0xff]  }
  0xfc   :  { %v431_v63 = vmul.f32 %v7114_v20, %v415_v47  ;;  %2466 = vmatprep.subr.bf16.mxu0 %v6764_v19  ;;  %v6281_v30 = vcombine.low %v864_v49, %v878_v55  ;;  %v6283_v1 = vcombine.high %v864_v49, %v878_v55  ;;  %v437_v24 = vadd.f32 %v429_v14, %v384_v35  ;;  %v6768_v49 = vld [vmem:[#allocation3 + $0x140] ss:$8 sps:$4 sm:$0xff]  }
  0xfd   :  { %v619_v54 = vrot.slane %v577_v61, %v7163_v29  ;;  %v624_v15 = vcombine.high %v612_v62, %v612_v62  ;;  %v438_v25 = vadd.f32 %v430_v23, %v385_v42  ;;  %v742_v60 = vcombine.high %v7255_v21, %v7255_v21 }
  0xfe   :  { %v7277_v5 = vrot.slane %v729_v46, %v7163_v29  ;;  %v856_v26 = vcombine.low %v825_v52, %v839_v44  ;;  %v1485_v39 = vrot.slane %v6281_v30, %v7163_v29  ;;  %v1499_v35 = vrot.slane %v6283_v1, %v7163_v29 }
  0xff   :  { %v460_v0 = vpop.permute.xlu1 %459  ;;  %v154_v7 = vpop.permute.xlu0 %153  ;;  %2467 = vmatpush1.bf16.msra.mxu0 %v6762_v43  ;;  %v625_v13 = vcombine.high %v619_v54, %v619_v54  ;;  %v439_v16 = vadd.f32 %v431_v63, %v386_v50  ;;  %v674_v41 = vrot.slane %v624_v15, %v7163_v29  ;;  %v7284_v45 = vrot.slane %v741_v12, %v7163_v29  ;;  %v6773_v43 = vld [vmem:[#allocation3 + $0x154] ss:$8 sps:$4 sm:$0xff]  }
 0x100   :  { %v482_v10 = vmul.f32 %v7123_v34, %v460_v0  ;;  %v167_v6 = vmul.f32 %v7071_v53, %v154_v7  ;;  %2468 = vmatprep.subr.bf16.mxu0 %v6767_v8  ;;  %v114_v28 = vmul.f32 %v7076_v56, %v101_v27  ;;  %v660_v36 = vrot.slane %v612_v62, %v7163_v29 }
 0x101   :  { %v681_v19 = vrot.slane %v625_v13, %v7163_v29  ;;  %v667_v23 = vrot.slane %v619_v54, %v7163_v29  ;;  %v7295_v14 = vrot.slane %v7255_v21, %v7163_v29  ;;  %v1536_v55 = vcombine.high %v1485_v39, %v1499_v35  ;;  %v6771_v54 = vld [vmem:[#allocation3 + $0x150] ss:$8 sps:$4 sm:$0xff]   ;;  %v6776_v13 = vld [vmem:[#allocation3 + $0x164] ss:$8 sps:$4 sm:$0xff]  }
 0x102   :  { %v490_v31 = vadd.f32 %v482_v10, %v437_v24  ;;  %v1535_v58 = vcombine.low %v1485_v39, %v1499_v35  ;;  %v7298_v27 = vrot.slane %v856_v26, %v7163_v29  ;;  %v7301_v61 = vrot.slane %v742_v60, %v7163_v29 }
 0x103   :  { %v468_v33 = vpop.permute.xlu1 %467  ;;  %v464_v38 = vpop.permute.xlu0 %463  ;;  %2469 = vmatpush1.bf16.msra.mxu0 %v6765_v32  ;;  %v6266_v62 = vcombine.low %v660_v36, %v674_v41  ;;  %v175_v0 = vadd.f32 %v167_v6, %v114_v28  ;;  %v6268_v7 = vcombine.high %v660_v36, %v674_v41  ;;  %v6270_v8 = vcombine.low %v667_v23, %v681_v19 }
 0x104   :  { %v505_v46 = vadd.f32 %v7133_v48, %v490_v31  ;;  %v484_v17 = vmul.f32 %v7123_v34, %v468_v33  ;;  %v483_v47 = vmul.f32 %v7123_v34, %v464_v38  ;;  %2470 = vmatprep.subr.bf16.mxu0 %v6770_v40  ;;  %v6272_v24 = vcombine.high %v667_v23, %v681_v19 }
 0x105   :  { %v7312_v15 = vrot.slane %v1536_v55, %v7163_v29  ;;  %v7330_v40 = vrot.slane %v6268_v7, %v7163_v29 }
 0x106   :  { %v492_v52 = vadd.f32 %v484_v17, %v439_v16  ;;  %v491_v44 = vadd.f32 %v483_v47, %v438_v25  ;;  %v7305_v63 = vmax.f32 %v505_v46, 0.0  ;;  %v7315_v25 = vrot.slane %v1535_v58, %v7163_v29 }
 0x107   :  { %v207_v50 = vpop.permute.xlu0 %206  ;;  %v260_v42 = vpop.permute.xlu1 %259  ;;  %2471 = vmatpush1.bf16.msra.mxu0 %v6768_v49  ;;  %v7324_v16 = vrot.slane %v6266_v62, %v7163_v29  ;;  %v7337_v17 = vrot.slane %v6270_v8, %v7163_v29  ;;  %v7340_v47 = vrot.slane %v6272_v24, %v7163_v29 }
 0x108   :  { %v507_v12 = vadd.f32 %v7133_v48, %v492_v52  ;;  %v506_v30 = vadd.f32 %v7133_v48, %v491_v44  ;;  %v220_v1 = vmul.f32 %v7081_v57, %v207_v50  ;;  %v273_v10 = vmul.f32 %v7087_v59, %v260_v42  ;;  %2472 = vmatprep.subr.bf16.mxu0 %v6773_v43  ;;  %v6774_v52 = vld [vmem:[#allocation3 + $0x160] ss:$8 sps:$4 sm:$0xff]   ;;  %v6779_v43 = vld [vmem:[#allocation3 + $0x174] ss:$8 sps:$4 sm:$0xff]  }
 0x109   :  { %v529_v6 = vrot.slane %v7305_v63, 1  ;;  %v540_v33 = vrot.slane %v7305_v63, 2  ;;  %v551_v44 = vrot.slane %v7305_v63, 3 }
 0x10a   :  { %v7319_v26 = vmax.f32 %v507_v12, 0.0  ;;  %v7321_v31 = vmax.f32 %v506_v30, 0.0  ;;  %v228_v32 = vadd.f32 %v220_v1, %v175_v0  ;;  %v566_v12 = vrot.slane %v7305_v63, 4 }
 0x10b   :  { %v313_v39 = vpop.permute.xlu0 %312  ;;  %v366_v35 = vpop.permute.xlu1 %365  ;;  %2473 = vmatpush1.bf16.msra.mxu0 %v6771_v54 }
 0x10c   :  { %v326_v38 = vmul.f32 %v7096_v4, %v313_v39  ;;  %v7333_v41 = vrot.slane %v7319_v26, 1  ;;  %v530_v46 = vrot.slane %v7321_v31, 1  ;;  %v541_v19 = vrot.slane %v7321_v31, 2  ;;  %2474 = vmatprep.subr.bf16.mxu0 %v6776_v13 }
 0x10d   :  { %v552_v28 = vrot.slane %v7321_v31, 3  ;;  %v281_v36 = vadd.f32 %v273_v10, %v228_v32  ;;  %v379_v23 = vmul.f32 %v7106_v11, %v366_v35  ;;  %v7347_v49 = vrot.slane %v7319_v26, 2  ;;  %v6777_v32 = vld [vmem:[#allocation3 + $0x170] ss:$8 sps:$4 sm:$0xff]  }
 0x10e   :  { %v7351_v55 = vsel %vm523_vm0, %v530_v46, %v7333_v41  ;;  %v567_v58 = vrot.slane %v7321_v31, 4  ;;  %v569_v7 = vrot.slane %v7319_v26, 4  ;;  %v531_v8 = vsel %vm523_vm0, %v529_v6, %v530_v46  ;;  %v6782_v46 = vld [vmem:[#allocation3 + $0x184] ss:$8 sps:$4 sm:$0xff]  }
 0x10f   :  { %v419_v50 = vpop.permute.xlu0 %418  ;;  %v472_v42 = vpop.permute.xlu1 %471  ;;  %v334_v62 = vadd.f32 %v326_v38, %v281_v36  ;;  %v7359_v30 = vrot.slane %v7319_v26, 3  ;;  %2475 = vmatpush1.bf16.msra.mxu0 %v6774_v52  ;;  %v542_v39 = vsel %vm534_vm1, %v540_v33, %v541_v19  ;;  %v553_v35 = vsel %vm545_vm2, %v551_v44, %v552_v28 }
 0x110   :  { %v432_v0 = vmul.f32 %v7114_v20, %v419_v50  ;;  %v485_v54 = vmul.f32 %v7123_v34, %v472_v42  ;;  %v1022_v13 = vcombine.low %v7321_v31, %v7351_v55  ;;  %2476 = vmatprep.subr.bf16.mxu0 %v6779_v43  ;;  %v568_v36 = vsel %vm558_vm3, %v566_v12, %v567_v58 }
 0x111   :  { %v387_v10 = vadd.f32 %v379_v23, %v334_v62  ;;  %v905_v23 = vcombine.low %v7305_v63, %v531_v8  ;;  %v906_v52 = vcombine.high %v7305_v63, %v531_v8  ;;  %v7378_v33 = vsel %vm558_vm3, %v567_v58, %v569_v7  ;;  %v6780_v63 = vld [vmem:[#allocation3 + $0x180] ss:$8 sps:$4 sm:$0xff]  }
 0x112   :  { %v7383_v42 = vsel %vm534_vm1, %v541_v19, %v7347_v49  ;;  %v907_v62 = vcombine.low %v542_v39, %v553_v35  ;;  %v908_v12 = vcombine.high %v542_v39, %v553_v35  ;;  %v909_v22 = vcombine.high %v568_v36, %v568_v36  ;;  %v6785_v19 = vld [vmem:[#allocation3 + $0x194] ss:$8 sps:$4 sm:$0xff]  }
 0x113   :  { %v82_v6 = vpop.permute.xlu0 %81  ;;  %v138_v38 = vpop.permute.xlu1 %137  ;;  %v440_v50 = vadd.f32 %v432_v0, %v387_v10  ;;  %2477 = vmatpush1.bf16.msra.mxu0 %v6777_v32  ;;  %v916_v0 = vrot.slane %v905_v23, %v7163_v29  ;;  %v923_v8 = vrot.slane %v906_v52, %v7163_v29  ;;  %v944_v58 = vrot.slane %v568_v36, %v7163_v29 }
 0x114   :  { %v110_v44 = vmul.f32 %v7076_v56, %v82_v6  ;;  %v163_v43 = vmul.f32 %v7071_v53, %v138_v38  ;;  %2478 = vmatprep.subr.bf16.mxu0 %v6782_v46  ;;  %v930_v60 = vrot.slane %v907_v62, %v7163_v29  ;;  %v937_v53 = vrot.slane %v908_v12, %v7163_v29 }
 0x115   :  { %v493_v3 = vadd.f32 %v485_v54, %v440_v50  ;;  %v951_v39 = vrot.slane %v909_v22, %v7163_v29  ;;  %v956_v38 = vcombine.high %v944_v58, %v944_v58  ;;  %v7399_v22 = vsel %vm545_vm2, %v552_v28, %v7359_v30 }
 0x116   :  { %v171_v10 = vadd.f32 %v163_v43, %v110_v44  ;;  %v952_v23 = vcombine.low %v916_v0, %v930_v60  ;;  %v953_v36 = vcombine.high %v916_v0, %v930_v60  ;;  %v954_v52 = vcombine.low %v923_v8, %v937_v53  ;;  %v6783_v43 = vld [vmem:[#allocation3 + $0x190] ss:$8 sps:$4 sm:$0xff]  }
 0x117   :  { %v191_v56 = vpop.permute.xlu0 %190  ;;  %v244_v6 = vpop.permute.xlu1 %243  ;;  %v508_v54 = vadd.f32 %v7133_v48, %v493_v3  ;;  %v955_v46 = vcombine.high %v923_v8, %v937_v53  ;;  %2479 = vmatpush1.bf16.msra.mxu0 %v6780_v63  ;;  %v957_v3 = vcombine.high %v951_v39, %v951_v39  ;;  %v7409_v63 = vrot.slane %v944_v58, %v7163_v29 }
 0x118   :  { %v216_v32 = vmul.f32 %v7081_v57, %v191_v56  ;;  %v269_v35 = vmul.f32 %v7087_v59, %v244_v6  ;;  %2480 = vmatprep.subr.bf16.mxu0 %v6785_v19  ;;  %v6788_v59 = vld [vmem:[#allocation3 + $0x1a4] ss:$8 sps:$4 sm:$0xff]   ;;  %v964_v12 = vrot.slane %v952_v23, %v7163_v29  ;;  %v7403_v60 = vrot.slane %v954_v52, %v7163_v29 }
 0x119   :  { %v516_v50 = vmax.f32 %v508_v54, 0.0  ;;  %v7406_v0 = vrot.slane %v953_v36, %v7163_v29  ;;  %v7414_v6 = vrot.slane %v955_v46, %v7163_v29  ;;  %v7417_v19 = vrot.slane %v951_v39, %v7163_v29 }
 0x11a   :  { %v224_v44 = vadd.f32 %v216_v32, %v171_v10  ;;  %v7420_v53 = vrot.slane %v956_v38, %v7163_v29  ;;  %v7423_v54 = vrot.slane %v957_v3, %v7163_v29  ;;  %v1015_v32 = vcombine.high %v964_v12, %v7409_v63 }
 0x11b   :  { %v297_v57 = vpop.permute.xlu0 %296  ;;  %v350_v62 = vpop.permute.xlu1 %349  ;;  %v571_v8 = vrot.slane %v516_v50, 4  ;;  %2481 = vmatpush1.bf16.msra.mxu0 %v6783_v43  ;;  %v1024_v39 = vcombine.low %v7383_v42, %v7399_v22  ;;  %v7437_v38 = vrot.slane %v7378_v33, %v7163_v29  ;;  %v1033_v46 = vrot.slane %v1022_v13, %v7163_v29 }
 0x11c   :  { %v277_v10 = vadd.f32 %v269_v35, %v224_v44  ;;  %v322_v28 = vmul.f32 %v7096_v4, %v297_v57  ;;  %v375_v56 = vmul.f32 %v7106_v11, %v350_v62  ;;  %v6786_v11 = vld [vmem:[#allocation3 + $0x1a0] ss:$8 sps:$4 sm:$0xff]   ;;  %v1139_v35 = vcombine.low %v7319_v26, %v7333_v41  ;;  %2482 = vmatprep.subr.bf16.mxu0 %v6788_v59 }
 0x11d   :  { %v7428_v58 = vsel %vm558_vm3, %v569_v7, %v571_v8  ;;  %v6791_v7 = vld [vmem:[#allocation3 + $0x1b4] ss:$8 sps:$4 sm:$0xff]   ;;  %v1019_v52 = vcombine.high %v7406_v0, %v7420_v53  ;;  %v1017_v3 = vcombine.high %v7403_v60, %v7417_v19  ;;  %v1023_v57 = vcombine.high %v7321_v31, %v7351_v55 }
 0x11e   :  { %v330_v4 = vadd.f32 %v322_v28, %v277_v10  ;;  %v1026_v62 = vcombine.high %v7378_v33, %v7378_v33  ;;  %v7455_v59 = vrot.slane %v7428_v58, %v7163_v29  ;;  %v1047_v13 = vrot.slane %v1024_v39, %v7163_v29 }
 0x11f   :  { %v403_v23 = vpop.permute.xlu0 %402  ;;  %v456_v36 = vpop.permute.xlu1 %455  ;;  %2483 = vmatpush1.bf16.msra.mxu0 %v6786_v11  ;;  %v6285_v10 = vcombine.low %v7298_v27, %v964_v12  ;;  %v6287_v28 = vcombine.low %v7406_v0, %v1015_v32  ;;  %v7464_v33 = vrot.slane %v7437_v38, %v7163_v29 }
 0x120   :  { %v383_v50 = vadd.f32 %v375_v56, %v330_v4  ;;  %v428_v44 = vmul.f32 %v7114_v20, %v403_v23  ;;  %v481_v43 = vmul.f32 %v7123_v34, %v456_v36  ;;  %v6789_v20 = vld [vmem:[#allocation3 + $0x1b0] ss:$8 sps:$4 sm:$0xff]   ;;  %v1021_v34 = vcombine.high %v7414_v6, %v7423_v54  ;;  %2484 = vmatprep.subr.bf16.mxu0 %v6791_v7  ;;  %v6794_v4 = vld [vmem:[#allocation3 + $0x1c4] ss:$8 sps:$4 sm:$0xff]  }
 0x121   :  { %v1069_v31 = vcombine.low %v1033_v46, %v1047_v13  ;;  %v1070_v55 = vcombine.high %v1033_v46, %v1047_v13  ;;  %v6289_v56 = vcombine.low %v1019_v52, %v7403_v60  ;;  %v1513_v11 = vrot.slane %v6285_v10, %v7163_v29 }
 0x122   :  { %v436_v8 = vadd.f32 %v428_v44, %v383_v50  ;;  %v1527_v23 = vrot.slane %v6287_v28, %v7163_v29  ;;  %v6291_v36 = vcombine.low %v7414_v6, %v1017_v3  ;;  %v1025_v7 = vcombine.high %v7383_v42, %v7399_v22 }
 0x123   :  { %v7471_v27 = vrot.slane %v1069_v31, %v7163_v29  ;;  %v7474_v12 = vrot.slane %v1070_v55, %v7163_v29  ;;  %v1602_v32 = vrot.slane %v6289_v56, %v7163_v29  ;;  %2485 = vmatpush1.bf16.msra.mxu0 %v6789_v20  ;;  %v1040_v10 = vrot.slane %v1023_v57, %v7163_v29 }
 0x124   :  { %v489_v39 = vadd.f32 %v481_v43, %v436_v8  ;;  %v1539_v46 = vcombine.high %v1513_v11, %v1527_v23  ;;  %v1616_v50 = vrot.slane %v6291_v36, %v7163_v29  ;;  %v1538_v44 = vcombine.low %v1513_v11, %v1527_v23  ;;  %v6792_v43 = vld [vmem:[#allocation3 + $0x1c0] ss:$8 sps:$4 sm:$0xff]   ;;  %2486 = vmatprep.subr.bf16.mxu0 %v6794_v4  ;;  %v6797_v8 = vld [vmem:[#allocation3 + $0x1d4] ss:$8 sps:$4 sm:$0xff]  }
 0x125   :  { %v1132_v3 = vcombine.high %v7471_v27, %v7464_v33  ;;  %v6293_v13 = vcombine.low %v1021_v34, %v7471_v27  ;;  %v1054_v28 = vrot.slane %v1025_v7, %v7163_v29  ;;  %v1068_v42 = vrot.slane %v1026_v62, %v7163_v29 }
 0x126   :  { %v504_v52 = vadd.f32 %v7133_v48, %v489_v39  ;;  %v1073_v48 = vcombine.high %v7437_v38, %v7437_v38  ;;  %v1653_v20 = vcombine.high %v1602_v32, %v1616_v50  ;;  %v1189_v31 = vcombine.high %v7455_v59, %v7455_v59  ;;  %v6795_v38 = vld [vmem:[#allocation3 + $0x1d0] ss:$8 sps:$4 sm:$0xff]  }
 0x127   :  { %v6295_v55 = vcombine.low %v7474_v12, %v1132_v3  ;;  %v1630_v34 = vrot.slane %v6293_v13, %v7163_v29  ;;  %v1071_v56 = vcombine.low %v1040_v10, %v1054_v28  ;;  %v7494_v57 = vrot.slane %v1539_v46, %v7163_v29  ;;  %2487 = vmatpush1.bf16.msra.mxu0 %v6792_v43 }
 0x128   :  { %v512_v22 = vmax.f32 %v504_v52, 0.0  ;;  %v7497_v39 = vrot.slane %v1538_v44, %v7163_v29  ;;  %v1652_v62 = vcombine.low %v1602_v32, %v1616_v50  ;;  %v7501_v11 = vrot.slane %v7455_v59, %v7163_v29  ;;  %2488 = vmatprep.subr.bf16.mxu0 %v6797_v8  ;;  %v6800_v52 = vld [vmem:[#allocation3 + $0x1e4] ss:$8 sps:$4 sm:$0xff]  }
 0x129   :  { %v1644_v23 = vrot.slane %v6295_v55, %v7163_v29  ;;  %v7505_v36 = vrot.slane %v1653_v20, %v7163_v29  ;;  %v1072_v7 = vcombine.high %v1040_v10, %v1054_v28  ;;  %v1074_v44 = vcombine.high %v1068_v42, %v1068_v42  ;;  %v6798_v28 = vld [vmem:[#allocation3 + $0x1e0] ss:$8 sps:$4 sm:$0xff]  }
 0x12a   :  { %v564_v4 = vrot.slane %v512_v22, 4  ;;  %v7511_v32 = vrot.slane %v1071_v56, %v7163_v29  ;;  %v7514_v50 = vrot.slane %v1068_v42, %v7163_v29  ;;  %v7517_v13 = vrot.slane %v1073_v48, %v7163_v29 }
 0x12b   :  { %v1656_v43 = vcombine.high %v1630_v34, %v1644_v23  ;;  %v1655_v3 = vcombine.low %v1630_v34, %v1644_v23  ;;  %v7520_v8 = vrot.slane %v1189_v31, %v7163_v29  ;;  %v1586_v9 = vcombine.low %v7312_v15, %v7494_v57  ;;  %2489 = vmatpush1.bf16.msra.mxu0 %v6795_v38  ;;  %v6803_v31 = vld [vmem:[#allocation3 + $0x1f4] ss:$8 sps:$4 sm:$0xff]  }
 0x12c   :  { %v565_v46 = vsel %vm558_vm3, %v562_v18, %v564_v4  ;;  %v1583_v18 = vcombine.low %v7315_v25, %v7497_v39  ;;  %v7527_v10 = vrot.slane %v1652_v62, %v7163_v29  ;;  %v7533_v48 = vrot.slane %v1072_v7, %v7163_v29  ;;  %2490 = vmatprep.subr.bf16.mxu0 %v6800_v52 }
 0x12d   :  { %v811_v59 = vcombine.high %v565_v46, %v565_v46  ;;  %v7530_v42 = vrot.slane %v1656_v43, %v7163_v29  ;;  %v1134_v22 = vcombine.high %v7511_v32, %v7514_v50  ;;  %v1136_v20 = vcombine.high %v7474_v12, %v7517_v13 }
 0x12e   :  { %v7540_v55 = vrot.slane %v1655_v3, %v7163_v29  ;;  %v7543_v34 = vrot.slane %v1074_v44, %v7163_v29  ;;  %v1140_v56 = vcombine.high %v7319_v26, %v7333_v41  ;;  %v1141_v4 = vcombine.low %v7347_v49, %v7359_v30 }
 0x12f   :  { %v846_v62 = vrot.slane %v565_v46, %v7163_v29  ;;  %v7551_v38 = vrot.slane %v811_v59, %v7163_v29  ;;  %v1703_v23 = vcombine.low %v7505_v36, %v7530_v42  ;;  %v1142_v7 = vcombine.high %v7347_v49, %v7359_v30  ;;  %2491 = vmatpush1.bf16.msra.mxu0 %v6798_v28  ;;  %v6801_v30 = vld [vmem:[#allocation3 + $0x1f0] ss:$8 sps:$4 sm:$0xff]  }
 0x130   :  { %v1700_v52 = vcombine.low %v7527_v10, %v7540_v55  ;;  %v1150_v44 = vrot.slane %v1139_v35, %v7163_v29  ;;  %v1157_v43 = vrot.slane %v1140_v56, %v7163_v29  ;;  %v1164_v46 = vrot.slane %v1141_v4, %v7163_v29  ;;  %2492 = vmatprep.subr.bf16.mxu0 %v6803_v31  ;;  %v6806_v35 = vld [vmem:[#allocation3 + $0x204] ss:$8 sps:$4 sm:$0xff]  }
 0x131   :  { %v1898_v59 = vpack.c.bf16 %v1703_v23, %v1586_v9  ;;  %v1171_v3 = vrot.slane %v1142_v7, %v7163_v29  ;;  %v6297_v24 = vcombine.low %v1136_v20, %v7511_v32  ;;  %v6299_v49 = vcombine.low %v7533_v48, %v1134_v22 }
 0x132   :  { %v1897_v21 = vpack.c.bf16 %v1700_v52, %v1583_v18  ;;  %v1138_v1 = vcombine.high %v7533_v48, %v7543_v34  ;;  %v1186_v26 = vcombine.low %v1150_v44, %v1164_v46  ;;  %v1187_v41 = vcombine.high %v1150_v44, %v1164_v46 }
 0x133   :  { %v857_v56 = vcombine.high %v846_v62, %v846_v62  ;;  %2441 = vmatprep.mubr.bf16.mxu0 %v1898_v59  ;;  %v1188_v4 = vcombine.low %v1157_v43, %v1171_v3  ;;  %v1719_v9 = vrot.slane %v6297_v24, %v7163_v29  ;;  %v1733_v28 = vrot.slane %v6299_v49, %v7163_v29 }
 0x134   :  { %2442 = vmatmul.mubr.bf16.gmra.mrb[4].mxu0 %v1897_v21  ;;  %v7573_v20 = vrot.slane %v1186_v26, %v7163_v29  ;;  %v7576_v22 = vrot.slane %v1187_v41, %v7163_v29  ;;  %v6278_v18 = vcombine.low %v7295_v14, %v7301_v61  ;;  %v6280_v31 = vcombine.high %v7295_v14, %v7301_v61 }
 0x135   :  { %v885_v23 = vrot.slane %v846_v62, %v7163_v29  ;;  %v892_v24 = vrot.slane %v7551_v38, %v7163_v29  ;;  %2493 = vmatpush1.bf16.msra.mxu0 %v6801_v30  ;;  %v8664_v21 = vcombine.low %v7324_v16, %v7330_v40  ;;  %v8665_v52 = vcombine.low %v7277_v5, %v7284_v45 }
 0x136   :  { %v7594_v43 = vrot.slane %v1188_v4, %v7163_v29  ;;  %v1233_v14 = vcombine.high %v7573_v20, %v7501_v11  ;;  %v1236_v61 = vcombine.high %v7576_v22, %v7520_v8  ;;  %v6301_v62 = vcombine.low %v1138_v1, %v7573_v20  ;;  %2525 = vmatprep.subr.bf16.mxu0 %v6806_v35 }
 0x137   :  { %v1320_v7 = vrot.slane %v8664_v21, %v7163_v29  ;;  %v1375_v44 = vrot.slane %v8665_v52, %v7163_v29  ;;  %v899_v16 = vrot.slane %v857_v56, %v7163_v29  ;;  %v1770_v40 = vcombine.high %v1719_v9, %v1733_v28 }
 0x138   :  { %v8666_v38 = vcombine.low %v7337_v17, %v7340_v47  ;;  %v8667_v59 = vcombine.high %v7277_v5, %v7284_v45  ;;  %v6303_v49 = vcombine.low %v7576_v22, %v1233_v14  ;;  %v6305_v30 = vcombine.low %v1236_v61, %v7594_v43 }
 0x139   :  { %v1769_v26 = vcombine.low %v1719_v9, %v1733_v28  ;;  %v1403_v1 = vrot.slane %v6278_v18, %v7163_v29  ;;  %v1747_v41 = vrot.slane %v6301_v62, %v7163_v29  ;;  %v1417_v35 = vrot.slane %v6280_v31, %v7163_v29 }
 0x13a   :  { %v1341_v46 = vrot.slane %v8666_v38, %v7163_v29  ;;  %v1389_v3 = vrot.slane %v8667_v59, %v7163_v29  ;;  %v1016_v17 = vcombine.low %v7403_v60, %v7417_v19  ;;  %v1761_v47 = vrot.slane %v6303_v49, %v7163_v29 }
 0x13b   :  { %v1830_v5 = vrot.slane %v6305_v30, %v7163_v29  ;;  %v1018_v45 = vcombine.low %v7406_v0, %v7420_v53  ;;  %v1020_v4 = vcombine.low %v7414_v6, %v7423_v54  ;;  %v7624_v9 = vrot.slane %v1770_v40, %v7163_v29 }
 0x13c   :  { %v1420_v56 = vcombine.low %v1375_v44, %v1389_v3  ;;  %v1351_v28 = vcombine.low %v1320_v7, %v1341_v46  ;;  %v1423_v18 = vcombine.low %v1403_v1, %v1417_v35  ;;  %v1131_v31 = vcombine.low %v7471_v27, %v7464_v33 }
 0x13d   :  { %v1773_v21 = vcombine.high %v1747_v41, %v1761_v47  ;;  %v1838_v60 = vcombine.high %v1830_v5, %v1830_v5  ;;  %v1772_v52 = vcombine.low %v1747_v41, %v1761_v47  ;;  %v6282_v61 = vcombine.low %v885_v23, %v899_v16 }
 0x13e   :  { %v1437_v44 = vrot.slane %v1420_v56, %v7163_v29  ;;  %v1458_v14 = vrot.slane %v1423_v18, %v7163_v29  ;;  %v6284_v0 = vcombine.high %v885_v23, %v899_v16  ;;  %v6286_v62 = vcombine.low %v892_v24, %v7409_v63 }
 0x13f   :  { %v1816_v6 = vrot.slane %v1773_v21, %v7163_v29  ;;  %v1859_v40 = vrot.slane %v1838_v60, %v7163_v29  ;;  %v7634_v7 = vrot.slane %v1769_v26, %v7163_v29  ;;  %v7637_v27 = vrot.slane %v1772_v52, %v7163_v29 }
 0x140   :  { %v1468_v38 = vcombine.low %v1437_v44, %v1458_v14  ;;  %v6288_v46 = vcombine.high %v1018_v45, %v7409_v63  ;;  %v1492_v59 = vrot.slane %v6282_v61, %v7163_v29  ;;  %v1506_v3 = vrot.slane %v6284_v0, %v7163_v29  ;;  %v6804_v44 = vld [vmem:[#allocation3 + $0x200] ss:$8 sps:$4 sm:$0xff]  }
 0x141   :  { %v1820_v23 = vcombine.low %v7624_v9, %v1816_v6  ;;  %v1817_v24 = vcombine.low %v7634_v7, %v7637_v27  ;;  %v1845_v16 = vrot.slane %v1830_v5, %v7163_v29  ;;  %v1135_v49 = vcombine.low %v7474_v12, %v7517_v13 }
 0x142   :  { %v7648_v30 = vpack.c.bf16 %v1468_v38, %v1351_v28  ;;  %v1520_v26 = vrot.slane %v6286_v62, %v7163_v29  ;;  %v1534_v63 = vrot.slane %v6288_v46, %v7163_v29  ;;  %v1537_v35 = vcombine.low %v1492_v59, %v1506_v3  ;;  %v6807_v62 = vld [vmem:[#allocation3 + $0x210] ss:$8 sps:$4 sm:$0xff]   ;;  %v6810_v46 = vld [vmem:[#allocation3 + $0x220] ss:$8 sps:$4 sm:$0xff]   ;;  %v6815_v3 = vld [vmem:[#allocation3 + $0x234] ss:$8 sps:$4 sm:$0xff]  }
 0x143   :  { %v1903_v1 = vpack.c.bf16 %v1859_v40, %v1820_v23  ;;  %v1902_v41 = vpack.c.bf16 %v1845_v16, %v1817_v24  ;;  %v6290_v47 = vcombine.high %v7420_v53, %v1016_v17  ;;  %v6292_v45 = vcombine.high %v1020_v4, %v7417_v19  ;;  %v6813_v24 = vld [vmem:[#allocation3 + $0x230] ss:$8 sps:$4 sm:$0xff]  }
 0x144   :  { %v1540_v56 = vcombine.low %v1520_v26, %v1534_v63  ;;  %v1554_v5 = vrot.slane %v1537_v35, %v7163_v29  ;;  %v6294_v18 = vcombine.high %v7423_v54, %v1131_v31  ;;  %v6296_v12 = vcombine.high %v1135_v49, %v7464_v33  ;;  %v6818_v49 = vld [vmem:[#allocation3 + $0x244] ss:$8 sps:$4 sm:$0xff]  }
 0x145   :  { %2451 = vmatprep.mubr.bf16.mxu0 %v1903_v1  ;;  %v1609_v21 = vrot.slane %v6290_v47, %v7163_v29  ;;  %v1623_v60 = vrot.slane %v6292_v45, %v7163_v29  ;;  %v1587_v54 = vcombine.high %v7312_v15, %v7494_v57  ;;  %v1704_v33 = vcombine.high %v7505_v36, %v7530_v42  ;;  %v6812_v57 = vld [vmem:[#allocation3 + $0x224] ss:$8 sps:$4 sm:$0xff]   ;;  %v6822_v1 = vld [vmem:[#allocation3 + $0x260] ss:$8 sps:$4 sm:$0xff]  }
 0x146   :  { %2452 = vmatmul.mubr.bf16.gmra.mrb[8].mxu0 %v1902_v41  ;;  %v1575_v28 = vrot.slane %v1540_v56, %v7163_v29  ;;  %v1637_v53 = vrot.slane %v6294_v18, %v7163_v29  ;;  %v1651_v19 = vrot.slane %v6296_v12, %v7163_v29  ;;  %v1584_v36 = vcombine.high %v7315_v25, %v7497_v39  ;;  %v6824_v26 = vld [vmem:[#allocation3 + $0x264] ss:$8 sps:$4 sm:$0xff]  }
 0x147   :  { %2494 = vmatprep.mubr.bf16.mxu0 %v7262_v37  ;;  %v1654_v4 = vcombine.low %v1609_v21, %v1623_v60  ;;  %v6809_v37 = vld [vmem:[#allocation3 + $0x214] ss:$8 sps:$4 sm:$0xff]   ;;  %v1900_v61 = vpack.c.bf16 %v1704_v33, %v1587_v54  ;;  %v1701_v42 = vcombine.high %v7527_v10, %v7540_v55  ;;  %v1861_v38 = vcombine.high %v1859_v40, %v1859_v40  ;;  %v6816_v10 = vld [vmem:[#allocation3 + $0x240] ss:$8 sps:$4 sm:$0xff]  }
 0x148   :  { %v7663_v17 = vcombine.low %v1554_v5, %v1575_v28  ;;  %v1657_v31 = vcombine.low %v1637_v53, %v1651_v19  ;;  %v1821_v59 = vcombine.high %v7624_v9, %v1816_v6  ;;  %v1818_v25 = vcombine.high %v7634_v7, %v7637_v27  ;;  %v6821_v40 = vld [vmem:[#allocation3 + $0x254] ss:$8 sps:$4 sm:$0xff]   ;;  %v6819_v9 = vld [vmem:[#allocation3 + $0x250] ss:$8 sps:$4 sm:$0xff]   ;;  %v6828_v19 = vld [vmem:[#allocation5 + $0x40] sm:$0xff]  }
 0x149   :  { %v1671_v52 = vrot.slane %v1654_v4, %v7163_v29  ;;  %v1860_v39 = vcombine.high %v1845_v16, %v1845_v16  ;;  %v6939_v6 = vmov 0   ;;  %v1143_v63 = vcombine.high %v7428_v58, %v7428_v58  ;;  %v6827_v7 = vld [vmem:[#allocation3 + $0x274] ss:$8 sps:$4 sm:$0xff]   ;;  %v6825_v58 = vld [vmem:[#allocation3 + $0x270] ss:$8 sps:$4 sm:$0xff]   ;;  %6521 = vmatprep.subr.bf16.mxu1 %v6828_v19  ;;  %v6829_v4 = vld [vmem:[#allocation5] sm:$0xff]  }
 0x14a   :  { %v1692_v14 = vrot.slane %v1657_v31, %v7163_v29  ;;  %v1905_v23 = vpack.c.bf16 %v1861_v38, %v1821_v59  ;;  %v1235_v27 = vcombine.low %v7576_v22, %v7520_v8  ;;  %v1133_v41 = vcombine.low %v7511_v32, %v7514_v50  ;;  %6522 = vmatpush3.bf16.msra.mxu1 %v6829_v4  ;;  %v6831_v54 = vld [vmem:[#allocation5 + $0x8] sm:$0xff]   ;;  %v6832_v33 = vld [vmem:[#allocation5 + $0x50] sm:$0xff]   ;;  %v6834_v31 = vld [vmem:[#allocation5 + $0x58] sm:$0xff]  }
 0x14b   :  { %v1904_v55 = vpack.c.bf16 %v1860_v39, %v1818_v25  ;;  %v1185_v16 = vrot.slane %v1143_v63, %v7163_v29  ;;  %v1137_v35 = vcombine.low %v7533_v48, %v7543_v34  ;;  %v1232_v56 = vcombine.low %v7573_v20, %v7501_v11 }
 0x14c   :  { %v7671_v0 = vcombine.low %v1671_v52, %v1692_v14  ;;  %v6304_v47 = vcombine.high %v1235_v27, %v7501_v11  ;;  %v6298_v22 = vcombine.high %v7517_v13, %v1133_v41  ;;  %v6835_v52 = vld [vmem:[#allocation5 + $0x18] sm:$0xff]   ;;  %v6837_v14 = vld [vmem:[#allocation5 + $0x20] sm:$0xff]   ;;  %v8668_v38 = vsub.s32 0, %v7019_v2 }
 0x14d   :  { %v1224_v45 = vrot.slane %v1185_v16, %v7163_v29  ;;  %v6300_v5 = vcombine.high %v1137_v35, %v7514_v50  ;;  %v6302_v18 = vcombine.high %v7543_v34, %v1232_v56  ;;  %v8669_v59 = vsub.s32 1, %v7019_v2 }
 0x14e   :  { %2495 = vmatmul.mubr.bf16.vlgmr.msra.gmra.mrb[0].mxu0 %v7257_v51  ;;  %v1901_v15 = vpack.c.bf16 %v7671_v0, %v7663_v17  ;;  %v1899_v51 = vpack.c.bf16 %v1701_v42, %v1584_v36  ;;  %v1768_v32 = vrot.slane %v6304_v47, %v7163_v29  ;;  %v1726_v20 = vrot.slane %v6298_v22, %v7163_v29  ;;  %v6833_v17 = vld [vmem:[#allocation5 + $0x10] sm:$0xff]   ;;  %v6844_v36 = vld [vmem:[#allocation5 + $0xc0] sm:$0xff]  }
 0x14f   :  { %2526 = vmatpush1.bf16.msra.mxu0 %v6804_v44  ;;  %2504 = vmatprep.mubr.bf16.mxu0 %v1900_v61  ;;  %v1234_v48 = vcombine.low %v7594_v43, %v1224_v45  ;;  %v1740_v12 = vrot.slane %v6300_v5, %v7163_v29  ;;  %v1754_v11 = vrot.slane %v6302_v18, %v7163_v29  ;;  %v6836_v44 = vld [vmem:[#allocation5 + $0x60] sm:$0xff]   ;;  %v6839_v61 = vld [vmem:[#allocation5 + $0x28] sm:$0xff]   ;;  %v6840_v0 = vld [vmem:[#allocation5 + $0x70] sm:$0xff]  }
 0x150   :  { %2527 = vmatprep.subr.bf16.mxu0 %v6809_v37  ;;  %v6838_v37 = vld [vmem:[#allocation5 + $0x68] sm:$0xff]   ;;  %v1987_v42 = vld [vmem:[%s8654_s4] sm:$0x3] }
 0x151   :  { %v1774_v28 = vcombine.low %v1754_v11, %v1768_v32  ;;  %v1771_v13 = vcombine.low %v1726_v20, %v1740_v12  ;;  %v6306_v50 = vcombine.high %v7520_v8, %v1234_v48  ;;  %v6830_v8 = vld [vmem:[#allocation5 + $0x48] sm:$0xff]  }
 0x152   :  { %6523 = vmatprep.subr.bf16.mxu1 %v6830_v8 }
 0x153   :  { %2528 = vmatpush1.bf16.msra.mxu0 %v6807_v62  ;;  %v1809_v34 = vrot.slane %v1774_v28, %v7163_v29  ;;  %v1837_v43 = vrot.slane %v6306_v50, %v7163_v29  ;;  %6524 = vmatpush3.bf16.msra.mxu1 %v6831_v54  ;;  %v6841_v62 = vld [vmem:[#allocation5 + $0x30] sm:$0xff]  }
 0x154   :  { %2529 = vmatprep.subr.bf16.mxu0 %v6812_v57  ;;  %6525 = vmatprep.subr.bf16.mxu1 %v6832_v33  ;;  %v6843_v57 = vld [vmem:[#allocation5 + $0x38] sm:$0xff]  }
 0x155   :  { %v1852_v60 = vrot.slane %v1837_v43, %v7163_v29 }
 0x156   :  { %2505 = vmatmul.mubr.bf16.gmra.mrb[4].mxu0 %v1899_v51  ;;  %v7722_v51 = vrot.slane %v1987_v42, %v8669_v59 }
 0x157   :  { %2530 = vmatpush1.bf16.msra.mxu0 %v6810_v46  ;;  %2514 = vmatprep.mubr.bf16.mxu0 %v1905_v23  ;;  %v7718_v46 = vrot.slane %v1987_v42, %v8668_v38 }
 0x158   :  { %2531 = vmatprep.subr.bf16.mxu0 %v6815_v3  ;;  %6526 = vmatpush3.bf16.msra.mxu1 %v6833_v17 }
 0x159   :  { %6527 = vmatprep.subr.bf16.mxu1 %v6834_v31 }
 0x15b   :  { %2532 = vmatpush1.bf16.msra.mxu0 %v6813_v24 }
 0x15c   :  { %2533 = vmatprep.subr.bf16.mxu0 %v6818_v49  ;;  %6528 = vmatpush3.bf16.msra.mxu1 %v6835_v52 }
 0x15d   :  { %6529 = vmatprep.subr.bf16.mxu1 %v6836_v44 }
 0x15e   :  { %2515 = vmatmul.mubr.bf16.gmra.mrb[8].mxu0 %v1904_v55 }
 0x15f   :  { %2534 = vmatpush1.bf16.msra.mxu0 %v6816_v10  ;;  %2557 = vmatprep.mubr.bf16.mxu0 %v6939_v6 }
 0x160   :  { %2535 = vmatprep.subr.bf16.mxu0 %v6821_v40  ;;  %6530 = vmatpush3.bf16.msra.mxu1 %v6837_v14 }
 0x161   :  { %6531 = vmatprep.subr.bf16.mxu1 %v6838_v37 }
 0x163   :  { %2536 = vmatpush1.bf16.msra.mxu0 %v6819_v9 }
 0x164   :  { %2537 = vmatprep.subr.bf16.mxu0 %v6824_v26  ;;  %6532 = vmatpush3.bf16.msra.mxu1 %v6839_v61 }
 0x165   :  { %6533 = vmatprep.subr.bf16.mxu1 %v6840_v0 }
 0x167   :  { %2538 = vmatpush1.bf16.msra.mxu0 %v6822_v1 }
 0x168   :  { %2539 = vmatprep.subr.bf16.mxu0 %v6827_v7  ;;  %6534 = vmatpush3.bf16.msra.mxu1 %v6841_v62 }
 0x16b   :  { %2540 = vmatpush1.bf16.msra.mxu0 %v6825_v58 }
 0x16e   :  { %2558 = vmatmul.mubr.bf16.vlgmr.msra.gmra.mrb[0].mxu0 %v7648_v30  ;;  %v1788_v30 = vrot.slane %v1771_v13, %v7163_v29 }
 0x16f   :  { %2567 = vmatprep.mubr.bf16.mxu0 %v6939_v6 }
 0x170   :  { %v1819_v21 = vcombine.low %v1788_v30, %v1809_v34 }
 0x172   :  { %v1906_v53 = vpack.c.bf16 %v1852_v60, %v1819_v21 }
 0x176   :  { %2568 = vmatmul.mubr.bf16.gmra.mrb[4].mxu0 %v1901_v15  ;;  %v6842_v15 = vld [vmem:[#allocation5 + $0x78] sm:$0xff]  }
 0x177   :  { %2577 = vmatprep.mubr.bf16.mxu0 %v6939_v6  ;;  %6535 = vmatprep.subr.bf16.mxu1 %v6842_v15 }
 0x178   :  { %6536 = vmatpush3.bf16.msra.mxu1 %v6843_v57 }
 0x179   :  { %6555 = vmatprep.subr.bf16.mxu1 %v6844_v36 }
 0x17e   :  { %2578 = vmatmul.mubr.bf16.gmra.mrb[8].mxu0 %v1906_v53 }
 0x241   :  { %v2559_v3 = vpop.f32.mrb[0].mxu0 }
 0x242   :  { %v6662_v23 = vadd.f32 %v2559_v3, %v7718_v46  ;;  %v2561_v24 = vpop.f32.mrb[1].mxu0 }
 0x243   :  { %v6663_v49 = vadd.f32 %v2561_v24, %v7722_v51  ;;  %v2563_v25 = vpop.f32.mrb[2].mxu0 }
 0x244   :  { %v2588_v39 = vmax.f32 %v6662_v23, 0.0  ;;  %v6664_v10 = vadd.f32 %v2563_v25, %v7718_v46  ;;  %v2565_v55 = vpop.f32.mrb[3].mxu0 }
 0x245   :  { %v2589_v40 = vmax.f32 %v6663_v49, 0.0  ;;  %v6665_v9 = vadd.f32 %v2565_v55, %v7722_v51 }
 0x246   :  { %v2590_v6 = vmax.f32 %v6664_v10, 0.0 }
 0x247   :  { %v2612_v26 = vcombine.low %v2588_v39, %v2589_v40  ;;  %v2613_v63 = vcombine.high %v2588_v39, %v2589_v40  ;;  %v2591_v2 = vmax.f32 %v6665_v9, 0.0 }
 0x249   :  { %v2620_v1 = vrot.slane %v2612_v26, %v7163_v29  ;;  %v2627_v7 = vrot.slane %v2613_v63, %v7163_v29  ;;  %v2662_v27 = vcombine.low %v2590_v6, %v2591_v2  ;;  %v2663_v16 = vcombine.high %v2590_v6, %v2591_v2  ;;  %v2569_v41 = vpop.f32.mrb[4].mxu0 }
 0x24a   :  { %v7731_v35 = vadd.f32 %v2569_v41, %v7718_v46  ;;  %v2571_v56 = vpop.f32.mrb[5].mxu0 }
 0x24b   :  { %v2628_v58 = vcombine.high %v2620_v1, %v2620_v1  ;;  %v2629_v47 = vcombine.high %v2627_v7, %v2627_v7  ;;  %v2636_v45 = vrot.slane %v2620_v1, %v7163_v29  ;;  %v2643_v22 = vrot.slane %v2627_v7, %v7163_v29  ;;  %v7735_v5 = vpop.f32.mrb[6].mxu0 }
 0x24c   :  { %v2670_v18 = vrot.slane %v2662_v27, %v7163_v29  ;;  %v2677_v32 = vrot.slane %v2663_v16, %v7163_v29  ;;  %v2592_v48 = vmax.f32 %v7731_v35, 0.0  ;;  %v7741_v20 = vadd.f32 %v2571_v56, %v7722_v51  ;;  %v7743_v12 = vpop.f32.mrb[7].mxu0 }
 0x24d   :  { %v2650_v11 = vrot.slane %v2628_v58, %v7163_v29  ;;  %v2657_v28 = vrot.slane %v2629_v47, %v7163_v29  ;;  %v2658_v13 = vcombine.high %v2636_v45, %v2636_v45  ;;  %v2659_v50 = vcombine.high %v2643_v22, %v2643_v22 }
 0x24e   :  { %v2678_v34 = vcombine.high %v2670_v18, %v2670_v18  ;;  %v2679_v30 = vcombine.high %v2677_v32, %v2677_v32  ;;  %v2686_v43 = vrot.slane %v2670_v18, %v7163_v29  ;;  %v2693_v21 = vrot.slane %v2677_v32, %v7163_v29 }
 0x24f   :  { %v2660_v60 = vcombine.high %v2650_v11, %v2650_v11  ;;  %v2885_v53 = vcombine.low %v2636_v45, %v2650_v11  ;;  %v6387_v19 = vcombine.high %v2636_v45, %v2650_v11  ;;  %v2887_v4 = vcombine.low %v2643_v22, %v2657_v28 }
 0x250   :  { %v6388_v8 = vcombine.high %v2643_v22, %v2657_v28  ;;  %v3211_v54 = vcombine.low %v2650_v11, %v2658_v13  ;;  %v3213_v33 = vcombine.low %v2657_v28, %v2659_v50  ;;  %v2661_v17 = vcombine.high %v2657_v28, %v2657_v28 }
 0x251   :  { %v2895_v31 = vrot.slane %v2885_v53, %v7163_v29  ;;  %v7751_v52 = vrot.slane %v6387_v19, %v7163_v29  ;;  %v7754_v44 = vrot.slane %v2887_v4, %v7163_v29  ;;  %v3212_v14 = vcombine.low %v2660_v60, %v2643_v22  ;;  %v2579_v37 = vpop.f32.mrb[8].mxu0 }
 0x252   :  { %v7757_v61 = vrot.slane %v6388_v8, %v7163_v29  ;;  %v3221_v0 = vrot.slane %v3211_v54, %v7163_v29  ;;  %v7761_v62 = vrot.slane %v3213_v33, %v7163_v29  ;;  %v2700_v15 = vrot.slane %v2678_v34, %v7163_v29  ;;  %v2581_v57 = vpop.f32.mrb[9].mxu0 }
 0x253   :  { %v2917_v36 = vcombine.low %v2895_v31, %v7751_v52  ;;  %v2918_v42 = vcombine.high %v2895_v31, %v7751_v52  ;;  %v3228_v38 = vrot.slane %v3212_v14, %v7163_v29  ;;  %v2583_v3 = vpop.f32.mrb[10].mxu0  ;;  %v2707_v24 = vrot.slane %v2679_v30, %v7163_v29 }
 0x254   :  { %v2708_v49 = vcombine.high %v2686_v43, %v2686_v43  ;;  %v2709_v25 = vcombine.high %v2693_v21, %v2693_v21  ;;  %v2585_v39 = vpop.f32.mrb[11].mxu0  ;;  %v2710_v6 = vcombine.high %v2700_v15, %v2700_v15  ;;  %v2951_v26 = vcombine.low %v2686_v43, %v2700_v15 }
 0x255   :  { %v7773_v10 = vrot.slane %v2917_v36, %v7163_v29  ;;  %v7776_v55 = vrot.slane %v2918_v42, %v7163_v29  ;;  %v3243_v40 = vcombine.low %v3221_v0, %v3228_v38  ;;  %v3244_v9 = vcombine.high %v3221_v0, %v3228_v38 }
 0x256   :  { %v6389_v63 = vcombine.high %v2686_v43, %v2700_v15  ;;  %v2953_v2 = vcombine.low %v2693_v21, %v2707_v24  ;;  %v6390_v27 = vcombine.high %v2693_v21, %v2707_v24  ;;  %v3214_v16 = vcombine.low %v2661_v17, %v2686_v43 }
 0x257   :  { %v7779_v1 = vrot.slane %v3243_v40, %v7163_v29  ;;  %v7782_v7 = vrot.slane %v3244_v9, %v7163_v29  ;;  %v7785_v41 = vrot.slane %v2951_v26, %v7163_v29  ;;  %v3277_v47 = vcombine.low %v2700_v15, %v2708_v49 }
 0x258   :  { %v7788_v56 = vrot.slane %v6389_v63, %v7163_v29  ;;  %v7791_v58 = vrot.slane %v2953_v2, %v7163_v29  ;;  %v7794_v45 = vrot.slane %v6390_v27, %v7163_v29  ;;  %v7797_v22 = vrot.slane %v3214_v16, %v7163_v29 }
 0x259   :  { %v3278_v18 = vcombine.low %v2710_v6, %v2693_v21  ;;  %v3279_v32 = vcombine.low %v2707_v24, %v2709_v25  ;;  %v7800_v11 = vrot.slane %v3277_v47, %v7163_v29  ;;  %v2593_v28 = vmax.f32 %v7741_v20, 0.0 }
 0x25a   :  { %8670 = vst [vmem:[#allocation9_spill] sm:$0xff] %v7794_v45  ;;  %v2711_v13 = vcombine.high %v2707_v24, %v2707_v24  ;;  %v6668_v50 = vadd.f32 %v7735_v5, %v7718_v46  ;;  %v6669_v5 = vadd.f32 %v7743_v12, %v7722_v51  ;;  %v6670_v8 = vadd.f32 %v2579_v37, %v7718_v46 }
 0x25b   :  { %v7810_v43 = vrot.slane %v3278_v18, %v7163_v29  ;;  %v7813_v21 = vrot.slane %v3279_v32, %v7163_v29  ;;  %v2712_v60 = vcombine.low %v2592_v48, %v2593_v28  ;;  %v2713_v20 = vcombine.high %v2592_v48, %v2593_v28 }
 0x25c   :  { %v2594_v53 = vmax.f32 %v6668_v50, 0.0  ;;  %v6671_v54 = vadd.f32 %v2581_v57, %v7722_v51  ;;  %v2595_v35 = vmax.f32 %v6669_v5, 0.0  ;;  %v7830_v48 = vadd.f32 %v2583_v3, %v7718_v46 }
 0x25d   :  { %v2720_v33 = vrot.slane %v2712_v60, %v7163_v29  ;;  %v2727_v17 = vrot.slane %v2713_v20, %v7163_v29  ;;  %v2596_v31 = vmax.f32 %v6670_v8, 0.0  ;;  %v7833_v14 = vadd.f32 %v2585_v39, %v7722_v51 }
 0x25e   :  { %v2597_v12 = vmax.f32 %v6671_v54, 0.0  ;;  %v2919_v0 = vcombine.low %v7754_v44, %v7757_v61  ;;  %v2762_v42 = vcombine.low %v2594_v53, %v2595_v35  ;;  %v2763_v38 = vcombine.high %v2594_v53, %v2595_v35 }
 0x25f   :  { %v2728_v15 = vcombine.high %v2720_v33, %v2720_v33  ;;  %v2729_v37 = vcombine.high %v2727_v17, %v2727_v17  ;;  %v2736_v57 = vrot.slane %v2720_v33, %v7163_v29  ;;  %v2743_v36 = vrot.slane %v2727_v17, %v7163_v29 }
 0x260   :  { %v7839_v24 = vcombine.low %v2596_v31, %v2597_v12  ;;  %v7841_v46 = vcombine.high %v2596_v31, %v2597_v12  ;;  %v2770_v9 = vrot.slane %v2762_v42, %v7163_v29  ;;  %v2777_v6 = vrot.slane %v2763_v38, %v7163_v29 }
 0x261   :  { %v2750_v3 = vrot.slane %v2728_v15, %v7163_v29  ;;  %v2757_v51 = vrot.slane %v2729_v37, %v7163_v29  ;;  %v2758_v49 = vcombine.high %v2736_v57, %v2736_v57  ;;  %v2759_v25 = vcombine.high %v2743_v36, %v2743_v36 }
 0x262   :  { %v3280_v39 = vcombine.low %v2711_v13, %v2736_v57  ;;  %v3619_v40 = vrot.slane %v2743_v36, %v7163_v29  ;;  %v2778_v60 = vcombine.high %v2770_v9, %v2770_v9  ;;  %v2779_v15 = vcombine.high %v2777_v6, %v2777_v6 }
 0x263   :  { %v2760_v26 = vcombine.high %v2750_v3, %v2750_v3  ;;  %v2761_v63 = vcombine.high %v2757_v51, %v2757_v51  ;;  %v3017_v2 = vcombine.low %v2736_v57, %v2750_v3  ;;  %v3031_v27 = vrot.slane %v2758_v49, %v7163_v29 }
 0x264   :  { %v3048_v16 = vcombine.low %v2757_v51, %v2759_v25  ;;  %v7850_v47 = vrot.slane %v3280_v39, %v7163_v29  ;;  %v3343_v18 = vcombine.low %v2750_v3, %v2758_v49  ;;  %v6391_v32 = vcombine.high %v2743_v36, %v2757_v51 }
 0x265   :  { %v7853_v28 = vrot.slane %v3017_v2, %v7163_v29  ;;  %v3357_v13 = vrot.slane %v2760_v26, %v7163_v29  ;;  %v6396_v50 = vcombine.high %v2736_v57, %v2750_v3  ;;  %v2786_v37 = vrot.slane %v2770_v9, %v7163_v29 }
 0x266   :  { %v7857_v20 = vrot.slane %v3048_v16, %v7163_v29  ;;  %v3350_v8 = vrot.slane %v3343_v18, %v7163_v29  ;;  %v3384_v17 = vrot.slane %v6391_v32, %v7163_v29  ;;  %v2793_v49 = vrot.slane %v2777_v6, %v7163_v29 }
 0x267   :  { %v3032_v54 = vcombine.low %v7853_v28, %v3031_v27  ;;  %v3033_v33 = vcombine.high %v7853_v28, %v3031_v27  ;;  %v3612_v35 = vrot.slane %v6396_v50, %v7163_v29  ;;  %v2800_v25 = vrot.slane %v2778_v60, %v7163_v29 }
 0x268   :  { %v3358_v31 = vcombine.low %v3350_v8, %v3357_v13  ;;  %v3359_v12 = vcombine.high %v3350_v8, %v3357_v13  ;;  %v2807_v26 = vrot.slane %v2779_v15, %v7163_v29  ;;  %v2808_v2 = vcombine.high %v2786_v37, %v2786_v37 }
 0x269   :  { %v7870_v57 = vrot.slane %v3032_v54, %v7163_v29  ;;  %v7873_v36 = vrot.slane %v3033_v33, %v7163_v29  ;;  %v3620_v42 = vcombine.low %v3612_v35, %v3619_v40  ;;  %v3621_v38 = vcombine.high %v3612_v35, %v3619_v40 }
 0x26a   :  { %v7876_v3 = vrot.slane %v3358_v31, %v7163_v29  ;;  %v7879_v51 = vrot.slane %v3359_v12, %v7163_v29  ;;  %v2809_v27 = vcombine.high %v2793_v49, %v2793_v49  ;;  %v2810_v16 = vcombine.high %v2800_v25, %v2800_v25 }
 0x26b   :  { %v3628_v39 = vrot.slane %v3620_v42, %v7163_v29  ;;  %v3635_v9 = vrot.slane %v3621_v38, %v7163_v29  ;;  %v3049_v40 = vcombine.low %v2761_v63, %v2786_v37  ;;  %v3375_v18 = vcombine.low %v2786_v37, %v2800_v25 }
 0x26c   :  { %v3050_v13 = vcombine.low %v2800_v25, %v2808_v2  ;;  %v6392_v50 = vcombine.high %v2786_v37, %v2800_v25  ;;  %v3377_v8 = vcombine.low %v2793_v49, %v2807_v26  ;;  %v3051_v54 = vcombine.low %v2810_v16, %v2793_v49 }
 0x26d   :  { %v3973_v32 = vcombine.low %v3628_v39, %v3635_v9  ;;  %v7887_v6 = vrot.slane %v3049_v40, %v7163_v29  ;;  %v3114_v60 = vcombine.low %v2807_v26, %v2809_v27  ;;  %v3391_v33 = vrot.slane %v3375_v18, %v7163_v29 }
 0x26e   :  { %v7894_v31 = vrot.slane %v3050_v13, %v7163_v29  ;;  %v3398_v63 = vrot.slane %v6392_v50, %v7163_v29  ;;  %v3405_v12 = vrot.slane %v3377_v8, %v7163_v29  ;;  %v7899_v15 = vrot.slane %v3051_v54, %v7163_v29 }
 0x26f   :  { %v7891_v35 = vrot.slane %v3973_v32, %v7163_v29  ;;  %v7906_v38 = vrot.slane %v3114_v60, %v7163_v29  ;;  %v3406_v25 = vcombine.low %v3384_v17, %v3391_v33  ;;  %v3407_v39 = vcombine.high %v3384_v17, %v3391_v33 }
 0x270   :  { %v3408_v9 = vcombine.low %v3398_v63, %v3405_v12  ;;  %v3409_v2 = vcombine.high %v3398_v63, %v3405_v12  ;;  %v6393_v40 = vcombine.high %v2793_v49, %v2807_v26  ;;  %v2811_v12 = vcombine.high %v2807_v26, %v2807_v26 }
 0x271   :  { %v7915_v32 = vrot.slane %v3406_v25, %v7163_v29  ;;  %v7918_v13 = vrot.slane %v3407_v39, %v7163_v29  ;;  %v2820_v25 = vrot.slane %v7839_v24, %v7163_v29  ;;  %v2827_v39 = vrot.slane %v7841_v46, %v7163_v29 }
 0x272   :  { %v7921_v17 = vrot.slane %v3408_v9, %v7163_v29  ;;  %v7924_v50 = vrot.slane %v3409_v2, %v7163_v29  ;;  %v3450_v8 = vrot.slane %v6393_v40, %v7163_v29  ;;  %v2598_v9 = vmax.f32 %v7830_v48, 0.0 }
 0x273   :  { %v2599_v2 = vmax.f32 %v7833_v14, 0.0  ;;  %v2920_v40 = vcombine.high %v7754_v44, %v7757_v61  ;;  %v2828_v23 = vcombine.high %v2820_v25, %v2820_v25  ;;  %v2836_v59 = vrot.slane %v2820_v25, %v7163_v29 }
 0x274   :  { %v7950_v26 = vrot.slane %v2919_v0, %v7163_v29  ;;  %v2983_v24 = vcombine.low %v7785_v41, %v7788_v56  ;;  %v2829_v46 = vcombine.high %v2827_v39, %v2827_v39  ;;  %v2843_v48 = vrot.slane %v2827_v39, %v7163_v29 }
 0x275   :  { %v2862_v63 = vcombine.low %v2598_v9, %v2599_v2  ;;  %v7956_v14 = vrot.slane %v2920_v40, %v7163_v29  ;;  %v2850_v33 = vrot.slane %v2828_v23, %v7163_v29  ;;  %v2858_v60 = vcombine.high %v2836_v59, %v2836_v59 }
 0x276   :  { %v3115_v25 = vcombine.low %v2811_v12, %v2836_v59  ;;  %v2984_v54 = vcombine.high %v7785_v41, %v7788_v56  ;;  %v2857_v0 = vrot.slane %v2829_v46, %v7163_v29  ;;  %v2859_v49 = vcombine.high %v2843_v48, %v2843_v48 }
 0x277   :  { %v2869_v18 = vrot.slane %v2862_v63, %v7163_v29  ;;  %v2985_v16 = vcombine.low %v7791_v58, %v7794_v45  ;;  %v2860_v39 = vcombine.high %v2850_v33, %v2850_v33  ;;  %v3116_v9 = vcombine.low %v2850_v33, %v2858_v60 }
 0x278   :  { %v7966_v2 = vrot.slane %v3115_v25, %v7163_v29  ;;  %v3441_v40 = vcombine.low %v2836_v59, %v2850_v33  ;;  %v3180_v23 = vcombine.low %v2857_v0, %v2859_v49  ;;  %v6394_v27 = vcombine.high %v2836_v59, %v2850_v33 }
 0x279   :  { %v3443_v12 = vcombine.low %v2843_v48, %v2857_v0  ;;  %v2861_v42 = vcombine.high %v2857_v0, %v2857_v0  ;;  %v3117_v37 = vcombine.low %v2860_v39, %v2843_v48  ;;  %v7969_v5 = vrot.slane %v3116_v9, %v7163_v29 }
 0x27a   :  { %v7976_v60 = vrot.slane %v3180_v23, %v7163_v29  ;;  %v3457_v25 = vrot.slane %v3441_v40, %v7163_v29  ;;  %v3464_v49 = vrot.slane %v6394_v27, %v7163_v29  ;;  %v2870_v63 = vcombine.high %v2869_v18, %v2869_v18 }
 0x27b   :  { %v3471_v59 = vrot.slane %v3443_v12, %v7163_v29  ;;  %v7982_v33 = vrot.slane %v3117_v37, %v7163_v29  ;;  %v3194_v37 = vrot.slane %v2861_v42, %v7163_v29  ;;  %v6395_v27 = vcombine.high %v2843_v48, %v2857_v0 }
 0x27c   :  { %v3472_v46 = vcombine.low %v3450_v8, %v3457_v25  ;;  %v3473_v53 = vcombine.high %v3450_v8, %v3457_v25  ;;  %v2993_v12 = vrot.slane %v2983_v24, %v7163_v29 }
 0x27d   :  { %v3474_v23 = vcombine.low %v3464_v49, %v3471_v59  ;;  %v3475_v4 = vcombine.high %v3464_v49, %v3471_v59  ;;  %v2877_v49 = vrot.slane %v2869_v18, %v7163_v29  ;;  %v2884_v59 = vrot.slane %v2870_v63, %v7163_v29 }
 0x27e   :  { %v7997_v39 = vrot.slane %v3472_v46, %v7163_v29  ;;  %v8000_v9 = vrot.slane %v3473_v53, %v7163_v29  ;;  %v3196_v18 = vcombine.high %v7976_v60, %v3194_v37  ;;  %v3513_v63 = vrot.slane %v6395_v27, %v7163_v29 }
 0x27f   :  { %v8003_v8 = vrot.slane %v3474_v23, %v7163_v29  ;;  %v8006_v25 = vrot.slane %v3475_v4, %v7163_v29  ;;  %v2986_v23 = vcombine.high %v7791_v58, %v7794_v45  ;;  %v3195_v4 = vcombine.low %v7976_v60, %v3194_v37  ;;  %v6845_v45 = vld [vmem:[#allocation5 + $0x80] sm:$0xff]  }
 0x280   :  { %v3520_v40 = vrot.slane %v2877_v49, %v7163_v29  ;;  %v3704_v48 = vcombine.low %v2861_v42, %v2877_v49  ;;  %v3718_v0 = vrot.slane %v2884_v59, %v7163_v29  ;;  %v3000_v46 = vrot.slane %v2984_v54, %v7163_v29 }
 0x281   :  { %v3007_v53 = vrot.slane %v2985_v16, %v7163_v29  ;;  %v8026_v19 = vrot.slane %v3195_v4, %v7163_v29  ;;  %v8029_v24 = vrot.slane %v3196_v18, %v7163_v29  ;;  %v3014_v27 = vrot.slane %v2986_v23, %v7163_v29 }
 0x282   :  { %v3521_v30 = vcombine.low %v3513_v63, %v3520_v40  ;;  %v3522_v34 = vcombine.high %v3513_v63, %v3520_v40  ;;  %v3711_v37 = vrot.slane %v3704_v48, %v7163_v29  ;;  %v8671_v42 = vcombine.low %v7761_v62, %v7797_v22 }
 0x283   :  { %v8672_v16 = vcombine.high %v7761_v62, %v7797_v22  ;;  %v8673_v23 = vcombine.low %v7800_v11, %v7810_v43  ;;  %v8675_v22 = vcombine.low %v7813_v21, %v7850_v47 }
 0x284   :  { %v3267_v49 = vrot.slane %v8671_v42, %v7163_v29  ;;  %v3529_v59 = vrot.slane %v3521_v30, %v7163_v29  ;;  %v3536_v4 = vrot.slane %v3522_v34, %v7163_v29  ;;  %v3719_v63 = vcombine.low %v3711_v37, %v3718_v0 }
 0x285   :  { %v3274_v54 = vrot.slane %v8672_v16, %v7163_v29  ;;  %v3319_v18 = vrot.slane %v8673_v23, %v7163_v29  ;;  %v3720_v48 = vcombine.high %v3711_v37, %v3718_v0  ;;  %v8674_v42 = vcombine.high %v7800_v11, %v7810_v43 }
 0x286   :  { %v3333_v34 = vrot.slane %v8675_v22, %v7163_v29  ;;  %v4266_v30 = vcombine.low %v3529_v59, %v3536_v4  ;;  %v8676_v16 = vcombine.high %v7813_v21, %v7850_v47  ;;  %v6397_v23 = vcombine.low %v7773_v10, %v7776_v55 }
 0x287   :  { %v3326_v62 = vrot.slane %v8674_v42, %v7163_v29  ;;  %v6398_v0 = vcombine.low %v7950_v26, %v7956_v14  ;;  %v3727_v11 = vrot.slane %v3719_v63, %v7163_v29  ;;  %v3734_v43 = vrot.slane %v3720_v48, %v7163_v29 }
 0x288   :  { %v3340_v40 = vrot.slane %v8676_v16, %v7163_v29  ;;  %v6399_v37 = vcombine.low %v7779_v1, %v7782_v7  ;;  %v6400_v42 = vcombine.low %v3267_v49, %v3274_v54  ;;  %v8070_v59 = vrot.slane %v4266_v30, %v7163_v29 }
 0x289   :  { %v3747_v21 = vrot.slane %v6397_v23, %v7163_v29  ;;  %v3754_v47 = vrot.slane %v6398_v0, %v7163_v29  ;;  %v6403_v4 = vcombine.low %v2993_v12, %v3000_v46  ;;  %v4267_v10 = vcombine.low %v3727_v11, %v3734_v43 }
 0x28a   :  { %v3761_v55 = vrot.slane %v6399_v37, %v7163_v29  ;;  %v3768_v26 = vrot.slane %v6400_v42, %v7163_v29  ;;  %v6404_v14 = vcombine.low %v3007_v53, %v3014_v27  ;;  %v6405_v63 = vcombine.low %v3319_v18, %v3326_v62 }
 0x28b   :  { %v6406_v48 = vcombine.low %v3333_v34, %v3340_v40  ;;  %v3865_v22 = vrot.slane %v6403_v4, %v7163_v29  ;;  %v8677_v1 = vcombine.low %v7857_v20, %v7887_v6  ;;  %v8084_v49 = vrot.slane %v4267_v10, %v7163_v29 }
 0x28c   :  { %v3783_v12 = vcombine.low %v3747_v21, %v3761_v55  ;;  %v3784_v46 = vcombine.high %v3747_v21, %v3761_v55  ;;  %v3785_v54 = vcombine.low %v3754_v47, %v3768_v26  ;;  %v3786_v30 = vcombine.high %v3754_v47, %v3768_v26 }
 0x28d   :  { %v8081_v7 = vrot.slane %v8677_v1, %v7163_v29  ;;  %v3872_v16 = vrot.slane %v6404_v14, %v7163_v29  ;;  %v3879_v53 = vrot.slane %v6405_v63, %v7163_v29  ;;  %v3886_v27 = vrot.slane %v6406_v48, %v7163_v29 }
 0x28e   :  { %v3795_v40 = vrot.slane %v3783_v12, %v7163_v29  ;;  %v3802_v18 = vrot.slane %v3785_v54, %v7163_v29  ;;  %v3809_v62 = vrot.slane %v3784_v46, %v7163_v29  ;;  %v8678_v34 = vcombine.high %v7857_v20, %v7887_v6 }
 0x28f   :  { %v3816_v0 = vrot.slane %v3786_v30, %v7163_v29  ;;  %v3901_v11 = vcombine.low %v3865_v22, %v3879_v53  ;;  %v3902_v43 = vcombine.high %v3865_v22, %v3879_v53  ;;  %v3903_v37 = vcombine.low %v3872_v16, %v3886_v27 }
 0x290   :  { %v8096_v23 = vrot.slane %v8678_v34, %v7163_v29  ;;  %v3904_v42 = vcombine.high %v3872_v16, %v3886_v27  ;;  %v6421_v21 = vcombine.low %v3795_v40, %v3809_v62  ;;  %v6423_v47 = vcombine.high %v3795_v40, %v3809_v62 }
 0x291   :  { %v8679_v4 = vcombine.low %v7894_v31, %v7899_v15  ;;  %v3913_v55 = vrot.slane %v3901_v11, %v7163_v29  ;;  %v3920_v20 = vrot.slane %v3903_v37, %v7163_v29  ;;  %v3927_v26 = vrot.slane %v3902_v43, %v7163_v29 }
 0x292   :  { %v6425_v14 = vcombine.low %v3802_v18, %v3816_v0  ;;  %v3934_v63 = vrot.slane %v3904_v42, %v7163_v29  ;;  %v6427_v48 = vcombine.high %v3802_v18, %v3816_v0  ;;  %v4337_v22 = vrot.slane %v6421_v21, %v7163_v29 }
 0x293   :  { %v8103_v10 = vrot.slane %v8679_v4, %v7163_v29  ;;  %v4351_v1 = vrot.slane %v6423_v47, %v7163_v29  ;;  %v6429_v46 = vcombine.low %v3913_v55, %v3927_v26  ;;  %v6431_v54 = vcombine.high %v3913_v55, %v3927_v26 }
 0x294   :  { %v4365_v12 = vrot.slane %v6425_v14, %v7163_v29  ;;  %v8680_v30 = vcombine.high %v7894_v31, %v7899_v15  ;;  %v4379_v53 = vrot.slane %v6427_v48, %v7163_v29  ;;  %v6433_v40 = vcombine.low %v3920_v20, %v3934_v63 }
 0x295   :  { %v4388_v27 = vcombine.high %v4337_v22, %v4351_v1  ;;  %v6435_v62 = vcombine.high %v3920_v20, %v3934_v63  ;;  %v4471_v18 = vrot.slane %v6429_v46, %v7163_v29  ;;  %v4485_v34 = vrot.slane %v6431_v54, %v7163_v29 }
 0x296   :  { %v3111_v16 = vrot.slane %v8680_v30, %v7163_v29  ;;  %v4387_v0 = vcombine.low %v4337_v22, %v4351_v1  ;;  %v8681_v11 = vcombine.low %v7906_v38, %v7966_v2  ;;  %v4392_v37 = vcombine.high %v4365_v12, %v4379_v53 }
 0x297   :  { %v8126_v42 = vrot.slane %v4388_v27, %v7163_v29  ;;  %v4499_v21 = vrot.slane %v6433_v40, %v7163_v29  ;;  %v4513_v47 = vrot.slane %v6435_v62, %v7163_v29  ;;  %v4522_v4 = vcombine.high %v4471_v18, %v4485_v34 }
 0x298   :  { %v8123_v43 = vrot.slane %v8681_v11, %v7163_v29  ;;  %v4391_v55 = vcombine.low %v4365_v12, %v4379_v53  ;;  %v8131_v20 = vrot.slane %v4387_v0, %v7163_v29  ;;  %v4521_v26 = vcombine.low %v4471_v18, %v4485_v34 }
 0x299   :  { %v8134_v14 = vrot.slane %v4392_v37, %v7163_v29  ;;  %v4526_v63 = vcombine.high %v4499_v21, %v4513_v47  ;;  %v4525_v48 = vcombine.low %v4499_v21, %v4513_v47  ;;  %v8682_v22 = vcombine.high %v7906_v38, %v7966_v2 }
 0x29a   :  { %v8143_v46 = vrot.slane %v4522_v4, %v7163_v29  ;;  %v8146_v12 = vrot.slane %v4391_v55, %v7163_v29  ;;  %v8149_v54 = vrot.slane %v4521_v26, %v7163_v29  ;;  %v8683_v30 = vcombine.low %v7969_v5, %v7982_v33 }
 0x29b   :  { %v8140_v1 = vrot.slane %v8682_v22, %v7163_v29  ;;  %v4454_v27 = vcombine.low %v8126_v42, %v8134_v14  ;;  %v8160_v40 = vrot.slane %v4526_v63, %v7163_v29  ;;  %v8163_v62 = vrot.slane %v4525_v48, %v7163_v29 }
 0x29c   :  { %v8155_v53 = vrot.slane %v8683_v30, %v7163_v29  ;;  %v8684_v18 = vcombine.high %v7969_v5, %v7982_v33  ;;  %v4451_v0 = vcombine.low %v8131_v20, %v8146_v12  ;;  %v8685_v37 = vcombine.low %v7887_v6, %v7894_v31 }
 0x29d   :  { %v8686_v47 = vcombine.high %v7887_v6, %v7894_v31  ;;  %v4588_v55 = vcombine.low %v8143_v46, %v8160_v40  ;;  %v4585_v26 = vcombine.low %v8149_v54, %v8163_v62  ;;  %v8687_v48 = vcombine.low %v7899_v15, %v7906_v38 }
 0x29e   :  { %v8169_v34 = vrot.slane %v8684_v18, %v7163_v29  ;;  %v3646_v21 = vrot.slane %v8685_v37, %v7163_v29  ;;  %v8688_v30 = vcombine.high %v7899_v15, %v7906_v38  ;;  %v8689_v31 = vcombine.low %v7966_v2, %v7969_v5 }
 0x29f   :  { %v3653_v4 = vrot.slane %v8686_v47, %v7163_v29  ;;  %v3660_v22 = vrot.slane %v8687_v48, %v7163_v29  ;;  %v8690_v37 = vcombine.high %v7966_v2, %v7969_v5  ;;  %v3971_v63 = vcombine.low %v7870_v57, %v7873_v36 }
 0x2a0   :  { %v3667_v6 = vrot.slane %v8688_v30, %v7163_v29  ;;  %v3680_v18 = vrot.slane %v8689_v31, %v7163_v29  ;;  %v5006_v11 = vpack.c.bf16 %v4588_v55, %v4454_v27  ;;  %v5005_v48 = vpack.c.bf16 %v4585_v26, %v4451_v0  ;;  %v6846_v30 = vld [vmem:[#allocation5 + $0xc8] sm:$0xff]  }
 0x2a1   :  { %v3687_v47 = vrot.slane %v8690_v37, %v7163_v29  ;;  %v3972_v15 = vcombine.low %v7876_v3, %v7879_v51  ;;  %v8211_v38 = vrot.slane %v7891_v35, %v7163_v29  ;;  %v3980_v31 = vrot.slane %v3971_v63, %v7163_v29 }
 0x2a2   :  { %v6409_v5 = vcombine.low %v8081_v7, %v8096_v23  ;;  %v6410_v2 = vcombine.low %v8103_v10, %v3111_v16  ;;  %v6413_v37 = vcombine.low %v3646_v21, %v3653_v4  ;;  %5446 = vmatprep.mubr.bf16.mxu1 %v5006_v11  ;;  %v6414_v36 = vcombine.low %v3660_v22, %v3667_v6  ;;  %v6847_v11 = vld [vmem:[#allocation5 + $0x88] sm:$0xff]  }
 0x2a3   :  { %v3987_v57 = vrot.slane %v3972_v15, %v7163_v29  ;;  %v8691_v3 = vcombine.low %v7915_v32, %v7918_v13  ;;  %v8692_v27 = vcombine.low %v7921_v17, %v7924_v50  ;;  %5447 = vmatmul.mubr.bf16.vlgmr.msra.gmra.mrb[0].mxu1 %v5005_v48  ;;  %v6415_v16 = vcombine.low %v8123_v43, %v8140_v1  ;;  %v6848_v50 = vld [vmem:[#allocation5 + $0xd0] sm:$0xff]  }
 0x2a4   :  { %v4041_v7 = vrot.slane %v6409_v5, %v7163_v29  ;;  %v4048_v23 = vrot.slane %v6410_v2, %v7163_v29  ;;  %v4069_v10 = vrot.slane %v6413_v37, %v7163_v29  ;;  %6556 = vmatpush3.bf16.msra.mxu1 %v6845_v45  ;;  %v4076_v13 = vrot.slane %v6414_v36, %v7163_v29  ;;  %v6849_v15 = vld [vmem:[#allocation5 + $0x90] sm:$0xff]  }
 0x2a5   :  { %v4055_v51 = vrot.slane %v8691_v3, %v7163_v29  ;;  %v4062_v0 = vrot.slane %v8692_v27, %v7163_v29  ;;  %v3995_v21 = vcombine.low %v3980_v31, %v3987_v57  ;;  %v3996_v32 = vcombine.high %v3980_v31, %v3987_v57  ;;  %6557 = vmatprep.subr.bf16.mxu1 %v6846_v30 }
 0x2a6   :  { %v6416_v17 = vcombine.low %v8155_v53, %v8169_v34  ;;  %v4081_v43 = vcombine.high %v4069_v10, %v4069_v10  ;;  %v4082_v45 = vcombine.high %v4076_v13, %v4076_v13  ;;  %v8250_v31 = vrot.slane %v4069_v10, %v7163_v29 }
 0x2a7   :  { %v4077_v4 = vcombine.low %v4041_v7, %v4055_v51  ;;  %v4078_v55 = vcombine.high %v4041_v7, %v4055_v51  ;;  %v4079_v26 = vcombine.low %v4048_v23, %v4062_v0  ;;  %v4080_v63 = vcombine.high %v4048_v23, %v4062_v0  ;;  %v6850_v51 = vld [vmem:[#allocation5 + $0xd8] sm:$0xff]  }
 0x2a8   :  { %v4004_v22 = vrot.slane %v3995_v21, %v7163_v29  ;;  %v4011_v6 = vrot.slane %v3996_v32, %v7163_v29  ;;  %6558 = vmatpush3.bf16.msra.mxu1 %v6847_v11  ;;  %v8253_v5 = vrot.slane %v4076_v13, %v7163_v29  ;;  %v8256_v2 = vrot.slane %v4081_v43, %v7163_v29 }
 0x2a9   :  { %v8237_v1 = vrot.slane %v4077_v4, %v7163_v29  ;;  %v8240_v48 = vrot.slane %v4079_v26, %v7163_v29  ;;  %v8243_v53 = vrot.slane %v4078_v55, %v7163_v29  ;;  %v8246_v34 = vrot.slane %v4080_v63, %v7163_v29  ;;  %6559 = vmatprep.subr.bf16.mxu1 %v6848_v50 }
 0x2aa   :  { %v4027_v30 = vcombine.high %v4004_v22, %v8211_v38  ;;  %v8259_v37 = vrot.slane %v4082_v45, %v7163_v29  ;;  %v6419_v57 = vcombine.low %v3680_v18, %v3687_v47  ;;  %v4159_v36 = vrot.slane %v6415_v16, %v7163_v29 }
 0x2ab   :  { %v8263_v3 = vrot.slane %v6416_v17, %v7163_v29  ;;  %v4140_v27 = vcombine.high %v8237_v1, %v8250_v31  ;;  %v4142_v0 = vcombine.high %v8240_v48, %v8253_v5  ;;  %v4144_v7 = vcombine.high %v8243_v53, %v8256_v2 }
 0x2ac   :  { %v8693_v23 = vcombine.low %v7997_v39, %v8000_v9  ;;  %v4146_v47 = vcombine.high %v8246_v34, %v8259_v37  ;;  %v8694_v10 = vcombine.low %v8003_v8, %v8006_v25  ;;  %v4187_v11 = vrot.slane %v6419_v57, %v7163_v29  ;;  %6560 = vmatpush3.bf16.msra.mxu1 %v6849_v15  ;;  %v6851_v9 = vld [vmem:[#allocation5 + $0x98] sm:$0xff]   ;;  %v6852_v25 = vld [vmem:[#allocation5 + $0xe0] sm:$0xff]  }
 0x2ad   :  { %v6437_v21 = vcombine.low %v4004_v22, %v4011_v6  ;;  %v6439_v17 = vcombine.low %v4027_v30, %v8237_v1  ;;  %v6441_v39 = vcombine.low %v8243_v53, %v4140_v27  ;;  %v6443_v8 = vcombine.low %v4144_v7, %v8240_v48  ;;  %6561 = vmatprep.subr.bf16.mxu1 %v6850_v51  ;;  %v6853_v7 = vld [vmem:[#allocation5 + $0xa0] sm:$0xff]  }
 0x2ae   :  { %v4173_v18 = vrot.slane %v8693_v23, %v7163_v29  ;;  %v8281_v16 = vrot.slane %v8694_v10, %v7163_v29  ;;  %v4199_v4 = vcombine.high %v4187_v11, %v4187_v11  ;;  %v8289_v55 = vrot.slane %v4187_v11, %v7163_v29 }
 0x2af   :  { %v4605_v22 = vrot.slane %v6437_v21, %v7163_v29  ;;  %v4619_v6 = vrot.slane %v6439_v17, %v7163_v29  ;;  %v4633_v15 = vrot.slane %v6441_v39, %v7163_v29  ;;  %v4647_v30 = vrot.slane %v6443_v8, %v7163_v29  ;;  %v6854_v21 = vld [vmem:[#allocation5 + $0xe8] sm:$0xff]  }
 0x2b0   :  { %v4195_v32 = vcombine.low %v4159_v36, %v4173_v18  ;;  %v4196_v13 = vcombine.high %v4159_v36, %v4173_v18  ;;  %v4197_v50 = vcombine.low %v8263_v3, %v8281_v16  ;;  %v8304_v45 = vrot.slane %v4199_v4, %v7163_v29  ;;  %6562 = vmatpush3.bf16.msra.mxu1 %v6851_v9 }
 0x2b1   :  { %v4656_v36 = vcombine.high %v4605_v22, %v4619_v6  ;;  %v6445_v51 = vcombine.low %v8246_v34, %v4142_v0  ;;  %v4660_v18 = vcombine.high %v4633_v15, %v4647_v30  ;;  %v4655_v10 = vcombine.low %v4605_v22, %v4619_v6  ;;  %6563 = vmatprep.subr.bf16.mxu1 %v6852_v25 }
 0x2b2   :  { %v8293_v26 = vrot.slane %v4195_v32, %v7163_v29  ;;  %v8296_v63 = vrot.slane %v4196_v13, %v7163_v29  ;;  %v8301_v43 = vrot.slane %v4197_v50, %v7163_v29  ;;  %v4659_v11 = vcombine.low %v4633_v15, %v4647_v30  ;;  %v6855_v15 = vld [vmem:[#allocation5 + $0xa8] sm:$0xff]  }
 0x2b3   :  { %v4683_v32 = vrot.slane %v4656_v36, %v7163_v29  ;;  %v4739_v17 = vrot.slane %v6445_v51, %v7163_v29  ;;  %v8321_v9 = vrot.slane %v4655_v10, %v7163_v29  ;;  %v8695_v22 = vcombine.low %v7982_v33, %v7976_v60 }
 0x2b4   :  { %v4258_v57 = vcombine.high %v8293_v26, %v8289_v55  ;;  %v6447_v27 = vcombine.low %v4146_v47, %v8293_v26  ;;  %v4262_v23 = vcombine.high %v8296_v63, %v8304_v45  ;;  %v4711_v47 = vrot.slane %v4660_v18, %v7163_v29  ;;  %6564 = vmatpush3.bf16.msra.mxu1 %v6853_v7 }
 0x2b5   :  { %v8324_v50 = vrot.slane %v4659_v11, %v7163_v29  ;;  %v3694_v6 = vrot.slane %v8695_v22, %v7163_v29  ;;  %v8696_v51 = vcombine.high %v7982_v33, %v7976_v60  ;;  %6565 = vmatprep.subr.bf16.mxu1 %v6854_v21  ;;  %v4198_v7 = vcombine.high %v8263_v3, %v8281_v16  ;;  %v6858_v22 = vld [vmem:[#allocation5 + $0xf8] sm:$0xff]  }
 0x2b6   :  { %v6449_v13 = vcombine.low %v8296_v63, %v4258_v57  ;;  %v4753_v0 = vrot.slane %v6447_v27, %v7163_v29  ;;  %v6451_v39 = vcombine.low %v4262_v23, %v8301_v43  ;;  %v4722_v30 = vcombine.low %v4683_v32, %v4711_v47  ;;  %v6856_v23 = vld [vmem:[#allocation5 + $0xf0] sm:$0xff]  }
 0x2b7   :  { %v4719_v36 = vcombine.low %v8321_v9, %v8324_v50  ;;  %v3701_v27 = vrot.slane %v8696_v51, %v7163_v29  ;;  %v8697_v11 = vcombine.low %v8026_v19, %v8029_v24  ;;  %v8348_v60 = vrot.slane %v8084_v49, %v7163_v29  ;;  %v6857_v19 = vld [vmem:[#allocation5 + $0xb0] sm:$0xff]  }
 0x2b8   :  { %v4767_v4 = vrot.slane %v6449_v13, %v7163_v29  ;;  %v4790_v8 = vcombine.high %v4739_v17, %v4753_v0  ;;  %v4789_v25 = vcombine.low %v4739_v17, %v4753_v0  ;;  %v4781_v57 = vrot.slane %v6451_v39, %v7163_v29  ;;  %6566 = vmatpush3.bf16.msra.mxu1 %v6855_v15 }
 0x2b9   :  { %v4274_v13 = vrot.slane %v8697_v11, %v7163_v29  ;;  %v6420_v39 = vcombine.low %v3694_v6, %v3701_v27  ;;  %v8351_v33 = vrot.slane %v4198_v7, %v7163_v29  ;;  %v4455_v3 = vcombine.high %v8126_v42, %v8134_v14  ;;  %6567 = vmatprep.subr.bf16.mxu1 %v6856_v23 }
 0x2ba   :  { %v4817_v18 = vrot.slane %v4790_v8, %v7163_v29  ;;  %v4803_v10 = vrot.slane %v4789_v25, %v7163_v29  ;;  %v4794_v17 = vcombine.high %v4767_v4, %v4781_v57  ;;  %v4793_v0 = vcombine.low %v4767_v4, %v4781_v57 }
 0x2bb   :  { %v4289_v21 = vcombine.low %v4274_v13, %v8070_v59  ;;  %v4290_v8 = vcombine.high %v4274_v13, %v8070_v59  ;;  %v4194_v4 = vrot.slane %v6420_v39, %v7163_v29  ;;  %v4589_v25 = vcombine.high %v8143_v46, %v8160_v40 }
 0x2bc   :  { %v4845_v24 = vrot.slane %v4794_v17, %v7163_v29  ;;  %v4831_v16 = vrot.slane %v4793_v0, %v7163_v29  ;;  %v8698_v42 = vcombine.high %v8131_v20, %v8146_v12  ;;  %v8699_v14 = vcombine.high %v8149_v54, %v8163_v62  ;;  %6568 = vmatpush3.bf16.msra.mxu1 %v6857_v19  ;;  %v6860_v17 = vld [vmem:[#allocation5 + $0x140] sm:$0xff]  }
 0x2bd   :  { %v8363_v6 = vrot.slane %v4289_v21, %v7163_v29  ;;  %v8366_v59 = vrot.slane %v4290_v8, %v7163_v29  ;;  %v4723_v57 = vcombine.high %v4683_v32, %v4711_v47  ;;  %v4200_v46 = vcombine.high %v4194_v4, %v4194_v4  ;;  %6569 = vmatprep.subr.bf16.mxu1 %v6858_v22  ;;  %v6859_v47 = vld [vmem:[#allocation5 + $0xb8] sm:$0xff]  }
 0x2be   :  { %v8374_v15 = vpack.c.bf16 %v8699_v14, %v8698_v42  ;;  %v4856_v51 = vcombine.low %v4817_v18, %v4845_v24  ;;  %v4853_v27 = vcombine.low %v4803_v10, %v4831_v16  ;;  %v8377_v40 = vrot.slane %v4194_v4, %v7163_v29 }
 0x2bf   :  { %v4321_v23 = vcombine.high %v8363_v6, %v8348_v60  ;;  %v8381_v7 = vpack.c.bf16 %v4589_v25, %v4455_v3  ;;  %v4857_v11 = vcombine.high %v4817_v18, %v4845_v24  ;;  %v4720_v20 = vcombine.high %v8321_v9, %v8324_v50 }
 0x2c0   :  { %v5012_v12 = vpack.c.bf16 %v4856_v51, %v4722_v30  ;;  %v5011_v54 = vpack.c.bf16 %v4853_v27, %v4719_v36  ;;  %v8386_v62 = vrot.slane %v4200_v46, %v7163_v29  ;;  %v4260_v32 = vcombine.high %v8301_v43, %v8377_v40  ;;  %6570 = vmatpush3.bf16.msra.mxu1 %v6859_v47 }
 0x2c1   :  { %v6457_v13 = vcombine.low %v8366_v59, %v4321_v23  ;;  %v8391_v0 = vpack.c.bf16 %v4857_v11, %v4723_v57  ;;  %v4854_v39 = vcombine.high %v4803_v10, %v4831_v16  ;;  %v3539_v18 = vcombine.low %v7757_v61, %v7785_v41  ;;  %6589 = vmatprep.subr.bf16.mxu1 %v6860_v17 }
 0x2c2   :  { %5454 = vmatprep.mubr.bf16.mxu1 %v5012_v12  ;;  %v4264_v9 = vcombine.high %v8351_v33, %v8386_v62  ;;  %v6453_v50 = vcombine.low %v8351_v33, %v4260_v32  ;;  %v3540_v30 = vcombine.high %v7757_v61, %v7785_v41  ;;  %v8700_v36 = vcombine.low %v7751_v52, %v7754_v44 }
 0x2c3   :  { %5455 = vmatmul.mubr.bf16.gmra.mrb[4].mxu1 %v5011_v54  ;;  %v4899_v10 = vrot.slane %v6457_v13, %v7163_v29  ;;  %v8405_v8 = vpack.c.bf16 %v4854_v39, %v4720_v20  ;;  %v8701_v3 = vcombine.high %v7751_v52, %v7754_v44  ;;  %v3561_v24 = vrot.slane %v3539_v18, %v7163_v29  ;;  %v8702_v52 = vld [vmem:[#allocation9_spill] sm:$0xff] }
 0x2c4   :  { %v3547_v21 = vrot.slane %v8700_v36, %v7163_v29  ;;  %v6455_v16 = vcombine.low %v4264_v9, %v8363_v6  ;;  %v4871_v61 = vrot.slane %v6453_v50, %v7163_v29  ;;  %v3568_v41 = vrot.slane %v3540_v30, %v7163_v29 }
 0x2c5   :  { %v3554_v19 = vrot.slane %v8701_v3, %v7163_v29  ;;  %v3571_v4 = vcombine.low %v7788_v56, %v7791_v58  ;;  %v4911_v25 = vcombine.high %v4899_v10, %v4899_v10  ;;  %v3572_v22 = vcombine.high %v7788_v56, %v7791_v58 }
 0x2c6   :  { %v3573_v44 = vcombine.low %v8702_v52, %v7853_v28  ;;  %v4885_v42 = vrot.slane %v6455_v16, %v7163_v29  ;;  %v3574_v14 = vcombine.high %v8702_v52, %v7853_v28  ;;  %v4947_v27 = vrot.slane %v4899_v10, %v7163_v29 }
 0x2c7   :  { %v3581_v57 = vrot.slane %v3571_v4, %v7163_v29  ;;  %v6401_v51 = vcombine.low %v3547_v21, %v3554_v19  ;;  %v3588_v46 = vrot.slane %v3572_v22, %v7163_v29  ;;  %v6402_v11 = vcombine.low %v3561_v24, %v3568_v41 }
 0x2c8   :  { %v3595_v23 = vrot.slane %v3573_v44, %v7163_v29  ;;  %v4908_v20 = vcombine.high %v4871_v61, %v4885_v42  ;;  %v4907_v56 = vcombine.low %v4871_v61, %v4885_v42  ;;  %v3602_v58 = vrot.slane %v3574_v14, %v7163_v29 }
 0x2c9   :  { %v3775_v12 = vrot.slane %v6401_v51, %v7163_v29  ;;  %v4961_v54 = vrot.slane %v4911_v25, %v7163_v29  ;;  %v3782_v28 = vrot.slane %v6402_v11, %v7163_v29  ;;  %v6407_v32 = vcombine.low %v3581_v57, %v3588_v46 }
 0x2ca   :  { %v4139_v47 = vcombine.low %v8237_v1, %v8250_v31  ;;  %v4933_v13 = vrot.slane %v4908_v20, %v7163_v29  ;;  %v4919_v17 = vrot.slane %v4907_v56, %v7163_v29  ;;  %v3997_v18 = vcombine.high %v7891_v35, %v7891_v35  ;;  %v6865_v1 = vld [vmem:[#allocation5 + $0x110] sm:$0xff]  }
 0x2cb   :  { %v3787_v39 = vcombine.high %v3775_v12, %v3775_v12  ;;  %v3788_v9 = vcombine.high %v3782_v28, %v3782_v28  ;;  %v3823_v50 = vrot.slane %v3775_v12, %v7163_v29  ;;  %v6408_v30 = vcombine.low %v3595_v23, %v3602_v58 }
 0x2cc   :  { %v3893_v36 = vrot.slane %v6407_v32, %v7163_v29  ;;  %v4972_v21 = vcombine.low %v4933_v13, %v4961_v54  ;;  %v4969_v10 = vcombine.low %v4919_v17, %v4947_v27  ;;  %v8440_v3 = vcombine.high %v4933_v13, %v4961_v54 }
 0x2cd   :  { %v8442_v19 = vcombine.high %v4919_v17, %v4947_v27  ;;  %v3837_v24 = vrot.slane %v3787_v39, %v7163_v29  ;;  %v3844_v16 = vrot.slane %v3788_v9, %v7163_v29  ;;  %v3900_v61 = vrot.slane %v6408_v30, %v7163_v29 }
 0x2ce   :  { %v3905_v41 = vcombine.high %v3893_v36, %v3893_v36  ;;  %v5018_v35 = vpack.c.bf16 %v4972_v21, %v4972_v21  ;;  %v5017_v4 = vpack.c.bf16 %v4969_v10, %v4969_v10  ;;  %v5020_v25 = vpack.c.bf16 %v8440_v3, %v8440_v3 }
 0x2cf   :  { %v3830_v22 = vrot.slane %v3782_v28, %v7163_v29  ;;  %v3906_v52 = vcombine.high %v3900_v61, %v3900_v61  ;;  %v3941_v44 = vrot.slane %v3893_v36, %v7163_v29  ;;  %v3948_v42 = vrot.slane %v3900_v61, %v7163_v29 }
 0x2d0   :  { %v3955_v14 = vrot.slane %v3905_v41, %v7163_v29  ;;  %5462 = vmatprep.mubr.bf16.mxu1 %v5018_v35  ;;  %v6422_v57 = vcombine.low %v3823_v50, %v3837_v24  ;;  %v6424_v51 = vcombine.high %v3823_v50, %v3837_v24  ;;  %v4025_v56 = vrot.slane %v3997_v18, %v7163_v29  ;;  %v6861_v24 = vld [vmem:[#allocation5 + $0x100] sm:$0xff]  }
 0x2d1   :  { %v6426_v27 = vcombine.low %v3830_v22, %v3844_v16  ;;  %v6428_v46 = vcombine.high %v3830_v22, %v3844_v16  ;;  %5463 = vmatmul.mubr.bf16.gmra.mrb[8].mxu1 %v5017_v4  ;;  %v3962_v23 = vrot.slane %v3906_v52, %v7163_v29  ;;  %v6862_v4 = vld [vmem:[#allocation5 + $0x148] sm:$0xff]  }
 0x2d2   :  { %v6430_v11 = vcombine.low %v3941_v44, %v3955_v14  ;;  %v6432_v20 = vcombine.high %v3941_v44, %v3955_v14  ;;  %5502 = vmatprep.mubr.bf16.mxu1 %v8381_v7  ;;  %v4344_v58 = vrot.slane %v6422_v57, %v7163_v29  ;;  %v4358_v12 = vrot.slane %v6424_v51, %v7163_v29 }
 0x2d3   :  { %v4372_v54 = vrot.slane %v6426_v27, %v7163_v29  ;;  %v4386_v28 = vrot.slane %v6428_v46, %v7163_v29  ;;  %v6434_v32 = vcombine.low %v3948_v42, %v3962_v23  ;;  %v6436_v13 = vcombine.high %v3948_v42, %v3962_v23 }
 0x2d4   :  { %v4478_v17 = vrot.slane %v6430_v11, %v7163_v29  ;;  %v4492_v39 = vrot.slane %v6432_v20, %v7163_v29  ;;  %v4389_v9 = vcombine.low %v4344_v58, %v4358_v12  ;;  %v4390_v50 = vcombine.high %v4344_v58, %v4358_v12  ;;  %v6863_v58 = vld [vmem:[#allocation5 + $0x108] sm:$0xff]   ;;  %v6864_v12 = vld [vmem:[#allocation5 + $0x150] sm:$0xff]  }
 0x2d5   :  { %v4393_v30 = vcombine.low %v4372_v54, %v4386_v28  ;;  %v4394_v18 = vcombine.high %v4372_v54, %v4386_v28  ;;  %v4506_v7 = vrot.slane %v6434_v32, %v7163_v29  ;;  %v4520_v36 = vrot.slane %v6436_v13, %v7163_v29 }
 0x2d6   :  { %v4523_v21 = vcombine.low %v4478_v17, %v4492_v39  ;;  %v4524_v10 = vcombine.high %v4478_v17, %v4492_v39  ;;  %v4422_v16 = vrot.slane %v4390_v50, %v7163_v29  ;;  %v4408_v41 = vrot.slane %v4389_v9, %v7163_v29 }
 0x2d7   :  { %v4450_v61 = vrot.slane %v4394_v18, %v7163_v29  ;;  %v4436_v35 = vrot.slane %v4393_v30, %v7163_v29  ;;  %v4527_v22 = vcombine.low %v4506_v7, %v4520_v36  ;;  %v4528_v52 = vcombine.high %v4506_v7, %v4520_v36 }
 0x2d8   :  { %v4556_v44 = vrot.slane %v4524_v10, %v7163_v29  ;;  %v4542_v42 = vrot.slane %v4523_v21, %v7163_v29  ;;  %v4141_v51 = vcombine.low %v8240_v48, %v8253_v5  ;;  %v4143_v27 = vcombine.low %v8243_v53, %v8256_v2 }
 0x2d9   :  { %v4456_v14 = vcombine.low %v4422_v16, %v4450_v61  ;;  %v4453_v57 = vcombine.low %v4408_v41, %v4436_v35  ;;  %5503 = vmatmul.mubr.bf16.vlgmr.msra.gmra.mrb[12].mxu1 %v8374_v15  ;;  %v4584_v46 = vrot.slane %v4528_v52, %v7163_v29  ;;  %v4570_v23 = vrot.slane %v4527_v22, %v7163_v29  ;;  %v6868_v35 = vld [vmem:[#allocation5 + $0x160] sm:$0xff]  }
 0x2da   :  { %v4145_v11 = vcombine.low %v8246_v34, %v8259_v37  ;;  %v4257_v20 = vcombine.low %v8293_v26, %v8289_v55  ;;  %5510 = vmatprep.mubr.bf16.mxu1 %v8391_v0  ;;  %6590 = vmatpush3.bf16.msra.mxu1 %v6861_v24  ;;  %v4259_v48 = vcombine.low %v8301_v43, %v8377_v40 }
 0x2db   :  { %v4261_v53 = vcombine.low %v8296_v63, %v8304_v45  ;;  %v6438_v15 = vcombine.low %v8211_v38, %v4025_v56  ;;  %6591 = vmatprep.subr.bf16.mxu1 %v6862_v4  ;;  %v4590_v54 = vcombine.low %v4556_v44, %v4584_v46  ;;  %v4587_v28 = vcombine.low %v4542_v42, %v4570_v23 }
 0x2dc   :  { %v6440_v34 = vcombine.high %v8211_v38, %v4139_v47  ;;  %v6442_v26 = vcombine.high %v4143_v27, %v8250_v31  ;;  %v6444_v0 = vcombine.high %v8256_v2, %v4141_v51  ;;  %v6446_v32 = vcombine.high %v4145_v11, %v8253_v5  ;;  %v6866_v5 = vld [vmem:[#allocation5 + $0x158] sm:$0xff]   ;;  %v6869_v27 = vld [vmem:[#allocation5 + $0x120] sm:$0xff]   ;;  %v6870_v11 = vld [vmem:[#allocation5 + $0x168] sm:$0xff]  }
 0x2dd   :  { %v4612_v43 = vrot.slane %v6438_v15, %v7163_v29  ;;  %v6448_v63 = vcombine.high %v8259_v37, %v4257_v20  ;;  %v5010_v56 = vpack.c.bf16 %v4590_v54, %v4456_v14  ;;  %v8496_v13 = vpack.c.bf16 %v4587_v28, %v4453_v57 }
 0x2de   :  { %v4626_v17 = vrot.slane %v6440_v34, %v7163_v29  ;;  %v4640_v39 = vrot.slane %v6442_v26, %v7163_v29  ;;  %6592 = vmatpush3.bf16.msra.mxu1 %v6863_v58  ;;  %v4654_v38 = vrot.slane %v6444_v0, %v7163_v29  ;;  %v6450_v31 = vcombine.high %v4261_v53, %v8289_v55 }
 0x2df   :  { %v6452_v2 = vcombine.high %v8304_v45, %v4259_v48  ;;  %v4746_v47 = vrot.slane %v6446_v32, %v7163_v29  ;;  %6593 = vmatprep.subr.bf16.mxu1 %v6864_v12  ;;  %v4760_v9 = vrot.slane %v6448_v63, %v7163_v29  ;;  %v4263_v30 = vcombine.low %v8351_v33, %v8386_v62  ;;  %v6867_v33 = vld [vmem:[#allocation5 + $0x118] sm:$0xff]  }
 0x2e0   :  { %v4658_v37 = vcombine.high %v4612_v43, %v4626_v17  ;;  %v4657_v50 = vcombine.low %v4612_v43, %v4626_v17  ;;  %v4662_v18 = vcombine.high %v4640_v39, %v4654_v38  ;;  %v4774_v7 = vrot.slane %v6450_v31, %v7163_v29  ;;  %v6873_v43 = vld [vmem:[#allocation5 + $0x130] sm:$0xff]   ;;  %v6875_v17 = vld [vmem:[#allocation5 + $0x138] sm:$0xff]  }
 0x2e1   :  { %v4788_v36 = vrot.slane %v6452_v2, %v7163_v29  ;;  %v4661_v21 = vcombine.low %v4640_v39, %v4654_v38  ;;  %5511 = vmatmul.mubr.bf16.gmra.mrb[16].mxu1 %v8405_v8  ;;  %v4792_v45 = vcombine.high %v4746_v47, %v4760_v9  ;;  %v4791_v24 = vcombine.low %v4746_v47, %v4760_v9  ;;  %v6876_v38 = vld [vmem:[%s8657_s7] sm:$0xff]   ;;  %v6878_v2 = vld [vmem:[%s8657_s7 + $0x10] sm:$0xff]   ;;  %v6879_v47 = vld [vmem:[%s8657_s7 + $0x18] sm:$0xff]  }
 0x2e2   :  { %v4690_v55 = vrot.slane %v4658_v37, %v7163_v29  ;;  %v4676_v10 = vrot.slane %v4657_v50, %v7163_v29  ;;  %5518 = vmatprep.mubr.bf16.mxu1 %v5020_v25  ;;  %6594 = vmatpush3.bf16.msra.mxu1 %v6865_v1  ;;  %v4718_v16 = vrot.slane %v4662_v18, %v7163_v29  ;;  %v6940_v31 = vmov 0.0   ;;  %v6881_v37 = vld [vmem:[%s8657_s7 + $0x28] sm:$0xff]   ;;  %v6882_v9 = vld [vmem:[%s8657_s7 + $0x30] sm:$0xff]   ;;  %v6883_v50 = vld [vmem:[%s8657_s7 + $0x38] sm:$0xff]  }
 0x2e3   :  { %v4796_v61 = vcombine.high %v4774_v7, %v4788_v36  ;;  %v4704_v41 = vrot.slane %v4661_v21, %v7163_v29  ;;  %6595 = vmatprep.subr.bf16.mxu1 %v6866_v5  ;;  %v4824_v8 = vrot.slane %v4792_v45, %v7163_v29  ;;  %v4795_v4 = vcombine.low %v4774_v7, %v4788_v36  ;;  %v6880_v5 = vld [vmem:[%s8657_s7 + $0x20] sm:$0xff]  }
 0x2e4   :  { %v4291_v22 = vcombine.high %v8084_v49, %v8084_v49  ;;  %v4724_v52 = vcombine.low %v4690_v55, %v4718_v16  ;;  %v4320_v25 = vcombine.low %v8363_v6, %v8348_v60  ;;  %v4810_v42 = vrot.slane %v4791_v24, %v7163_v29 }
 0x2e5   :  { %v4852_v44 = vrot.slane %v4796_v61, %v7163_v29  ;;  %v4721_v3 = vcombine.low %v4676_v10, %v4704_v41  ;;  %v4838_v14 = vrot.slane %v4795_v4, %v7163_v29  ;;  %v6454_v51 = vcombine.high %v4263_v30, %v8377_v40 }
 0x2e6   :  { %v4319_v57 = vrot.slane %v4291_v22, %v7163_v29  ;;  %6596 = vmatpush3.bf16.msra.mxu1 %v6867_v33  ;;  %v6456_v49 = vcombine.high %v8386_v62, %v4320_v25  ;;  %v5019_v23 = vpack.c.bf16 %v8442_v19, %v8442_v19  ;;  %v6871_v62 = vld [vmem:[#allocation5 + $0x128] sm:$0xff]   ;;  %v6872_v19 = vld [vmem:[#allocation5 + $0x170] sm:$0xff]  }
 0x2e7   :  { %v4858_v46 = vcombine.low %v4824_v8, %v4852_v44  ;;  %6597 = vmatprep.subr.bf16.mxu1 %v6868_v35  ;;  %v4855_v20 = vcombine.low %v4810_v42, %v4838_v14  ;;  %v4878_v58 = vrot.slane %v6454_v51, %v7163_v29 }
 0x2e8   :  { %v4322_v6 = vcombine.low %v8366_v59, %v4319_v57  ;;  %v4892_v53 = vrot.slane %v6456_v49, %v7163_v29 }
 0x2e9   :  { %v5016_v48 = vpack.c.bf16 %v4858_v46, %v4724_v52  ;;  %5519 = vmatmul.mubr.bf16.gmra.mrb[20].mxu1 %v5019_v23  ;;  %v5015_v40 = vpack.c.bf16 %v4855_v20, %v4721_v3  ;;  %v6459_v52 = vld [vmem:[%s8656_s6] ss:$0 sm:$0xff] }
 0x2ea   :  { %v6458_v15 = vcombine.high %v4322_v6, %v8348_v60  ;;  %6598 = vmatpush3.bf16.msra.mxu1 %v6869_v27  ;;  %5558 = vmatprep.mubr.bf16.mxu1 %v5010_v56  ;;  %v4910_v12 = vcombine.high %v4878_v58, %v4892_v53  ;;  %v4909_v54 = vcombine.low %v4878_v58, %v4892_v53  ;;  %v6874_v60 = vld [vmem:[#allocation5 + $0x178] sm:$0xff]  }
 0x2eb   :  { %6599 = vmatprep.subr.bf16.mxu1 %v6870_v11 }
 0x2ec   :  { %v4906_v28 = vrot.slane %v6458_v15, %v7163_v29  ;;  %v4926_v59 = vrot.slane %v4909_v54, %v7163_v29  ;;  %v4940_v26 = vrot.slane %v4910_v12, %v7163_v29 }
 0x2ee   :  { %v4912_v34 = vcombine.high %v4906_v28, %v4906_v28  ;;  %v4954_v0 = vrot.slane %v4906_v28, %v7163_v29  ;;  %6600 = vmatpush3.bf16.msra.mxu1 %v6871_v62 }
 0x2ef   :  { %6601 = vmatprep.subr.bf16.mxu1 %v6872_v19 }
 0x2f0   :  { %v4968_v32 = vrot.slane %v4912_v34, %v7163_v29  ;;  %v4971_v63 = vcombine.low %v4926_v59, %v4954_v0 }
 0x2f2   :  { %v4974_v56 = vcombine.low %v4940_v26, %v4968_v32  ;;  %6602 = vmatpush3.bf16.msra.mxu1 %v6873_v43  ;;  %v5021_v1 = vpack.c.bf16 %v4971_v63, %v4971_v63 }
 0x2f3   :  { %6603 = vmatprep.subr.bf16.mxu1 %v6874_v60 }
 0x2f4   :  { %v5022_v39 = vpack.c.bf16 %v4974_v56, %v4974_v56 }
 0x2f6   :  { %6604 = vmatpush3.bf16.msra.mxu1 %v6875_v17 }
 0x2f7   :  { %6634 = vmatprep.subr.bf16.mxu1 %v6940_v31 }
 0x2f9   :  { %5559 = vmatmul.mubr.bf16.vlgmr.msra.gmra.mrb[24].mxu1 %v8496_v13  ;;  %v6877_v13 = vld [vmem:[%s8657_s7 + $0x8] sm:$0xff]  }
 0x2fa   :  { %5566 = vmatprep.mubr.bf16.mxu1 %v5016_v48  ;;  %6635 = vmatpush3.bf16.msra.mxu1 %v6876_v38 }
 0x2fb   :  { %6636 = vmatprep.subr.bf16.mxu1 %v6940_v31 }
 0x2fe   :  { %6637 = vmatpush3.bf16.msra.mxu1 %v6877_v13 }
 0x2ff   :  { %6638 = vmatprep.subr.bf16.mxu1 %v6940_v31 }
 0x301   :  { %5567 = vmatmul.mubr.bf16.gmra.mrb[28].mxu1 %v5015_v40 }
 0x302   :  { %5574 = vmatprep.mubr.bf16.mxu1 %v5022_v39  ;;  %6639 = vmatpush3.bf16.msra.mxu1 %v6878_v2 }
 0x303   :  { %6640 = vmatprep.subr.bf16.mxu1 %v6940_v31 }
 0x306   :  { %6641 = vmatpush3.bf16.msra.mxu1 %v6879_v47 }
 0x307   :  { %6642 = vmatprep.subr.bf16.mxu1 %v6940_v31 }
 0x309   :  { %5575 = vmatmul.mubr.bf16.gmra.mrb[32].mxu1 %v5021_v1 }
 0x30a   :  { %6643 = vmatpush3.bf16.msra.mxu1 %v6880_v5  ;;  %6650 = vmatprep.mubr.msk.bf16.mxu1 %vm6941_vm4, %v6940_v31 }
 0x30b   :  { %6644 = vmatprep.subr.bf16.mxu1 %v6940_v31 }
 0x30e   :  { %6645 = vmatpush3.bf16.msra.mxu1 %v6881_v37 }
 0x30f   :  { %6646 = vmatprep.subr.bf16.mxu1 %v6940_v31 }
 0x312   :  { %6647 = vmatpush3.bf16.msra.mxu1 %v6882_v9 }
 0x313   :  { %6648 = vmatprep.subr.bf16.mxu1 %v6940_v31 }
 0x316   :  { %6649 = vmatpush3.bf16.msra.mxu1 %v6883_v50 }
 0x376   :  { %v6537_v30 = vpop.f32.mrb[0].mxu1 }
 0x377   :  { %v6538_v18 = vpop.f32.mrb[1].mxu1 }
 0x378   :  { %v6539_v7 = vadd.f32 %v6538_v18, %v6537_v30  ;;  %v6540_v36 = vpop.f32.mrb[2].mxu1 }
 0x379   :  { %v6541_v21 = vpop.f32.mrb[3].mxu1 }
 0x37a   :  { %v6542_v55 = vadd.f32 %v6541_v21, %v6540_v36  ;;  %v5449_v25 = vadd.f32 %v6539_v7, %v6459_v52 }
 0x37c   :  { %v5452_v51 = vadd.f32 %v6542_v55, %v6459_v52 }
 0x396   :  { %v6543_v45 = vpop.f32.mrb[4].mxu1 }
 0x397   :  { %v6544_v10 = vpop.f32.mrb[5].mxu1 }
 0x398   :  { %v6545_v24 = vadd.f32 %v6544_v10, %v6543_v45  ;;  %v6546_v33 = vpop.f32.mrb[6].mxu1 }
 0x399   :  { %v6547_v16 = vpop.f32.mrb[7].mxu1 }
 0x39a   :  { %v6548_v61 = vadd.f32 %v6547_v16, %v6546_v33  ;;  %v5457_v20 = vadd.f32 %v6545_v24, %v6459_v52 }
 0x39c   :  { %v5460_v53 = vadd.f32 %v6548_v61, %v6459_v52 }
 0x3a4   :  { %v6549_v41 = vpop.f32.mrb[8].mxu1 }
 0x3a5   :  { %v6550_v35 = vpop.f32.mrb[9].mxu1 }
 0x3a6   :  { %v6551_v8 = vadd.f32 %v6550_v35, %v6549_v41  ;;  %v6552_v4 = vpop.f32.mrb[10].mxu1 }
 0x3a7   :  { %v6553_v22 = vpop.f32.mrb[11].mxu1 }
 0x3a8   :  { %v5465_v19 = vadd.f32 %v6551_v8, %v6459_v52 }
 0x3ac   :  { %v6571_v44 = vpop.f32.mrb[12].mxu1 }
 0x3ad   :  { %v6572_v3 = vpop.f32.mrb[13].mxu1 }
 0x3ae   :  { %v6573_v42 = vadd.f32 %v6572_v3, %v6571_v44  ;;  %v6574_v14 = vpop.f32.mrb[14].mxu1 }
 0x3af   :  { %v6575_v57 = vpop.f32.mrb[15].mxu1 }
 0x3b0   :  { %v5505_v27 = vadd.f32 %v6573_v42, %v5449_v25  ;;  %v6576_v46 = vadd.f32 %v6575_v57, %v6574_v14 }
 0x3b2   :  { %v5508_v49 = vadd.f32 %v6576_v46, %v5452_v51 }
 0x3b4   :  { %v6577_v23 = vpop.f32.mrb[16].mxu1 }
 0x3b5   :  { %v6578_v11 = vpop.f32.mrb[17].mxu1 }
 0x3b6   :  { %v6579_v6 = vadd.f32 %v6578_v11, %v6577_v23  ;;  %v6580_v58 = vpop.f32.mrb[18].mxu1 }
 0x3b7   :  { %v6581_v48 = vpop.f32.mrb[19].mxu1 }
 0x3b8   :  { %v5513_v40 = vadd.f32 %v6579_v6, %v5457_v20  ;;  %v6582_v15 = vadd.f32 %v6581_v48, %v6580_v58 }
 0x3ba   :  { %v5516_v62 = vadd.f32 %v6582_v15, %v5460_v53 }
 0x3bc   :  { %v6583_v12 = vpop.f32.mrb[20].mxu1 }
 0x3bd   :  { %v6584_v54 = vpop.f32.mrb[21].mxu1 }
 0x3be   :  { %v6585_v28 = vadd.f32 %v6584_v54, %v6583_v12  ;;  %v6586_v59 = vpop.f32.mrb[22].mxu1 }
 0x3bf   :  { %v6587_v34 = vpop.f32.mrb[23].mxu1 }
 0x3c0   :  { %v5521_v26 = vadd.f32 %v6585_v28, %v5465_v19 }
 0x3cc   :  { %v6605_v0 = vpop.f32.mrb[24].mxu1 }
 0x3cd   :  { %v6606_v43 = vpop.f32.mrb[25].mxu1 }
 0x3ce   :  { %v6607_v60 = vadd.f32 %v6606_v43, %v6605_v0  ;;  %v6608_v32 = vpop.f32.mrb[26].mxu1 }
 0x3cf   :  { %v6609_v63 = vpop.f32.mrb[27].mxu1 }
 0x3d0   :  { %v5561_v56 = vadd.f32 %v6607_v60, %v5505_v27  ;;  %v6610_v17 = vadd.f32 %v6609_v63, %v6608_v32 }
 0x3d2   :  { %v5564_v39 = vadd.f32 %v6610_v17, %v5508_v49  ;;  %v5582_v1 = vmax.f32 %v5561_v56, 0.0 }
 0x3d4   :  { %v5583_v38 = vmax.f32 %v5564_v39, 0.0  ;;  %v6611_v13 = vpop.f32.mrb[28].mxu1 }
 0x3d5   :  { %v6612_v2 = vpop.f32.mrb[29].mxu1 }
 0x3d6   :  { %v5587_v47 = vpack.c.bf16 %v5583_v38, %v5582_v1  ;;  %v6613_v5 = vadd.f32 %v6612_v2, %v6611_v13  ;;  %v6614_v37 = vpop.f32.mrb[30].mxu1 }
 0x3d7   :  { %v6615_v9 = vpop.f32.mrb[31].mxu1 }
 0x3d8   :  { %v5569_v50 = vadd.f32 %v6613_v5, %v5513_v40  ;;  %v6616_v30 = vadd.f32 %v6615_v9, %v6614_v37  ;;  %6651 = vmatmul.mubr.bf16.vlgmr.msra.gmra.mrb[36].mxu1 %v5587_v47 }
 0x3d9   :  { %6654 = vmatprep.mubr.msk.bf16.mxu1 %vm6941_vm4, %v6940_v31 }
 0x3da   :  { %v5572_v18 = vadd.f32 %v6616_v30, %v5516_v62  ;;  %v5584_v7 = vmax.f32 %v5569_v50, 0.0 }
 0x3dc   :  { %v5585_v36 = vmax.f32 %v5572_v18, 0.0  ;;  %v6617_v21 = vpop.f32.mrb[32].mxu1 }
 0x3dd   :  { %v6618_v55 = vpop.f32.mrb[33].mxu1 }
 0x3de   :  { %v6619_v45 = vadd.f32 %v6618_v55, %v6617_v21  ;;  %v6620_v10 = vpop.f32.mrb[34].mxu1  ;;  %v5588_v24 = vpack.c.bf16 %v5585_v36, %v5584_v7 }
 0x3df   :  { %v6621_v33 = vpop.f32.mrb[35].mxu1 }
 0x3e0   :  { %v5577_v16 = vadd.f32 %v6619_v45, %v5521_v26  ;;  %6655 = vmatmul.mubr.bf16.gmra.mrb[40].mxu1 %v5588_v24 }
 0x3e1   :  { %6658 = vmatprep.mubr.msk.bf16.mxu1 %vm6941_vm4, %v6940_v31 }
 0x3e2   :  { %v5586_v61 = vmax.f32 %v5577_v16, 0.0 }
 0x3e4   :  { %v5589_v41 = vpack.c.bf16 %v5586_v61, %v5586_v61 }
 0x3e8   :  { %6659 = vmatmul.mubr.bf16.gmra.mrb[44].mxu1 %v5589_v41 }
 0x4ab   :  { %v5688_v35 = vpop.f32.mrb[36].mxu1 }
 0x4ac   :  { %v5715_v8 = vcombine.high %v5688_v35, %v5688_v35  ;;  %v5722_v4 = vrot.slane %v5688_v35, %v7163_v29  ;;  %v6652_v22 = vpop.f32.mrb[37].mxu1 }
 0x4ad   :  { %v5691_v52 = vpop.f32.mrb[38].mxu1 }
 0x4ae   :  { %v5729_v44 = vrot.slane %v5715_v8, %v7163_v29  ;;  %v5730_v3 = vcombine.high %v5722_v4, %v5722_v4  ;;  %v5764_v25 = vcombine.high %v5691_v52, %v5691_v52  ;;  %v6653_v42 = vpop.f32.mrb[39].mxu1  ;;  %v5771_v14 = vrot.slane %v5691_v52, %v7163_v29 }
 0x4af   :  { %v5738_v51 = vrot.slane %v5722_v4, %v7163_v29 }
 0x4b0   :  { %v5731_v57 = vcombine.high %v5729_v44, %v5729_v44  ;;  %v5752_v31 = vrot.slane %v5730_v3, %v7163_v29  ;;  %v5778_v27 = vrot.slane %v5764_v25, %v7163_v29  ;;  %v5745_v46 = vrot.slane %v5729_v44, %v7163_v29 }
 0x4b1   :  { %v5779_v49 = vcombine.high %v5771_v14, %v5771_v14  ;;  %v5787_v58 = vrot.slane %v5771_v14, %v7163_v29 }
 0x4b2   :  { %v5759_v23 = vrot.slane %v5731_v57, %v7163_v29  ;;  %v5958_v11 = vcombine.low %v5738_v51, %v5752_v31  ;;  %v6516_v20 = vcombine.high %v5738_v51, %v5752_v31  ;;  %v5780_v6 = vcombine.high %v5778_v27, %v5778_v27 }
 0x4b3   :  { %v5794_v48 = vrot.slane %v5778_v27, %v7163_v29  ;;  %v5801_v53 = vrot.slane %v5779_v49, %v7163_v29  ;;  %v5696_v40 = vpop.f32.mrb[40].mxu1 }
 0x4b4   :  { %v5960_v15 = vcombine.low %v5745_v46, %v5759_v23  ;;  %v6517_v62 = vcombine.high %v5745_v46, %v5759_v23  ;;  %v5968_v12 = vrot.slane %v5958_v11, %v7163_v29  ;;  %v5975_v54 = vrot.slane %v6516_v20, %v7163_v29  ;;  %v6656_v19 = vpop.f32.mrb[41].mxu1 }
 0x4b5   :  { %v5808_v28 = vrot.slane %v5780_v6, %v7163_v29  ;;  %v6007_v59 = vcombine.low %v5787_v58, %v5801_v53  ;;  %v6518_v34 = vcombine.high %v5787_v58, %v5801_v53  ;;  %v5813_v26 = vcombine.high %v5696_v40, %v5696_v40  ;;  %v5699_v0 = vpop.f32.mrb[42].mxu1 }
 0x4b6   :  { %v5982_v43 = vrot.slane %v5960_v15, %v7163_v29  ;;  %v5989_v60 = vrot.slane %v6517_v62, %v7163_v29  ;;  %v5990_v32 = vcombine.low %v5968_v12, %v5975_v54  ;;  %v5820_v63 = vrot.slane %v5696_v40, %v7163_v29  ;;  %v6657_v56 = vpop.f32.mrb[43].mxu1 }
 0x4b7   :  { %v6009_v17 = vcombine.low %v5794_v48, %v5808_v28  ;;  %v6519_v39 = vcombine.high %v5794_v48, %v5808_v28  ;;  %v6017_v1 = vrot.slane %v6007_v59, %v7163_v29  ;;  %v6024_v38 = vrot.slane %v6518_v34, %v7163_v29 }
 0x4b8   :  { %v5991_v13 = vcombine.low %v5982_v43, %v5989_v60  ;;  %v5998_v2 = vrot.slane %v5990_v32, %v7163_v29  ;;  %v5827_v47 = vrot.slane %v5813_v26, %v7163_v29  ;;  %v5828_v5 = vcombine.high %v5820_v63, %v5820_v63 }
 0x4b9   :  { %v6031_v37 = vrot.slane %v6009_v17, %v7163_v29  ;;  %v6038_v9 = vrot.slane %v6519_v39, %v7163_v29  ;;  %v6039_v50 = vcombine.low %v6017_v1, %v6024_v38  ;;  %v5836_v30 = vrot.slane %v5820_v63, %v7163_v29 }
 0x4ba   :  { %v6005_v18 = vrot.slane %v5991_v13, %v7163_v29  ;;  %v5829_v7 = vcombine.high %v5827_v47, %v5827_v47  ;;  %v5843_v36 = vrot.slane %v5827_v47, %v7163_v29  ;;  %v5850_v21 = vrot.slane %v5828_v5, %v7163_v29 }
 0x4bb   :  { %v6040_v55 = vcombine.low %v6031_v37, %v6038_v9  ;;  %v5858_v45 = vcombine.high %v5836_v30, %v5836_v30  ;;  %v5862_v10 = vcombine.high %v5699_v0, %v5699_v0  ;;  %v5704_v24 = vpop.f32.mrb[44].mxu1  ;;  %v6047_v8 = vrot.slane %v6039_v50, %v7163_v29 }
 0x4bc   :  { %v6006_v33 = vcombine.low %v5998_v2, %v6005_v18  ;;  %v5857_v16 = vrot.slane %v5829_v7, %v7163_v29  ;;  %v5859_v61 = vcombine.high %v5843_v36, %v5843_v36  ;;  %v5860_v41 = vcombine.high %v5850_v21, %v5850_v21  ;;  %v6660_v35 = vpop.f32.mrb[45].mxu1 }
 0x4bd   :  { %v6054_v4 = vrot.slane %v6040_v55, %v7163_v29  ;;  %v6056_v22 = vcombine.low %v5836_v30, %v5850_v21  ;;  %v5869_v52 = vrot.slane %v5699_v0, %v7163_v29  ;;  %v5707_v44 = vpop.f32.mrb[46].mxu1  ;;  %v6070_v3 = vrot.slane %v5858_v45, %v7163_v29 }
 0x4be   :  { %v6079_v25 = vcombine.low %v5860_v41, %v5843_v36  ;;  %v6080_v42 = vcombine.low %v5857_v16, %v5859_v61  ;;  %v5861_v14 = vcombine.high %v5857_v16, %v5857_v16  ;;  %v6661_v57 = vpop.f32.mrb[47].mxu1  ;;  %v5876_v27 = vrot.slane %v5862_v10, %v7163_v29 }
 0x4bf   :  { %v6055_v51 = vcombine.low %v6047_v8, %v6054_v4  ;;  %v6063_v31 = vrot.slane %v6056_v22, %v7163_v29  ;;  %v5877_v46 = vcombine.high %v5869_v52, %v5869_v52  ;;  %v6207_v49 = vsel %vm6206_vm5, %v6006_v33, 0.0 }
 0x4c0   :  { %v6089_v23 = vrot.slane %v6079_v25, %v7163_v29  ;;  %v6096_v11 = vrot.slane %v6080_v42, %v7163_v29  ;;  %v5885_v20 = vrot.slane %v5869_v52, %v7163_v29  ;;  %v5878_v48 = vcombine.high %v5876_v27, %v5876_v27 }
 0x4c1   :  { %v6208_v6 = vsel %vm6206_vm5, %v6055_v51, 0.0  ;;  %v6071_v58 = vcombine.low %v6063_v31, %v6070_v3  ;;  %v5892_v53 = vrot.slane %v5876_v27, %v7163_v29  ;;  %v5899_v15 = vrot.slane %v5877_v46, %v7163_v29 }
 0x4c2   :  { %v6209_v40 = vadd.f32 %v6208_v6, %v6207_v49  ;;  %v5907_v62 = vcombine.high %v5885_v20, %v5885_v20  ;;  %v5911_v12 = vcombine.high %v5704_v24, %v5704_v24  ;;  %v5906_v19 = vrot.slane %v5878_v48, %v7163_v29 }
 0x4c3   :  { %v6078_v54 = vrot.slane %v6071_v58, %v7163_v29  ;;  %v5908_v28 = vcombine.high %v5892_v53, %v5892_v53  ;;  %v6081_v59 = vcombine.low %v5861_v14, %v5885_v20  ;;  %v6111_v34 = vcombine.low %v6089_v23, %v6096_v11 }
 0x4c4   :  { %v5909_v26 = vcombine.high %v5899_v15, %v5899_v15  ;;  %v6082_v0 = vcombine.low %v5899_v15, %v5907_v62  ;;  %v5918_v43 = vrot.slane %v5704_v24, %v7163_v29  ;;  %v5910_v56 = vcombine.high %v5906_v19, %v5906_v19 }
 0x4c5   :  { %v6211_v60 = vsel %vm6210_vm6, %v6078_v54, 0.0  ;;  %v6103_v32 = vrot.slane %v6081_v59, %v7163_v29  ;;  %v6129_v63 = vcombine.low %v5906_v19, %v5908_v28  ;;  %v5925_v38 = vrot.slane %v5911_v12, %v7163_v29  ;;  %v6520_v12 = vld [vmem:[#allocation2] ss:$0 sm:$0xff] }
 0x4c6   :  { %v6212_v17 = vadd.f32 %v6211_v60, %v6209_v40  ;;  %v6110_v39 = vrot.slane %v6082_v0, %v7163_v29  ;;  %v6128_v1 = vcombine.low %v5909_v26, %v5892_v53  ;;  %v5926_v13 = vcombine.high %v5918_v43, %v5918_v43 }
 0x4c7   :  { %v5934_v2 = vrot.slane %v5918_v43, %v7163_v29  ;;  %v6145_v5 = vrot.slane %v6129_v63, %v7163_v29  ;;  %v5927_v37 = vcombine.high %v5925_v38, %v5925_v38  ;;  %v6119_v7 = vrot.slane %v6111_v34, %v7163_v29 }
 0x4c8   :  { %v6112_v47 = vcombine.low %v6103_v32, %v6110_v39  ;;  %v6138_v9 = vrot.slane %v6128_v1, %v7163_v29  ;;  %v5948_v50 = vrot.slane %v5926_v13, %v7163_v29  ;;  %v5941_v21 = vrot.slane %v5925_v38, %v7163_v29 }
 0x4c9   :  { %v5956_v30 = vcombine.high %v5934_v2, %v5934_v2  ;;  %v6130_v18 = vcombine.low %v5910_v56, %v5934_v2  ;;  %v5955_v55 = vrot.slane %v5927_v37, %v7163_v29  ;;  %v6213_v35 = vrot.slane %v6212_v17, 4 }
 0x4ca   :  { %v6126_v36 = vrot.slane %v6112_v47, %v7163_v29  ;;  %v5957_v45 = vcombine.high %v5948_v50, %v5948_v50  ;;  %v6160_v33 = vcombine.low %v6138_v9, %v6145_v5 }
 0x4cb   :  { %v6131_v10 = vcombine.low %v5948_v50, %v5956_v30  ;;  %v6152_v16 = vrot.slane %v6130_v18, %v7163_v29  ;;  %v6191_v22 = vrot.slane %v5955_v55, %v7163_v29  ;;  %v6214_v25 = vadd.f32 %v6213_v35, %v6212_v17 }
 0x4cc   :  { %v6127_v24 = vcombine.low %v6119_v7, %v6126_v36  ;;  %v6177_v41 = vcombine.low %v5957_v45, %v5941_v21  ;;  %v6168_v52 = vrot.slane %v6160_v33, %v7163_v29 }
 0x4cd   :  { %v6159_v61 = vrot.slane %v6131_v10, %v7163_v29  ;;  %v6215_v31 = vrot.slane %v6214_v25, 2 }
 0x4ce   :  { %v6184_v4 = vrot.slane %v6177_v41, %v7163_v29  ;;  %v6219_v57 = vsel %vm6206_vm5, %v6127_v24, 0.0 }
 0x4cf   :  { %v6161_v8 = vcombine.low %v6152_v16, %v6159_v61  ;;  %v6216_v23 = vadd.f32 %v6215_v31, %v6214_v25 }
 0x4d0   :  { %v6192_v3 = vcombine.low %v6184_v4, %v6191_v22 }
 0x4d1   :  { %v6175_v44 = vrot.slane %v6161_v8, %v7163_v29  ;;  %v6217_v6 = vrot.slane %v6216_v23, 1 }
 0x4d2   :  { %v6199_v14 = vrot.slane %v6192_v3, %v7163_v29 }
 0x4d3   :  { %v6176_v42 = vcombine.low %v6168_v52, %v6175_v44  ;;  %v6218_v53 = vadd.f32 %v6217_v6, %v6216_v23 }
 0x4d4   :  { %v6222_v46 = vsel %vm6210_vm6, %v6199_v14, 0.0 }
 0x4d5   :  { %v6220_v51 = vsel %vm6206_vm5, %v6176_v42, 0.0  ;;  %v6231_v62 = vmul.f32 0.05263158, %v6218_v53 }
 0x4d6   :  { %v6221_v27 = vadd.f32 %v6220_v51, %v6219_v57 }
 0x4d7   :  { %v6240_v19 = vadd.f32 %v6520_v12, %v6231_v62 }
 0x4d8   :  { %v6223_v49 = vadd.f32 %v6222_v46, %v6221_v27 }
 0x4da   :  { %v6224_v11 = vrot.slane %v6223_v49, 4 }
 0x4dc   :  { %v6225_v20 = vadd.f32 %v6224_v11, %v6223_v49 }
 0x4de   :  { %v6226_v58 = vrot.slane %v6225_v20, 2 }
 0x4e0   :  { %v6227_v48 = vadd.f32 %v6226_v58, %v6225_v20 }
 0x4e2   :  { %v6228_v40 = vrot.slane %v6227_v48, 1 }
 0x4e4   :  { %v6229_v15 = vadd.f32 %v6228_v40, %v6227_v48 }
 0x4e6   :  { %v6232_v29 = vmul.f32 0.05263158, %v6229_v15 }
 0x4e8   :  { %v6241_v54 = vadd.f32 %v6520_v12, %v6232_v29 }
 0x4ea   :  { %v6244_v28 = vrot.slane %v6241_v54, 7 }
 0x4ec   :  { %v6246_v59 = vsel %vm6245_vm7, %v6244_v28, %v6240_v19 }
 0x4ed   :  { %6249 = vst.msk [vmem:[%s8659_s9] sm:$0x3] %vm6248_vm8, %v6246_v59 }
 0x4ee   :  { %6254 = vsyncpa [#allocation4], 1 }
 0x4ef   :  { %6255 = vsyncpa [#allocation6], 1 }

</bundles_post_ra>
